<compile_context>
chip_gen: v5e
topology: v5e:2x2
jax: 0.10.0
libtpu: 0.0.40
codegen_flags: <defaults>
</compile_context>

<pallas_src>
import jax
import jax.numpy as jnp
from jax.experimental import pallas as pl
from jax.experimental.pallas import tpu as pltpu


# ----------------------------------------------------------------------------
# Pallas kernels
# ----------------------------------------------------------------------------
def _conv_relu_pool_kernel(p_ref, w_ref, b_ref, o_ref):
    """Fused conv (as matmul) + bias + ReLU + 2x2 max-pool.

    p_ref: (4, K, TILE) bf16  im2col patches; leading axis enumerates the
                              (dh, dw) offset inside each 2x2 pool window.
    w_ref: (Cout, K)    bf16  flattened conv weight (PyTorch order Cin,KH,KW).
    b_ref: (Cout, 1)    f32
    o_ref: (Cout, TILE) bf16  pooled activations, lane-dense spatial dim.
    """
    w = w_ref[...]
    acc = jnp.dot(w, p_ref[0], preferred_element_type=jnp.float32)
    for q in range(1, 4):
        acc = jnp.maximum(
            acc, jnp.dot(w, p_ref[q], preferred_element_type=jnp.float32))
    # relu(max_q(conv_q) + b) == max_q(relu(conv_q + b)) == maxpool2x2(relu(conv))
    o_ref[...] = jnp.maximum(acc + b_ref[...], 0.0).astype(o_ref.dtype)


def _mlp_kernel(x_ref, w1_ref, b1_ref, w2_ref, b2_ref, w3_ref, b3_ref, o_ref):
    """fc1 + ReLU + fc2 + ReLU + fc3 fused; bf16 MXU, f32 accumulate/epilogue."""
    h = jnp.dot(x_ref[...], w1_ref[...], preferred_element_type=jnp.float32)
    h = jnp.maximum(h + b1_ref[...], 0.0)
    h = jnp.dot(h.astype(jnp.bfloat16), w2_ref[...],
                preferred_element_type=jnp.float32)
    h = jnp.maximum(h + b2_ref[...], 0.0)
    h = jnp.dot(h.astype(jnp.bfloat16), w3_ref[...],
                preferred_element_type=jnp.float32)
    o_ref[...] = (h + b3_ref[...]).astype(o_ref.dtype)


# ----------------------------------------------------------------------------
# Wrappers
# ----------------------------------------------------------------------------
def _lane_tile(mp, max_tile=2048):
    """Largest multiple-of-128 tile dividing `mp` that is <= max_tile; falls
    back to the full extent (single block) when mp is small / indivisible.
    max_tile=2048 keeps double-buffered bf16 tiles well inside v7x's 64 MiB."""
    if mp <= max_tile:
        return mp
    t = (max_tile // 128) * 128
    while t >= 128:
        if mp % t == 0:
            return t
        t -= 128
    return mp


def conv_relu_pool(patches, w2d, bias):
    """patches: (4, K, Mp) bf16; w2d: (Cout, K) bf16; bias: (Cout,) f32.
    Returns pooled activations (Cout, Mp) bf16, Mp ordered (n, ph, pw)."""
    _, K, Mp = patches.shape
    Cout = w2d.shape[0]
    tile = _lane_tile(Mp)
    bias2d = bias.reshape(Cout, 1).astype(jnp.float32)
    return pl.pallas_call(
        _conv_relu_pool_kernel,
        out_shape=jax.ShapeDtypeStruct((Cout, Mp), jnp.bfloat16),
        grid=(Mp // tile,),
        in_specs=[
            pl.BlockSpec((4, K, tile), lambda i: (0, 0, i)),
            pl.BlockSpec((Cout, K), lambda i: (0, 0)),
            pl.BlockSpec((Cout, 1), lambda i: (0, 0)),
        ],
        out_specs=pl.BlockSpec((Cout, tile), lambda i: (0, i)),
        compiler_params=pltpu.CompilerParams(
            dimension_semantics=("parallel",)),
    )(patches, w2d, bias2d)


def fused_mlp(xf, w1, b1, w2, b2, w3, b3):
    """xf: (N, 1296) bf16; weights pre-transposed (K, N_out) bf16; biases f32."""
    N, D0 = xf.shape
    D1, D2, D3 = w1.shape[1], w2.shape[1], w3.shape[1]
    return pl.pallas_call(
        _mlp_kernel,
        out_shape=jax.ShapeDtypeStruct((N, D3), jnp.float32),
        in_specs=[
            pl.BlockSpec((N, D0), lambda: (0, 0)),
            pl.BlockSpec((D0, D1), lambda: (0, 0)),
            pl.BlockSpec((1, D1), lambda: (0, 0)),
            pl.BlockSpec((D1, D2), lambda: (0, 0)),
            pl.BlockSpec((1, D2), lambda: (0, 0)),
            pl.BlockSpec((D2, D3), lambda: (0, 0)),
            pl.BlockSpec((1, D3), lambda: (0, 0)),
        ],
        out_specs=pl.BlockSpec((N, D3), lambda: (0, 0)),
    )(xf, w1, b1, w2, b2, w3, b3)


def pool_conv_patches(a_cnhw, KH, KW):
    """im2col patches grouped by 2x2 pool offset (XLA glue, one fused copy).

    a_cnhw: (Cin, N, H, W) channel-major activations.
    Returns (4, Cin*KH*KW, N*PH*PW) bf16 with PH=(H-KH+1)//2, PW=(W-KW+1)//2;
    K ordered (Cin, kh, kw) to match PyTorch's weight flatten, the leading
    axis enumerates (dh, dw) in {0,1}^2 of the 2x2 pool window.
    """
    Cin, N, H, W = a_cnhw.shape
    OH, OW = H - KH + 1, W - KW + 1
    PH, PW = OH // 2, OW // 2
    a = a_cnhw.astype(jnp.bfloat16)
    groups = []
    for dh in (0, 1):
        for dw in (0, 1):
            cols = []
            for kh in range(KH):
                for kw in range(KW):
                    h0, w0 = dh + kh, dw + kw
                    cols.append(a[:, :,
                                  h0:h0 + 2 * PH - 1:2,
                                  w0:w0 + 2 * PW - 1:2])   # (Cin, N, PH, PW)
            pq = jnp.stack(cols, axis=1)            # (Cin, KH*KW, N, PH, PW)
            groups.append(pq.reshape(Cin * KH * KW, N * PH * PW))
    return jnp.stack(groups, axis=0)                # (4, K, Mp)


# ----------------------------------------------------------------------------
# Parameters (stored in kernel-friendly layouts: flattened / pre-transposed,
# matmul operands in bf16, biases in f32)
# ----------------------------------------------------------------------------
def init_params(key):
    def uinit(k, shape, fan_in):
        bound = 1.0 / jnp.sqrt(float(fan_in))
        return jax.random.uniform(k, shape, jnp.float32, -bound, bound)

    ks = jax.random.split(key, 10)
    conv1_w = uinit(ks[0], (6, 1, 3, 3), 1 * 3 * 3)
    conv2_w = uinit(ks[2], (16, 6, 7, 7), 6 * 7 * 7)
    fc1_w = uinit(ks[4], (500, 1296), 1296)
    fc2_w = uinit(ks[6], (100, 500), 500)
    fc3_w = uinit(ks[8], (4, 100), 100)
    return {
        "conv1_w": conv1_w.reshape(6, 9).astype(jnp.bfloat16),
        "conv1_b": uinit(ks[1], (6,), 1 * 3 * 3),
        "conv2_w": conv2_w.reshape(16, 294).astype(jnp.bfloat16),
        "conv2_b": uinit(ks[3], (16,), 6 * 7 * 7),
        "fc1_w": fc1_w.T.astype(jnp.bfloat16),            # (1296, 500)
        "fc1_b": uinit(ks[5], (500,), 1296).reshape(1, 500),
        "fc2_w": fc2_w.T.astype(jnp.bfloat16),            # (500, 100)
        "fc2_b": uinit(ks[7], (100,), 500).reshape(1, 100),
        "fc3_w": fc3_w.T.astype(jnp.bfloat16),            # (100, 4)
        "fc3_b": uinit(ks[9], (4,), 100).reshape(1, 4),
    }


# ----------------------------------------------------------------------------
# Forward pass (3 pallas_calls: conv1+pool, conv2+pool, fused MLP)
# ----------------------------------------------------------------------------
@jax.jit
def net_forward(params, x):
    # x: (N, 1, 50, 50) NCHW f32
    N = x.shape[0]
    a = x.transpose(1, 0, 2, 3)                                  # (1, N, 50, 50)
    p1 = pool_conv_patches(a, 3, 3)                              # (4, 9, N*576)
    h1 = conv_relu_pool(p1, params["conv1_w"], params["conv1_b"])  # (6, N*576)
    h1 = h1.reshape(6, N, 24, 24)                                # CNHW
    p2 = pool_conv_patches(h1, 7, 7)                             # (4, 294, N*81)
    h2 = conv_relu_pool(p2, params["conv2_w"], params["conv2_b"])  # (16, N*81)
    # flatten to (N, 16*9*9) in channel-major order (matches torch .view)
    xf = h2.reshape(16, N, 9, 9).transpose(1, 0, 2, 3).reshape(N, 16 * 9 * 9)
    out = fused_mlp(xf, params["fc1_w"], params["fc1_b"],
                    params["fc2_w"], params["fc2_b"],
                    params["fc3_w"], params["fc3_b"])
    return out                                                   # (N, 4) f32


if __name__ == "__main__":
    key = jax.random.PRNGKey(0)
    pkey, xkey = jax.random.split(key)
    params = init_params(pkey)
    x = jax.random.normal(xkey, (2, 1, 50, 50), jnp.float32)

    out = net_forward(params, x)
    jax.block_until_ready(out)
    assert out.shape == (2, 4), out.shape
    print("KERNEL_OK")
</pallas_src>

<mosaic_0001>
module attributes {stable_mosaic.version = 11 : i64} {
  func.func @_conv_relu_pool_kernel(%arg0: i32, %arg1: memref<4x9x1152xbf16, #tpu.memory_space<vmem>>, %arg2: memref<6x9xbf16, #tpu.memory_space<vmem>>, %arg3: memref<6x1xf32, #tpu.memory_space<vmem>>, %arg4: memref<6x1152xbf16, #tpu.memory_space<vmem>>) attributes {dimension_semantics = [#tpu.dimension_semantics<parallel>], iteration_bounds = array<i64: 1>, scalar_prefetch = 0 : i64, scratch_operands = 0 : i64, tpu.core_type = #tpu.core_type<tc>, window_params = [{transform_indices = @transform_0, window_bounds = array<i64: 4, 9, 1152>}, {pipeline_mode = #tpu.pipeline_mode<synchronous>, transform_indices = @transform_1, window_bounds = array<i64: 6, 9>}, {pipeline_mode = #tpu.pipeline_mode<synchronous>, transform_indices = @transform_2, window_bounds = array<i64: 6, 1>}, {transform_indices = @transform_3, window_bounds = array<i64: 6, 1152>}]} {
    %c0 = arith.constant 0 : index
    %c0_0 = arith.constant 0 : index
    %0 = vector.load %arg2[%c0, %c0_0] : memref<6x9xbf16, #tpu.memory_space<vmem>>, vector<6x9xbf16>
    %c0_1 = arith.constant 0 : index
    %c0_2 = arith.constant 0 : index
    %c0_3 = arith.constant 0 : index
    %1 = vector.load %arg1[%c0_1, %c0_2, %c0_3] : memref<4x9x1152xbf16, #tpu.memory_space<vmem>>, vector<1x9x1152xbf16>
    %2 = vector.shape_cast %1 : vector<1x9x1152xbf16> to vector<9x1152xbf16>
    %cst = arith.constant dense<0.000000e+00> : vector<6x1152xf32>
    %3 = tpu.matmul %0, %2, %cst {dimension_numbers = #tpu.dot_dimension_numbers<[1], [0], [0], [1], [0, 0, 1, 1], [], []>} : vector<6x9xbf16>, vector<9x1152xbf16>, vector<6x1152xf32> -> vector<6x1152xf32>
    %c1 = arith.constant 1 : index
    %c0_4 = arith.constant 0 : index
    %c0_5 = arith.constant 0 : index
    %4 = vector.load %arg1[%c1, %c0_4, %c0_5] : memref<4x9x1152xbf16, #tpu.memory_space<vmem>>, vector<1x9x1152xbf16>
    %5 = vector.shape_cast %4 : vector<1x9x1152xbf16> to vector<9x1152xbf16>
    %cst_6 = arith.constant dense<0.000000e+00> : vector<6x1152xf32>
    %6 = tpu.matmul %0, %5, %cst_6 {dimension_numbers = #tpu.dot_dimension_numbers<[1], [0], [0], [1], [0, 0, 1, 1], [], []>} : vector<6x9xbf16>, vector<9x1152xbf16>, vector<6x1152xf32> -> vector<6x1152xf32>
    %7 = arith.maximumf %3, %6 : vector<6x1152xf32>
    %c2 = arith.constant 2 : index
    %c0_7 = arith.constant 0 : index
    %c0_8 = arith.constant 0 : index
    %8 = vector.load %arg1[%c2, %c0_7, %c0_8] : memref<4x9x1152xbf16, #tpu.memory_space<vmem>>, vector<1x9x1152xbf16>
    %9 = vector.shape_cast %8 : vector<1x9x1152xbf16> to vector<9x1152xbf16>
    %cst_9 = arith.constant dense<0.000000e+00> : vector<6x1152xf32>
    %10 = tpu.matmul %0, %9, %cst_9 {dimension_numbers = #tpu.dot_dimension_numbers<[1], [0], [0], [1], [0, 0, 1, 1], [], []>} : vector<6x9xbf16>, vector<9x1152xbf16>, vector<6x1152xf32> -> vector<6x1152xf32>
    %11 = arith.maximumf %7, %10 : vector<6x1152xf32>
    %c3 = arith.constant 3 : index
    %c0_10 = arith.constant 0 : index
    %c0_11 = arith.constant 0 : index
    %12 = vector.load %arg1[%c3, %c0_10, %c0_11] : memref<4x9x1152xbf16, #tpu.memory_space<vmem>>, vector<1x9x1152xbf16>
    %13 = vector.shape_cast %12 : vector<1x9x1152xbf16> to vector<9x1152xbf16>
    %cst_12 = arith.constant dense<0.000000e+00> : vector<6x1152xf32>
    %14 = tpu.matmul %0, %13, %cst_12 {dimension_numbers = #tpu.dot_dimension_numbers<[1], [0], [0], [1], [0, 0, 1, 1], [], []>} : vector<6x9xbf16>, vector<9x1152xbf16>, vector<6x1152xf32> -> vector<6x1152xf32>
    %15 = arith.maximumf %11, %14 : vector<6x1152xf32>
    %c0_13 = arith.constant 0 : index
    %c0_14 = arith.constant 0 : index
    %16 = vector.load %arg3[%c0_13, %c0_14] : memref<6x1xf32, #tpu.memory_space<vmem>>, vector<6x1xf32>
    %17 = vector.broadcast %16 : vector<6x1xf32> to vector<6x1152xf32>
    %18 = arith.addf %15, %17 : vector<6x1152xf32>
    %cst_15 = arith.constant 0.000000e+00 : f32
    %19 = vector.broadcast %cst_15 : f32 to vector<6x1152xf32>
    %20 = arith.maximumf %18, %19 : vector<6x1152xf32>
    %21 = arith.truncf %20 : vector<6x1152xf32> to vector<6x1152xbf16>
    %c0_16 = arith.constant 0 : index
    %c0_17 = arith.constant 0 : index
    %22 = vector.load %arg4[%c0_16, %c0_17] : memref<6x1152xbf16, #tpu.memory_space<vmem>>, vector<6x1152xbf16>
    tpu.vector_store %arg4[%c0_16, %c0_17], %21 {strides = array<i32>} : memref<6x1152xbf16, #tpu.memory_space<vmem>>, vector<6x1152xbf16>,
    return
  }
  func.func @transform_0(%arg0: i32) -> (i32, i32, i32) {
    %c0_i32 = arith.constant 0 : i32
    %c0_i32_0 = arith.constant 0 : i32
    %c0_i32_1 = arith.constant 0 : i32
    return %c0_i32, %c0_i32_0, %arg0 : i32, i32, i32
  }
  func.func @transform_1(%arg0: i32) -> (i32, i32) {
    %c0_i32 = arith.constant 0 : i32
    %c0_i32_0 = arith.constant 0 : i32
    %c0_i32_1 = arith.constant 0 : i32
    return %c0_i32, %c0_i32_0 : i32, i32
  }
  func.func @transform_2(%arg0: i32) -> (i32, i32) {
    %c0_i32 = arith.constant 0 : i32
    %c0_i32_0 = arith.constant 0 : i32
    %c0_i32_1 = arith.constant 0 : i32
    return %c0_i32, %c0_i32_0 : i32, i32
  }
  func.func @transform_3(%arg0: i32) -> (i32, i32) {
    %c0_i32 = arith.constant 0 : i32
    %c0_i32_0 = arith.constant 0 : i32
    return %c0_i32, %arg0 : i32, i32
  }
}

module attributes {stable_mosaic.version = 11 : i64} {
  func.func @_conv_relu_pool_kernel(%arg0: i32, %arg1: memref<4x294x162xbf16, #tpu.memory_space<vmem>>, %arg2: memref<16x294xbf16, #tpu.memory_space<vmem>>, %arg3: memref<16x1xf32, #tpu.memory_space<vmem>>, %arg4: memref<16x162xbf16, #tpu.memory_space<vmem>>) attributes {dimension_semantics = [#tpu.dimension_semantics<parallel>], iteration_bounds = array<i64: 1>, scalar_prefetch = 0 : i64, scratch_operands = 0 : i64, tpu.core_type = #tpu.core_type<tc>, window_params = [{transform_indices = @transform_0, window_bounds = array<i64: 4, 294, 162>}, {pipeline_mode = #tpu.pipeline_mode<synchronous>, transform_indices = @transform_1, window_bounds = array<i64: 16, 294>}, {pipeline_mode = #tpu.pipeline_mode<synchronous>, transform_indices = @transform_2, window_bounds = array<i64: 16, 1>}, {transform_indices = @transform_3, window_bounds = array<i64: 16, 162>}]} {
    %c0 = arith.constant 0 : index
    %c0_0 = arith.constant 0 : index
    %0 = vector.load %arg2[%c0, %c0_0] : memref<16x294xbf16, #tpu.memory_space<vmem>>, vector<16x294xbf16>
    %c0_1 = arith.constant 0 : index
    %c0_2 = arith.constant 0 : index
    %c0_3 = arith.constant 0 : index
    %1 = vector.load %arg1[%c0_1, %c0_2, %c0_3] : memref<4x294x162xbf16, #tpu.memory_space<vmem>>, vector<1x294x162xbf16>
    %2 = vector.shape_cast %1 : vector<1x294x162xbf16> to vector<294x162xbf16>
    %cst = arith.constant dense<0.000000e+00> : vector<16x162xf32>
    %3 = tpu.matmul %0, %2, %cst {dimension_numbers = #tpu.dot_dimension_numbers<[1], [0], [0], [1], [0, 0, 1, 1], [], []>} : vector<16x294xbf16>, vector<294x162xbf16>, vector<16x162xf32> -> vector<16x162xf32>
    %c1 = arith.constant 1 : index
    %c0_4 = arith.constant 0 : index
    %c0_5 = arith.constant 0 : index
    %4 = vector.load %arg1[%c1, %c0_4, %c0_5] : memref<4x294x162xbf16, #tpu.memory_space<vmem>>, vector<1x294x162xbf16>
    %5 = vector.shape_cast %4 : vector<1x294x162xbf16> to vector<294x162xbf16>
    %cst_6 = arith.constant dense<0.000000e+00> : vector<16x162xf32>
    %6 = tpu.matmul %0, %5, %cst_6 {dimension_numbers = #tpu.dot_dimension_numbers<[1], [0], [0], [1], [0, 0, 1, 1], [], []>} : vector<16x294xbf16>, vector<294x162xbf16>, vector<16x162xf32> -> vector<16x162xf32>
    %7 = arith.maximumf %3, %6 : vector<16x162xf32>
    %c2 = arith.constant 2 : index
    %c0_7 = arith.constant 0 : index
    %c0_8 = arith.constant 0 : index
    %8 = vector.load %arg1[%c2, %c0_7, %c0_8] : memref<4x294x162xbf16, #tpu.memory_space<vmem>>, vector<1x294x162xbf16>
    %9 = vector.shape_cast %8 : vector<1x294x162xbf16> to vector<294x162xbf16>
    %cst_9 = arith.constant dense<0.000000e+00> : vector<16x162xf32>
    %10 = tpu.matmul %0, %9, %cst_9 {dimension_numbers = #tpu.dot_dimension_numbers<[1], [0], [0], [1], [0, 0, 1, 1], [], []>} : vector<16x294xbf16>, vector<294x162xbf16>, vector<16x162xf32> -> vector<16x162xf32>
    %11 = arith.maximumf %7, %10 : vector<16x162xf32>
    %c3 = arith.constant 3 : index
    %c0_10 = arith.constant 0 : index
    %c0_11 = arith.constant 0 : index
    %12 = vector.load %arg1[%c3, %c0_10, %c0_11] : memref<4x294x162xbf16, #tpu.memory_space<vmem>>, vector<1x294x162xbf16>
    %13 = vector.shape_cast %12 : vector<1x294x162xbf16> to vector<294x162xbf16>
    %cst_12 = arith.constant dense<0.000000e+00> : vector<16x162xf32>
    %14 = tpu.matmul %0, %13, %cst_12 {dimension_numbers = #tpu.dot_dimension_numbers<[1], [0], [0], [1], [0, 0, 1, 1], [], []>} : vector<16x294xbf16>, vector<294x162xbf16>, vector<16x162xf32> -> vector<16x162xf32>
    %15 = arith.maximumf %11, %14 : vector<16x162xf32>
    %c0_13 = arith.constant 0 : index
    %c0_14 = arith.constant 0 : index
    %16 = vector.load %arg3[%c0_13, %c0_14] : memref<16x1xf32, #tpu.memory_space<vmem>>, vector<16x1xf32>
    %17 = vector.broadcast %16 : vector<16x1xf32> to vector<16x162xf32>
    %18 = arith.addf %15, %17 : vector<16x162xf32>
    %cst_15 = arith.constant 0.000000e+00 : f32
    %19 = vector.broadcast %cst_15 : f32 to vector<16x162xf32>
    %20 = arith.maximumf %18, %19 : vector<16x162xf32>
    %21 = arith.truncf %20 : vector<16x162xf32> to vector<16x162xbf16>
    %c0_16 = arith.constant 0 : index
    %c0_17 = arith.constant 0 : index
    %22 = vector.load %arg4[%c0_16, %c0_17] : memref<16x162xbf16, #tpu.memory_space<vmem>>, vector<16x162xbf16>
    tpu.vector_store %arg4[%c0_16, %c0_17], %21 {strides = array<i32>} : memref<16x162xbf16, #tpu.memory_space<vmem>>, vector<16x162xbf16>,
    return
  }
  func.func @transform_0(%arg0: i32) -> (i32, i32, i32) {
    %c0_i32 = arith.constant 0 : i32
    %c0_i32_0 = arith.constant 0 : i32
    %c0_i32_1 = arith.constant 0 : i32
    return %c0_i32, %c0_i32_0, %arg0 : i32, i32, i32
  }
  func.func @transform_1(%arg0: i32) -> (i32, i32) {
    %c0_i32 = arith.constant 0 : i32
    %c0_i32_0 = arith.constant 0 : i32
    %c0_i32_1 = arith.constant 0 : i32
    return %c0_i32, %c0_i32_0 : i32, i32
  }
  func.func @transform_2(%arg0: i32) -> (i32, i32) {
    %c0_i32 = arith.constant 0 : i32
    %c0_i32_0 = arith.constant 0 : i32
    %c0_i32_1 = arith.constant 0 : i32
    return %c0_i32, %c0_i32_0 : i32, i32
  }
  func.func @transform_3(%arg0: i32) -> (i32, i32) {
    %c0_i32 = arith.constant 0 : i32
    %c0_i32_0 = arith.constant 0 : i32
    return %c0_i32, %arg0 : i32, i32
  }
}

module attributes {stable_mosaic.version = 11 : i64} {
  func.func @_mlp_kernel(%arg0: memref<2x1296xbf16, #tpu.memory_space<vmem>>, %arg1: memref<1296x500xbf16, #tpu.memory_space<vmem>>, %arg2: memref<1x500xf32, #tpu.memory_space<vmem>>, %arg3: memref<500x100xbf16, #tpu.memory_space<vmem>>, %arg4: memref<1x100xf32, #tpu.memory_space<vmem>>, %arg5: memref<100x4xbf16, #tpu.memory_space<vmem>>, %arg6: memref<1x4xf32, #tpu.memory_space<vmem>>, %arg7: memref<2x4xf32, #tpu.memory_space<vmem>>) attributes {dimension_semantics = [], scalar_prefetch = 0 : i64, scratch_operands = 0 : i64, tpu.core_type = #tpu.core_type<tc>} {
    %c0 = arith.constant 0 : index
    %c0_0 = arith.constant 0 : index
    %0 = vector.load %arg0[%c0, %c0_0] : memref<2x1296xbf16, #tpu.memory_space<vmem>>, vector<2x1296xbf16>
    %c0_1 = arith.constant 0 : index
    %c0_2 = arith.constant 0 : index
    %1 = vector.load %arg1[%c0_1, %c0_2] : memref<1296x500xbf16, #tpu.memory_space<vmem>>, vector<1296x500xbf16>
    %cst = arith.constant dense<0.000000e+00> : vector<2x500xf32>
    %2 = tpu.matmul %0, %1, %cst {dimension_numbers = #tpu.dot_dimension_numbers<[1], [0], [0], [1], [0, 0, 1, 1], [], []>} : vector<2x1296xbf16>, vector<1296x500xbf16>, vector<2x500xf32> -> vector<2x500xf32>
    %c0_3 = arith.constant 0 : index
    %c0_4 = arith.constant 0 : index
    %3 = vector.load %arg2[%c0_3, %c0_4] : memref<1x500xf32, #tpu.memory_space<vmem>>, vector<1x500xf32>
    %4 = vector.broadcast %3 : vector<1x500xf32> to vector<2x500xf32>
    %5 = arith.addf %2, %4 : vector<2x500xf32>
    %cst_5 = arith.constant 0.000000e+00 : f32
    %6 = vector.broadcast %cst_5 : f32 to vector<2x500xf32>
    %7 = arith.maximumf %5, %6 : vector<2x500xf32>
    %8 = arith.truncf %7 : vector<2x500xf32> to vector<2x500xbf16>
    %c0_6 = arith.constant 0 : index
    %c0_7 = arith.constant 0 : index
    %9 = vector.load %arg3[%c0_6, %c0_7] : memref<500x100xbf16, #tpu.memory_space<vmem>>, vector<500x100xbf16>
    %cst_8 = arith.constant dense<0.000000e+00> : vector<2x100xf32>
    %10 = tpu.matmul %8, %9, %cst_8 {dimension_numbers = #tpu.dot_dimension_numbers<[1], [0], [0], [1], [0, 0, 1, 1], [], []>} : vector<2x500xbf16>, vector<500x100xbf16>, vector<2x100xf32> -> vector<2x100xf32>
    %c0_9 = arith.constant 0 : index
    %c0_10 = arith.constant 0 : index
    %11 = vector.load %arg4[%c0_9, %c0_10] : memref<1x100xf32, #tpu.memory_space<vmem>>, vector<1x100xf32>
    %12 = vector.broadcast %11 : vector<1x100xf32> to vector<2x100xf32>
    %13 = arith.addf %10, %12 : vector<2x100xf32>
    %cst_11 = arith.constant 0.000000e+00 : f32
    %14 = vector.broadcast %cst_11 : f32 to vector<2x100xf32>
    %15 = arith.maximumf %13, %14 : vector<2x100xf32>
    %16 = arith.truncf %15 : vector<2x100xf32> to vector<2x100xbf16>
    %c0_12 = arith.constant 0 : index
    %c0_13 = arith.constant 0 : index
    %17 = vector.load %arg5[%c0_12, %c0_13] : memref<100x4xbf16, #tpu.memory_space<vmem>>, vector<100x4xbf16>
    %cst_14 = arith.constant dense<0.000000e+00> : vector<2x4xf32>
    %18 = tpu.matmul %16, %17, %cst_14 {dimension_numbers = #tpu.dot_dimension_numbers<[1], [0], [0], [1], [0, 0, 1, 1], [], []>} : vector<2x100xbf16>, vector<100x4xbf16>, vector<2x4xf32> -> vector<2x4xf32>
    %c0_15 = arith.constant 0 : index
    %c0_16 = arith.constant 0 : index
    %19 = vector.load %arg6[%c0_15, %c0_16] : memref<1x4xf32, #tpu.memory_space<vmem>>, vector<1x4xf32>
    %20 = vector.broadcast %19 : vector<1x4xf32> to vector<2x4xf32>
    %21 = arith.addf %18, %20 : vector<2x4xf32>
    %c0_17 = arith.constant 0 : index
    %c0_18 = arith.constant 0 : index
    %22 = vector.load %arg7[%c0_17, %c0_18] : memref<2x4xf32, #tpu.memory_space<vmem>>, vector<2x4xf32>
    tpu.vector_store %arg7[%c0_17, %c0_18], %21 {strides = array<i32>} : memref<2x4xf32, #tpu.memory_space<vmem>>, vector<2x4xf32>,
    return
  }
}

</mosaic_0001>

<bundles_post_ra>
// kernel: net_forward.3
= control target key start
LH: loop header
LB: loop body
LE: loop exit
PB: predicated region body
PF: predicated region fallthrough
CT: control target
= control target key end

     0   :  { %vm67_vm0 = vcmask 1043456   ;;  %vm68_vm1 = vcmask 1044480   ;;  %v1105_v2 = vmov 65535   ;;  %vm63_vm2 = vcmask 72704   ;;  %s1524_s0 = inlined_call_operand.vmem [shape: bf16[4,9,1152], index: 0, kind: input, shape index: {}]   ;;  %s1525_s1 = inlined_call_operand.vmem [shape: bf16[6,9], index: 1, kind: input, shape index: {}]   ;;  %s1526_s2 = inlined_call_operand.vmem [shape: f32[6,1], index: 2, kind: input, shape index: {}]   ;;  %s1527_s3 = inlined_call_operand.vmem [shape: bf16[6,1152], index: 3, kind: output, shape index: {}]  }
   0x1   :  { %v858_v0 = vld [vmem:[%s1524_s0] sm:$0xf]  ;;  %v1070_v1 = vld [vmem:[%s1524_s0 + $0x20] sm:$0x10]  ;;  %v69_v3 = vsel %vm67_vm0, 4294967295, %v1105_v2 }
   0x2   :  { %v859_v4 = vor.u32 %v1070_v1, %v858_v0  ;;  %v1133_v5 = vsel %vm68_vm1, %v69_v3, 0  ;;  %v1066_v6 = vld [vmem:[%s1524_s0 + $0x4] sm:$0xf]  ;;  %v860_v7 = vld [vmem:[%s1524_s0 + $0x24] sm:$0x10] }
   0x3   :  { %v863_v8 = vor.u32 %v1066_v6, %v860_v7  ;;  %v866_v9 = vld [vmem:[%s1524_s0 + $0x8] sm:$0xf]  ;;  %v1071_v10 = vld [vmem:[%s1524_s0 + $0x28] sm:$0x10]  ;;  %v868_v14 = vld [vmem:[%s1524_s0 + $0x2c] sm:$0x10] }
   0x4   :  { %v1067_v11 = vld [vmem:[%s1524_s0 + $0xc] sm:$0xf]  ;;  %v72_v12 = vand.u32 %v859_v4, %v1133_v5  ;;  %v867_v13 = vor.u32 %v1071_v10, %v866_v9  ;;  %v1157_v15 = vld [vmem:[%s1525_s1] sm:$0x7]  ;;  %v882_v16 = vld [vmem:[%s1524_s0 + $0x18] sm:$0xf] }
   0x5   :  { %v75_v17 = vand.u32 %v863_v8, %v1133_v5  ;;  %v871_v18 = vor.u32 %v1067_v11, %v868_v14  ;;  %v1073_v19 = vld [vmem:[%s1524_s0 + $0x38] sm:$0x10]  ;;  %v884_v21 = vld [vmem:[%s1524_s0 + $0x3c] sm:$0x10]  ;;  %v874_v25 = vld [vmem:[%s1524_s0 + $0x10] sm:$0xf] }
   0x6   :  { %v1069_v20 = vld [vmem:[%s1524_s0 + $0x1c] sm:$0xf]  ;;  %105 = vmatpush.bf16.msra.mxu0 %v72_v12  ;;  %v78_v22 = vand.u32 %v867_v13, %v1133_v5  ;;  %v883_v23 = vor.u32 %v1073_v19, %v882_v16  ;;  %v1072_v26 = vld [vmem:[%s1524_s0 + $0x30] sm:$0x10]  ;;  %v876_v30 = vld [vmem:[%s1524_s0 + $0x34] sm:$0x10] }
   0x7   :  { %v887_v24 = vor.u32 %v1069_v20, %v884_v21  ;;  %v1068_v27 = vld [vmem:[%s1524_s0 + $0x14] sm:$0xf]  ;;  %118 = vmatpush.bf16.msra.mxu1 %v75_v17  ;;  %v81_v28 = vand.u32 %v871_v18, %v1133_v5  ;;  %v875_v29 = vor.u32 %v1072_v26, %v874_v25  ;;  %v1075_v31 = vld [vmem:[%s1524_s0 + $0x4c] sm:$0xf]  ;;  %v915_v32 = vld [vmem:[%s1524_s0 + $0x6c] sm:$0x10] }
   0x8   :  { %131 = vmatpush.bf16.msra.mxu2 %v78_v22  ;;  %v90_v33 = vand.u32 %v883_v23, %v1133_v5  ;;  %v879_v35 = vor.u32 %v1068_v27, %v876_v30  ;;  %v918_v36 = vor.u32 %v1075_v31, %v915_v32  ;;  %v921_v37 = vld [vmem:[%s1524_s0 + $0x50] sm:$0xf]  ;;  %v1080_v38 = vld [vmem:[%s1524_s0 + $0x70] sm:$0x10]  ;;  %v890_v39 = vld [vmem:[%s1524_s0 + $0x20] sm:$0xf] }
   0x9   :  { %v93_v34 = vand.u32 %v887_v24, %v1133_v5  ;;  %144 = vmatpush.bf16.msra.mxu3 %v81_v28  ;;  %892 = vmatmul.msk.bf16.vlgmr.msra.gmra.mxu0 %vm63_vm2, %v1157_v15  ;;  %v84_v40 = vand.u32 %v875_v29, %v1133_v5  ;;  %v922_v41 = vor.u32 %v1080_v38, %v921_v37  ;;  %v1074_v42 = vld [vmem:[%s1524_s0 + $0x40] sm:$0x10]  ;;  %v913_v43 = vld [vmem:[%s1524_s0 + $0x48] sm:$0xf]  ;;  %v1079_v44 = vld [vmem:[%s1524_s0 + $0x68] sm:$0x10] }
   0xa   :  { %893 = vmatmul.msk.bf16.vlgmr.msra.gmra.mxu1 %vm63_vm2, %v1157_v15  ;;  %v87_v45 = vand.u32 %v879_v35, %v1133_v5  ;;  %v267_v46 = vand.u32 %v918_v36, %v1133_v5  ;;  %v891_v47 = vor.u32 %v1074_v42, %v890_v39  ;;  %v914_v49 = vor.u32 %v1079_v44, %v913_v43  ;;  %v1076_v52 = vld [vmem:[%s1524_s0 + $0x54] sm:$0xf]  ;;  %v923_v53 = vld [vmem:[%s1524_s0 + $0x74] sm:$0x10]  ;;  %v1081_v55 = vld [vmem:[%s1524_s0 + $0x78] sm:$0x10] }
   0xb   :  { %894 = vmatmul.msk.bf16.vlgmr.msra.gmra.mxu2 %vm63_vm2, %v1157_v15  ;;  %v270_v48 = vand.u32 %v922_v41, %v1133_v5  ;;  %157 = vmatpush.bf16.msrb.mxu0 %v84_v40  ;;  %v929_v54 = vld [vmem:[%s1524_s0 + $0x58] sm:$0xf]  ;;  %v1077_v56 = vld [vmem:[%s1524_s0 + $0x5c] sm:$0xf]  ;;  %v931_v57 = vld [vmem:[%s1524_s0 + $0x7c] sm:$0x10]  ;;  %v926_v60 = vor.u32 %v1076_v52, %v923_v53 }
   0xc   :  { %183 = vmatpush.bf16.msrb.mxu2 %v90_v33  ;;  %895 = vmatmul.msk.bf16.vlgmr.msra.gmra.mxu3 %vm63_vm2, %v1157_v15  ;;  %v96_v50 = vand.u32 %v891_v47, %v1133_v5  ;;  %v264_v51 = vand.u32 %v914_v49, %v1133_v5  ;;  %v937_v58 = vld [vmem:[%s1524_s0 + $0x60] sm:$0xf]  ;;  %v1082_v59 = vld [vmem:[%s1524_s0 + $0x80] sm:$0x10]  ;;  %v930_v61 = vor.u32 %v1081_v55, %v929_v54  ;;  %v939_v6 = vld [vmem:[%s1524_s0 + $0x84] sm:$0x10] }
   0xd   :  { %196 = vmatpush.bf16.msrb.mxu3 %v93_v34  ;;  %170 = vmatpush.bf16.msrb.mxu1 %v87_v45  ;;  %v934_v62 = vor.u32 %v1077_v56, %v931_v57  ;;  %v938_v63 = vor.u32 %v1082_v59, %v937_v58  ;;  %v273_v0 = vand.u32 %v926_v60, %v1133_v5  ;;  %v1078_v4 = vld [vmem:[%s1524_s0 + $0x64] sm:$0xf]  ;;  %v945_v7 = vld [vmem:[%s1524_s0 + $0x68] sm:$0xf]  ;;  %v1083_v8 = vld [vmem:[%s1524_s0 + $0x88] sm:$0x10] }
   0xe   :  { %v276_v1 = vand.u32 %v930_v61, %v1133_v5  ;;  %v968_v9 = vld [vmem:[%s1524_s0 + $0x90] sm:$0xf]  ;;  %v1088_v10 = vld [vmem:[%s1524_s0 + $0xb0] sm:$0x10]  ;;  %v970_v12 = vld [vmem:[%s1524_s0 + $0xb4] sm:$0x10]  ;;  %v942_v13 = vor.u32 %v1078_v4, %v939_v6  ;;  %v946_v14 = vor.u32 %v1083_v8, %v945_v7 }
   0xf   :  { %209 = vmatpush.bf16.msra.mxu0 %v96_v50  ;;  %v279_v2 = vand.u32 %v934_v62, %v1133_v5  ;;  %v282_v3 = vand.u32 %v938_v63, %v1133_v5  ;;  %v1084_v11 = vld [vmem:[%s1524_s0 + $0x94] sm:$0xf]  ;;  %v969_v16 = vor.u32 %v1088_v10, %v968_v9  ;;  %v976_v22 = vld [vmem:[%s1524_s0 + $0x98] sm:$0xf]  ;;  %v1089_v23 = vld [vmem:[%s1524_s0 + $0xb8] sm:$0x10] }
  0x10   :  { %310 = vmatpush.bf16.msra.mxu2 %v267_v46  ;;  %v973_v17 = vor.u32 %v1084_v11, %v970_v12  ;;  %v285_v18 = vand.u32 %v942_v13, %v1133_v5  ;;  %v288_v19 = vand.u32 %v946_v14, %v1133_v5  ;;  %v1085_v24 = vld [vmem:[%s1524_s0 + $0x9c] sm:$0xf]  ;;  %v978_v25 = vld [vmem:[%s1524_s0 + $0xbc] sm:$0x10]  ;;  %v1090_v27 = vld [vmem:[%s1524_s0 + $0xc0] sm:$0x10]  ;;  %v977_v30 = vor.u32 %v1089_v23, %v976_v22 }
  0x11   :  { %323 = vmatpush.bf16.msra.mxu3 %v270_v48  ;;  %297 = vmatpush.bf16.msra.mxu1 %v264_v51  ;;  %v465_v20 = vand.u32 %v969_v16, %v1133_v5  ;;  %v984_v26 = vld [vmem:[%s1524_s0 + $0xa0] sm:$0xf]  ;;  %v1086_v28 = vld [vmem:[%s1524_s0 + $0xa4] sm:$0xf]  ;;  %v986_v29 = vld [vmem:[%s1524_s0 + $0xc4] sm:$0x10]  ;;  %v981_v31 = vor.u32 %v1085_v24, %v978_v25 }
  0x12   :  { %v468_v21 = vand.u32 %v973_v17, %v1133_v5  ;;  %v985_v32 = vor.u32 %v1090_v27, %v984_v26  ;;  %v989_v33 = vor.u32 %v1086_v28, %v986_v29  ;;  %v471_v34 = vand.u32 %v977_v30, %v1133_v5  ;;  %v992_v38 = vld [vmem:[%s1524_s0 + $0xa8] sm:$0xf]  ;;  %v1091_v39 = vld [vmem:[%s1524_s0 + $0xc8] sm:$0x10]  ;;  %v994_v41 = vld [vmem:[%s1524_s0 + $0xcc] sm:$0x10] }
  0x13   :  { %v474_v35 = vand.u32 %v981_v31, %v1133_v5  ;;  %v1087_v40 = vld [vmem:[%s1524_s0 + $0xac] sm:$0xf]  ;;  %v1000_v42 = vld [vmem:[%s1524_s0 + $0xb0] sm:$0xf]  ;;  %v1092_v43 = vld [vmem:[%s1524_s0 + $0xd0] sm:$0x10]  ;;  %v993_v46 = vor.u32 %v1091_v39, %v992_v38 }
  0x14   :  { %v477_v36 = vand.u32 %v985_v32, %v1133_v5  ;;  %v480_v37 = vand.u32 %v989_v33, %v1133_v5  ;;  %v1023_v44 = vld [vmem:[%s1524_s0 + $0xd8] sm:$0xf]  ;;  %v1097_v45 = vld [vmem:[%s1524_s0 + $0xf8] sm:$0x10]  ;;  %v997_v47 = vor.u32 %v1087_v40, %v994_v41  ;;  %v1001_v48 = vor.u32 %v1092_v43, %v1000_v42  ;;  %v1025_v55 = vld [vmem:[%s1524_s0 + $0xfc] sm:$0x10] }
  0x15   :  { %v1024_v49 = vor.u32 %v1097_v45, %v1023_v44  ;;  %v483_v50 = vand.u32 %v993_v46, %v1133_v5  ;;  %v1093_v54 = vld [vmem:[%s1524_s0 + $0xdc] sm:$0xf]  ;;  %v1031_v56 = vld [vmem:[%s1524_s0 + $0xe0] sm:$0xf]  ;;  %v1098_v57 = vld [vmem:[%s1524_s0 + $0x100] sm:$0x10] }
  0x16   :  { %v486_v51 = vand.u32 %v997_v47, %v1133_v5  ;;  %v489_v52 = vand.u32 %v1001_v48, %v1133_v5  ;;  %v1094_v58 = vld [vmem:[%s1524_s0 + $0xe4] sm:$0xf]  ;;  %v1033_v59 = vld [vmem:[%s1524_s0 + $0x104] sm:$0x10]  ;;  %v1099_v61 = vld [vmem:[%s1524_s0 + $0x108] sm:$0x10]  ;;  %v1028_v62 = vor.u32 %v1093_v54, %v1025_v55  ;;  %v1032_v63 = vor.u32 %v1098_v57, %v1031_v56 }
  0x17   :  { %v666_v53 = vand.u32 %v1024_v49, %v1133_v5  ;;  %v1039_v60 = vld [vmem:[%s1524_s0 + $0xe8] sm:$0xf]  ;;  %v818_v7 = vld [vmem:[%s1526_s2] sm:$0x3f]  ;;  %v1106_v8 = vmov 0  }
  0x18   :  { %1104 = vset.pattern.permute.xlu0 %v1106_v8  ;;  %v1095_v9 = vld [vmem:[%s1524_s0 + $0xec] sm:$0xf]  ;;  %v1041_v10 = vld [vmem:[%s1524_s0 + $0x10c] sm:$0x10]  ;;  %v1100_v12 = vld [vmem:[%s1524_s0 + $0x110] sm:$0x10] }
  0x19   :  { %896 = vmatmul.msk.bf16.vlgmr.msrb.gmra.mxu0 %vm63_vm2, %v1157_v15  ;;  %821 = vperm.xlu0 %1104, %v818_v7   ;;  %v1047_v11 = vld [vmem:[%s1524_s0 + $0xf0] sm:$0xf]  ;;  %v1096_v13 = vld [vmem:[%s1524_s0 + $0xf4] sm:$0xf]  ;;  %v1049_v14 = vld [vmem:[%s1524_s0 + $0x114] sm:$0x10] }
  0x1a   :  { %897 = vmatmul.msk.bf16.vlgmr.msrb.gmra.mxu1 %vm63_vm2, %v1157_v15  ;;  %336 = vmatpush.bf16.msrb.mxu0 %v273_v0  ;;  %v1036_v0 = vor.u32 %v1094_v58, %v1033_v59  ;;  %v1055_v16 = vld [vmem:[%s1524_s0 + $0xf8] sm:$0xf]  ;;  %v1101_v17 = vld [vmem:[%s1524_s0 + $0x118] sm:$0x10] }
  0x1b   :  { %898 = vmatmul.msk.bf16.vlgmr.msrb.gmra.mxu2 %vm63_vm2, %v1157_v15  ;;  %349 = vmatpush.bf16.msrb.mxu1 %v276_v1  ;;  %v1040_v1 = vor.u32 %v1099_v61, %v1039_v60 }
  0x1c   :  { %899 = vmatmul.msk.bf16.vlgmr.msrb.gmra.mxu3 %vm63_vm2, %v1157_v15  ;;  %362 = vmatpush.bf16.msrb.mxu2 %v279_v2  ;;  %v669_v2 = vand.u32 %v1028_v62, %v1133_v5  ;;  %v675_v4 = vand.u32 %v1036_v0, %v1133_v5 }
  0x1d   :  { %375 = vmatpush.bf16.msrb.mxu3 %v282_v3  ;;  %v672_v3 = vand.u32 %v1032_v63, %v1133_v5  ;;  %v678_v6 = vand.u32 %v1040_v1, %v1133_v5 }
  0x29   :  { %900 = vmatmul.msk.bf16.vlgmr.msra.gmra.mxu0 %vm63_vm2, %v1157_v15 }
  0x2a   :  { %947 = vmatmul.msk.bf16.vlgmr.msra.gmra.mxu1 %vm63_vm2, %v1157_v15  ;;  %388 = vmatpush.bf16.msra.mxu0 %v285_v18  ;;  %v1044_v18 = vor.u32 %v1095_v9, %v1041_v10 }
  0x2b   :  { %948 = vmatmul.msk.bf16.vlgmr.msra.gmra.mxu2 %vm63_vm2, %v1157_v15  ;;  %401 = vmatpush.bf16.msra.mxu1 %v288_v19  ;;  %v1048_v19 = vor.u32 %v1100_v12, %v1047_v11 }
  0x2c   :  { %949 = vmatmul.msk.bf16.vlgmr.msra.gmra.mxu3 %vm63_vm2, %v1157_v15  ;;  %498 = vmatpush.bf16.msra.mxu2 %v465_v20  ;;  %v1052_v20 = vor.u32 %v1096_v13, %v1049_v14  ;;  %v681_v22 = vand.u32 %v1044_v18, %v1133_v5 }
  0x2d   :  { %511 = vmatpush.bf16.msra.mxu3 %v468_v21  ;;  %v1056_v21 = vor.u32 %v1101_v17, %v1055_v16  ;;  %v684_v23 = vand.u32 %v1048_v19, %v1133_v5 }
  0x2e   :  { %v687_v24 = vand.u32 %v1052_v20, %v1133_v5 }
  0x2f   :  { %v690_v25 = vand.u32 %v1056_v21, %v1133_v5 }
  0x39   :  { %950 = vmatmul.msk.bf16.vlgmr.msrb.gmra.mxu0 %vm63_vm2, %v1157_v15 }
  0x3a   :  { %951 = vmatmul.msk.bf16.vlgmr.msrb.gmra.mxu1 %vm63_vm2, %v1157_v15  ;;  %524 = vmatpush.bf16.msrb.mxu0 %v471_v34 }
  0x3b   :  { %952 = vmatmul.msk.bf16.vlgmr.msrb.gmra.mxu2 %vm63_vm2, %v1157_v15  ;;  %537 = vmatpush.bf16.msrb.mxu1 %v474_v35 }
  0x3c   :  { %953 = vmatmul.msk.bf16.vlgmr.msrb.gmra.mxu3 %vm63_vm2, %v1157_v15  ;;  %550 = vmatpush.bf16.msrb.mxu2 %v477_v36 }
  0x3d   :  { %563 = vmatpush.bf16.msrb.mxu3 %v480_v37 }
  0x49   :  { %954 = vmatmul.msk.bf16.vlgmr.msra.gmra.mxu0 %vm63_vm2, %v1157_v15 }
  0x4a   :  { %955 = vmatmul.msk.bf16.vlgmr.msra.gmra.mxu1 %vm63_vm2, %v1157_v15  ;;  %576 = vmatpush.bf16.msra.mxu0 %v483_v50 }
  0x4b   :  { %1002 = vmatmul.msk.bf16.vlgmr.msra.gmra.mxu2 %vm63_vm2, %v1157_v15  ;;  %589 = vmatpush.bf16.msra.mxu1 %v486_v51 }
  0x4c   :  { %1003 = vmatmul.msk.bf16.vlgmr.msra.gmra.mxu3 %vm63_vm2, %v1157_v15  ;;  %602 = vmatpush.bf16.msra.mxu2 %v489_v52 }
  0x4d   :  { %699 = vmatpush.bf16.msra.mxu3 %v666_v53 }
  0x59   :  { %1004 = vmatmul.msk.bf16.vlgmr.msrb.gmra.mxu0 %vm63_vm2, %v1157_v15 }
  0x5a   :  { %1005 = vmatmul.msk.bf16.vlgmr.msrb.gmra.mxu1 %vm63_vm2, %v1157_v15  ;;  %712 = vmatpush.bf16.msrb.mxu0 %v669_v2 }
  0x5b   :  { %1006 = vmatmul.msk.bf16.vlgmr.msrb.gmra.mxu2 %vm63_vm2, %v1157_v15  ;;  %725 = vmatpush.bf16.msrb.mxu1 %v672_v3 }
  0x5c   :  { %1007 = vmatmul.msk.bf16.vlgmr.msrb.gmra.mxu3 %vm63_vm2, %v1157_v15  ;;  %738 = vmatpush.bf16.msrb.mxu2 %v675_v4 }
  0x5d   :  { %751 = vmatpush.bf16.msrb.mxu3 %v678_v6 }
  0x69   :  { %1008 = vmatmul.msk.bf16.vlgmr.msra.gmra.mxu0 %vm63_vm2, %v1157_v15 }
  0x6a   :  { %1009 = vmatmul.msk.bf16.vlgmr.msra.gmra.mxu1 %vm63_vm2, %v1157_v15  ;;  %764 = vmatpush.bf16.msra.mxu0 %v681_v22 }
  0x6b   :  { %1010 = vmatmul.msk.bf16.vlgmr.msra.gmra.mxu2 %vm63_vm2, %v1157_v15  ;;  %777 = vmatpush.bf16.msra.mxu1 %v684_v23 }
  0x6c   :  { %1057 = vmatmul.msk.bf16.vlgmr.msra.gmra.mxu3 %vm63_vm2, %v1157_v15  ;;  %790 = vmatpush.bf16.msra.mxu2 %v687_v24 }
  0x6d   :  { %803 = vmatpush.bf16.msra.mxu3 %v690_v25 }
  0x79   :  { %1058 = vmatmul.msk.bf16.vlgmr.msrb.gmra.mxu0 %vm63_vm2, %v1157_v15 }
  0x7a   :  { %1059 = vmatmul.msk.bf16.vlgmr.msrb.gmra.mxu1 %vm63_vm2, %v1157_v15 }
  0x7b   :  { %1060 = vmatmul.msk.bf16.vlgmr.msrb.gmra.mxu2 %vm63_vm2, %v1157_v15 }
  0x7c   :  { %1061 = vmatmul.msk.bf16.vlgmr.msrb.gmra.mxu3 %vm63_vm2, %v1157_v15 }
  0x86   :  { %v1453_v5 = vpop.f32.mrf.mxu0 }
  0x87   :  { %v1455_v26 = vpop.f32.mrf.mxu1 }
  0x89   :  { %1062 = vmatmul.msk.bf16.vlgmr.msra.gmra.mxu0 %vm63_vm2, %v1157_v15 }
  0x8a   :  { %1063 = vmatmul.msk.bf16.vlgmr.msra.gmra.mxu1 %vm63_vm2, %v1157_v15 }
  0x8b   :  { %1064 = vmatmul.msk.bf16.vlgmr.msra.gmra.mxu2 %vm63_vm2, %v1157_v15 }
  0x8c   :  { %1065 = vmatmul.msk.bf16.vlgmr.msra.gmra.mxu3 %vm63_vm2, %v1157_v15 }
  0x8e   :  { %v1465_v27 = vpop.f32.mrf.mxu2  ;;  %v109_v28 = vpop.f32.mrf.mxu0 }
  0x8f   :  { %v1467_v29 = vpop.f32.mrf.mxu3  ;;  %v122_v30 = vpop.f32.mrf.mxu1 }
  0x96   :  { %v135_v31 = vpop.f32.mrf.mxu2  ;;  %v1469_v32 = vpop.f32.mrf.mxu0 }
  0x97   :  { %v148_v33 = vpop.f32.mrf.mxu3  ;;  %v1471_v34 = vpop.f32.mrf.mxu1 }
  0x9e   :  { %v1473_v35 = vpop.f32.mrf.mxu2  ;;  %v161_v36 = vpop.f32.mrf.mxu0 }
  0x9f   :  { %v1475_v37 = vpop.f32.mrf.mxu3  ;;  %v174_v38 = vpop.f32.mrf.mxu1 }
  0xa6   :  { %v187_v39 = vpop.f32.mrf.mxu2  ;;  %v1477_v15 = vpop.f32.mrf.mxu0 }
  0xa7   :  { %v200_v40 = vpop.f32.mrf.mxu3  ;;  %v299_v41 = vpop.f32.mrf.mxu1 }
  0xa8   :  { %v407_v42 = vmax.f32 %v1453_v5, %v299_v41 }
  0xae   :  { %v312_v43 = vpop.f32.mrf.mxu2  ;;  %v213_v44 = vpop.f32.mrf.mxu0 }
  0xaf   :  { %v408_v45 = vmax.f32 %v1455_v26, %v312_v43  ;;  %v325_v46 = vpop.f32.mrf.mxu3  ;;  %v301_v47 = vpop.f32.mrf.mxu1 }
  0xb0   :  { %v409_v48 = vmax.f32 %v1465_v27, %v325_v46  ;;  %v822_v26 = vpop.permute.xlu0 %821 }
  0xb6   :  { %v314_v49 = vpop.f32.mrf.mxu2  ;;  %v338_v50 = vpop.f32.mrf.mxu0 }
  0xb7   :  { %v327_v51 = vpop.f32.mrf.mxu3  ;;  %v410_v52 = vmax.f32 %v1467_v29, %v338_v50  ;;  %v351_v53 = vpop.f32.mrf.mxu1 }
  0xb8   :  { %v411_v54 = vmax.f32 %v1469_v32, %v351_v53 }
  0xbe   :  { %v1484_v55 = vpop.f32.mrf.mxu2  ;;  %v340_v56 = vpop.f32.mrf.mxu0 }
  0xbf   :  { %v412_v57 = vmax.f32 %v1471_v34, %v1484_v55  ;;  %v1488_v58 = vpop.f32.mrf.mxu3  ;;  %v353_v59 = vpop.f32.mrf.mxu1 }
  0xc0   :  { %v413_v60 = vmax.f32 %v1473_v35, %v1488_v58 }
  0xc6   :  { %v366_v61 = vpop.f32.mrf.mxu2  ;;  %v1492_v62 = vpop.f32.mrf.mxu0 }
  0xc7   :  { %v379_v63 = vpop.f32.mrf.mxu3  ;;  %v414_v0 = vmax.f32 %v1475_v37, %v1492_v62  ;;  %v1496_v1 = vpop.f32.mrf.mxu1 }
  0xc8   :  { %v415_v2 = vmax.f32 %v1477_v15, %v1496_v1 }
  0xce   :  { %v500_v3 = vpop.f32.mrf.mxu2  ;;  %v392_v4 = vpop.f32.mrf.mxu0 }
  0xcf   :  { %v513_v6 = vpop.f32.mrf.mxu3  ;;  %v405_v7 = vpop.f32.mrf.mxu1  ;;  %v608_v25 = vmax.f32 %v407_v42, %v500_v3 }
  0xd0   :  { %v609_v27 = vmax.f32 %v408_v45, %v513_v6 }
  0xd6   :  { %v502_v8 = vpop.f32.mrf.mxu2  ;;  %v526_v9 = vpop.f32.mrf.mxu0 }
  0xd7   :  { %v515_v10 = vpop.f32.mrf.mxu3  ;;  %v539_v11 = vpop.f32.mrf.mxu1  ;;  %v610_v34 = vmax.f32 %v409_v48, %v526_v9 }
  0xd8   :  { %v611_v41 = vmax.f32 %v410_v52, %v539_v11 }
  0xde   :  { %v552_v12 = vpop.f32.mrf.mxu2  ;;  %v528_v13 = vpop.f32.mrf.mxu0 }
  0xdf   :  { %v565_v14 = vpop.f32.mrf.mxu3  ;;  %v541_v16 = vpop.f32.mrf.mxu1  ;;  %v612_v50 = vmax.f32 %v411_v54, %v552_v12 }
  0xe0   :  { %v613_v56 = vmax.f32 %v412_v57, %v565_v14 }
  0xe6   :  { %v554_v17 = vpop.f32.mrf.mxu2  ;;  %v578_v18 = vpop.f32.mrf.mxu0 }
  0xe7   :  { %v567_v19 = vpop.f32.mrf.mxu3  ;;  %v591_v20 = vpop.f32.mrf.mxu1  ;;  %v614_v54 = vmax.f32 %v413_v60, %v578_v18 }
  0xe8   :  { %v615_v57 = vmax.f32 %v414_v0, %v591_v20 }
  0xee   :  { %v604_v21 = vpop.f32.mrf.mxu2  ;;  %v580_v22 = vpop.f32.mrf.mxu0 }
  0xef   :  { %v701_v23 = vpop.f32.mrf.mxu3  ;;  %v593_v24 = vpop.f32.mrf.mxu1  ;;  %v616_v12 = vmax.f32 %v415_v2, %v604_v21 }
  0xf0   :  { %v809_v5 = vmax.f32 %v608_v25, %v701_v23 }
  0xf2   :  { %v824_v32 = vadd.f32 %v822_v26, %v809_v5 }
  0xf4   :  { %v833_v38 = vmax.f32 %v824_v32, 0.0 }
  0xf6   :  { %v606_v28 = vpop.f32.mrf.mxu2  ;;  %v714_v29 = vpop.f32.mrf.mxu0 }
  0xf7   :  { %v703_v30 = vpop.f32.mrf.mxu3  ;;  %v810_v31 = vmax.f32 %v609_v27, %v714_v29  ;;  %v727_v33 = vpop.f32.mrf.mxu1 }
  0xf8   :  { %v811_v40 = vmax.f32 %v610_v34, %v727_v33 }
  0xf9   :  { %v825_v36 = vadd.f32 %v822_v26, %v810_v31 }
  0xfa   :  { %v826_v42 = vadd.f32 %v822_v26, %v811_v40 }
  0xfb   :  { %v834_v39 = vmax.f32 %v825_v36, 0.0 }
  0xfc   :  { %v835_v53 = vmax.f32 %v826_v42, 0.0 }
  0xfd   :  { %v842_v43 = vpack.c.bf16 %v834_v39, %v833_v38 }
  0xfe   :  { %v740_v44 = vpop.f32.mrf.mxu2  ;;  %v716_v46 = vpop.f32.mrf.mxu0 }
  0xff   :  { %847 = vst [vmem:[%s1527_s3] sm:$0x77] %v842_v43  ;;  %v812_v45 = vmax.f32 %v611_v41, %v740_v44  ;;  %v753_v47 = vpop.f32.mrf.mxu3  ;;  %v729_v49 = vpop.f32.mrf.mxu1 }
 0x100   :  { %v813_v55 = vmax.f32 %v612_v50, %v753_v47 }
 0x101   :  { %v827_v51 = vadd.f32 %v822_v26, %v812_v45 }
 0x102   :  { %v828_v63 = vadd.f32 %v822_v26, %v813_v55 }
 0x103   :  { %v836_v48 = vmax.f32 %v827_v51, 0.0 }
 0x104   :  { %v837_v8 = vmax.f32 %v828_v63, 0.0 }
 0x105   :  { %v843_v59 = vpack.c.bf16 %v836_v48, %v835_v53 }
 0x106   :  { %v742_v61 = vpop.f32.mrf.mxu2  ;;  %v766_v52 = vpop.f32.mrf.mxu0 }
 0x107   :  { %848 = vst [vmem:[%s1527_s3 + $0x8] sm:$0x77] %v843_v59  ;;  %v755_v3 = vpop.f32.mrf.mxu3  ;;  %v814_v4 = vmax.f32 %v613_v56, %v766_v52  ;;  %v779_v6 = vpop.f32.mrf.mxu1 }
 0x108   :  { %v815_v10 = vmax.f32 %v614_v54, %v779_v6 }
 0x109   :  { %v829_v7 = vadd.f32 %v822_v26, %v814_v4 }
 0x10a   :  { %v830_v35 = vadd.f32 %v822_v26, %v815_v10 }
 0x10b   :  { %v838_v9 = vmax.f32 %v829_v7, 0.0 }
 0x10c   :  { %v839_v37 = vmax.f32 %v830_v35, 0.0 }
 0x10d   :  { %v844_v11 = vpack.c.bf16 %v838_v9, %v837_v8 }
 0x10e   :  { %v792_v13 = vpop.f32.mrf.mxu2  ;;  %v768_v14 = vpop.f32.mrf.mxu0 }
 0x10f   :  { %849 = vst [vmem:[%s1527_s3 + $0x10] sm:$0x77] %v844_v11  ;;  %v816_v58 = vmax.f32 %v615_v57, %v792_v13  ;;  %v805_v60 = vpop.f32.mrf.mxu3  ;;  %v781_v16 = vpop.f32.mrf.mxu1 }
 0x110   :  { %v817_v17 = vmax.f32 %v616_v12, %v805_v60 }
 0x111   :  { %v831_v18 = vadd.f32 %v822_v26, %v816_v58 }
 0x112   :  { %v832_v19 = vadd.f32 %v822_v26, %v817_v17 }
 0x113   :  { %v840_v62 = vmax.f32 %v831_v18, 0.0 }
 0x114   :  { %v841_v0 = vmax.f32 %v832_v19, 0.0 }
 0x115   :  { %v845_v20 = vpack.c.bf16 %v840_v62, %v839_v37 }
 0x116   :  { %v846_v22 = vpack.c.bf16 %v841_v0, %v841_v0  ;;  %v794_v15 = vpop.f32.mrf.mxu2 }
 0x117   :  { %850 = vst [vmem:[%s1527_s3 + $0x18] sm:$0x77] %v845_v20  ;;  %v807_v1 = vpop.f32.mrf.mxu3 }
 0x118   :  { %851 = vst [vmem:[%s1527_s3 + $0x20] sm:$0x7] %v846_v22 }

// kernel: net_forward.4
= control target key start
LH: loop header
LB: loop body
LE: loop exit
PB: predicated region body
PF: predicated region fallthrough
CT: control target
= control target key end

     0   :  { %vm260_vm0 = vcmask 1042432   ;;  %vm256_vm1 = vcmask 310272   ;;  %vm1324_vm2 = vcmask 1043456   ;;  %vm1325_vm3 = vcmask 277508   ;;  %s3184_s0 = inlined_call_operand.vmem [shape: bf16[4,294,162], index: 0, kind: input, shape index: {}]   ;;  %s3185_s1 = inlined_call_operand.vmem [shape: bf16[16,294], index: 1, kind: input, shape index: {}]   ;;  %s3186_s2 = inlined_call_operand.vmem [shape: f32[16,1], index: 2, kind: input, shape index: {}]   ;;  %s3187_s3 = inlined_call_operand.vmem [shape: bf16[16,162], index: 3, kind: output, shape index: {}]  }
   0x1   :  { %v1403_v0 = vld [vmem:[%s3184_s0 + $0x70] sm:$0xf]  ;;  %v2058_v1 = vld [vmem:[%s3184_s0 + $0x74] sm:$0xf0]  ;;  %v2073_v5 = vld [vmem:[%s3184_s0 + $0xf4] sm:$0xf] }
   0x2   :  { %v1467_v2 = vld [vmem:[%s3184_s0 + $0xf0] sm:$0xf]  ;;  %v1404_v3 = vor.u32 %v2058_v1, %v1403_v0  ;;  %v2074_v4 = vld [vmem:[%s3184_s0 + $0xf4] sm:$0xf0]  ;;  %v1469_v6 = vld [vmem:[%s3184_s0 + $0xf8] sm:$0xf0] }
   0x3   :  { %v1468_v7 = vor.u32 %v2074_v4, %v1467_v2  ;;  %v1472_v8 = vor.u32 %v2073_v5, %v1469_v6  ;;  %v2231_v9 = vld [vmem:[%s3184_s0 + $0x120] sm:$0x77]  ;;  %v2056_v11 = vld [vmem:[%s3184_s0 + $0x64] sm:$0xf0]  ;;  %v1461_v18 = vld [vmem:[%s3184_s0 + $0xe8] sm:$0xf0] }
   0x4   :  { %v1395_v10 = vld [vmem:[%s3184_s0 + $0x60] sm:$0xf]  ;;  %267 = vmatpush.bf16.msra.mxu0 %v1404_v3  ;;  %v180_v12 = vunpack.c.l.b16 %v2231_v9  ;;  %v2072_v15 = vld [vmem:[%s3184_s0 + $0xe4] sm:$0xf0]  ;;  %v2071_v16 = vld [vmem:[%s3184_s0 + $0xe4] sm:$0xf]  ;;  %v181_v62 = vunpack.c.h.b16 %v2231_v9 }
   0x5   :  { %v1396_v13 = vor.u32 %v2056_v11, %v1395_v10  ;;  %v1459_v14 = vld [vmem:[%s3184_s0 + $0xe0] sm:$0xf]  ;;  %281 = vmatpush.bf16.msra.mxu1 %v1468_v7  ;;  %323 = vmatpush.bf16.msra.mxu2 %v1472_v8  ;;  %v1483_v19 = vld [vmem:[%s3184_s0 + $0x110] sm:$0xf]  ;;  %v2078_v20 = vld [vmem:[%s3184_s0 + $0x114] sm:$0xf0]  ;;  %v1464_v22 = vor.u32 %v2071_v16, %v1461_v18 }
   0x6   :  { %v1460_v17 = vor.u32 %v2072_v15, %v1459_v14  ;;  %v218_v21 = vpack.c.b16 %v180_v12, %v180_v12  ;;  %v1387_v23 = vld [vmem:[%s3184_s0 + $0x50] sm:$0xf]  ;;  %v2054_v24 = vld [vmem:[%s3184_s0 + $0x54] sm:$0xf0]  ;;  %v2069_v27 = vld [vmem:[%s3184_s0 + $0xd4] sm:$0xf]  ;;  %v1484_v32 = vor.u32 %v2078_v20, %v1483_v19  ;;  %v219_v14 = vpack.c.b16 %v181_v62, %v181_v62 }
   0x7   :  { %v1451_v25 = vld [vmem:[%s3184_s0 + $0xd0] sm:$0xf]  ;;  %v2070_v26 = vld [vmem:[%s3184_s0 + $0xd4] sm:$0xf0]  ;;  %v1453_v28 = vld [vmem:[%s3184_s0 + $0xd8] sm:$0xf0]  ;;  %v1388_v30 = vor.u32 %v2054_v24, %v1387_v23 }
   0x8   :  { %v262_v29 = vsel %vm260_vm0, %v218_v21, 0  ;;  %268 = vmatpush.bf16.msra.mxu0 %v1396_v13  ;;  %v1475_v31 = vld [vmem:[%s3184_s0 + $0x100] sm:$0xf]  ;;  %v1452_v33 = vor.u32 %v2070_v26, %v1451_v25  ;;  %v2076_v34 = vld [vmem:[%s3184_s0 + $0x104] sm:$0xf0]  ;;  %v1456_v37 = vor.u32 %v2069_v27, %v1453_v28  ;;  %v265_v28 = vsel %vm260_vm0, %v219_v14, 0  ;;  %vm1326_vm4 = vmor %vm1325_vm3, %vm1324_vm2 }
   0x9   :  { %300 = vmatpush.bf16.msra.mxu3 %v262_v29  ;;  %282 = vmatpush.bf16.msra.mxu1 %v1460_v17  ;;  %v1379_v35 = vld [vmem:[%s3184_s0 + $0x40] sm:$0xf]  ;;  %v2052_v36 = vld [vmem:[%s3184_s0 + $0x44] sm:$0xf0]  ;;  %v2057_v40 = vld [vmem:[%s3184_s0 + $0x74] sm:$0xf]  ;;  %v1476_v45 = vor.u32 %v2076_v34, %v1475_v31 }
   0xa   :  { %324 = vmatpush.bf16.msra.mxu2 %v1464_v22  ;;  %v1443_v38 = vld [vmem:[%s3184_s0 + $0xc0] sm:$0xf]  ;;  %v2068_v39 = vld [vmem:[%s3184_s0 + $0xc4] sm:$0xf0]  ;;  %v1405_v41 = vld [vmem:[%s3184_s0 + $0x78] sm:$0xf0]  ;;  %v1380_v44 = vor.u32 %v2052_v36, %v1379_v35 }
   0xb   :  { %v2067_v42 = vld [vmem:[%s3184_s0 + $0xc4] sm:$0xf]  ;;  %v1445_v43 = vld [vmem:[%s3184_s0 + $0xc8] sm:$0xf0]  ;;  %v1444_v46 = vor.u32 %v2068_v39, %v1443_v38  ;;  %v1371_v47 = vld [vmem:[%s3184_s0 + $0x30] sm:$0xf]  ;;  %v1408_v49 = vor.u32 %v2057_v40, %v1405_v41 }
   0xc   :  { %269 = vmatpush.bf16.msra.mxu0 %v1388_v30  ;;  %v2050_v48 = vld [vmem:[%s3184_s0 + $0x34] sm:$0xf0]  ;;  %v1448_v50 = vor.u32 %v2067_v42, %v1445_v43  ;;  %v1435_v51 = vld [vmem:[%s3184_s0 + $0xb0] sm:$0xf]  ;;  %v2055_v53 = vld [vmem:[%s3184_s0 + $0x64] sm:$0xf] }
   0xd   :  { %301 = vmatpush.bf16.msra.mxu3 %v1484_v32  ;;  %283 = vmatpush.bf16.msra.mxu1 %v1452_v33  ;;  %v2066_v52 = vld [vmem:[%s3184_s0 + $0xb4] sm:$0xf0]  ;;  %v1397_v54 = vld [vmem:[%s3184_s0 + $0x68] sm:$0xf0]  ;;  %v2065_v55 = vld [vmem:[%s3184_s0 + $0xb4] sm:$0xf]  ;;  %v1372_v57 = vor.u32 %v2050_v48, %v1371_v47 }
   0xe   :  { %325 = vmatpush.bf16.msra.mxu2 %v1456_v37  ;;  %v1437_v56 = vld [vmem:[%s3184_s0 + $0xb8] sm:$0xf0]  ;;  %v1436_v58 = vor.u32 %v2066_v52, %v1435_v51  ;;  %v1363_v59 = vld [vmem:[%s3184_s0 + $0x20] sm:$0xf]  ;;  %v2048_v60 = vld [vmem:[%s3184_s0 + $0x24] sm:$0xf0]  ;;  %v1400_v63 = vor.u32 %v2055_v53, %v1397_v54 }
   0xf   :  { %v1427_v61 = vld [vmem:[%s3184_s0 + $0xa0] sm:$0xf]  ;;  %v1440_v0 = vor.u32 %v2065_v55, %v1437_v56  ;;  %v2064_v1 = vld [vmem:[%s3184_s0 + $0xa4] sm:$0xf0]  ;;  %v2053_v2 = vld [vmem:[%s3184_s0 + $0x54] sm:$0xf]  ;;  %v1364_v7 = vor.u32 %v2048_v60, %v1363_v59 }
  0x10   :  { %270 = vmatpush.bf16.msra.mxu0 %v1380_v44  ;;  %v1389_v3 = vld [vmem:[%s3184_s0 + $0x58] sm:$0xf0]  ;;  %v2063_v4 = vld [vmem:[%s3184_s0 + $0xa4] sm:$0xf]  ;;  %v1429_v5 = vld [vmem:[%s3184_s0 + $0xa8] sm:$0xf0]  ;;  %v1428_v9 = vor.u32 %v2064_v1, %v1427_v61 }
  0x11   :  { %302 = vmatpush.bf16.msra.mxu3 %v1476_v45  ;;  %284 = vmatpush.bf16.msra.mxu1 %v1444_v46  ;;  %v1343_v6 = vld [vmem:[%s3185_s1 + $0x8] sm:$0xf]  ;;  %v2042_v8 = vld [vmem:[%s3185_s1 + $0x10] sm:$0xf0]  ;;  %v1355_v10 = vld [vmem:[%s3184_s0 + $0x10] sm:$0xf]  ;;  %v1392_v15 = vor.u32 %v2053_v2, %v1389_v3  ;;  %v1432_v16 = vor.u32 %v2063_v4, %v1429_v5 }
  0x12   :  { %326 = vmatpush.bf16.msra.mxu2 %v1448_v50  ;;  %v2046_v11 = vld [vmem:[%s3184_s0 + $0x14] sm:$0xf0]  ;;  %v1419_v12 = vld [vmem:[%s3184_s0 + $0x90] sm:$0xf]  ;;  %v2371_v13 = vor.u32 %v2042_v8, %v1343_v6  ;;  %v2051_v18 = vld [vmem:[%s3184_s0 + $0x44] sm:$0xf] }
  0x13   :  { %v2062_v17 = vld [vmem:[%s3184_s0 + $0x94] sm:$0xf0]  ;;  %v1381_v19 = vld [vmem:[%s3184_s0 + $0x48] sm:$0xf0]  ;;  %v2061_v20 = vld [vmem:[%s3184_s0 + $0x94] sm:$0xf]  ;;  %v1356_v23 = vor.u32 %v2046_v11, %v1355_v10 }
  0x14   :  { %271 = vmatpush.bf16.msra.mxu0 %v1372_v57  ;;  %v1421_v21 = vld [vmem:[%s3184_s0 + $0x98] sm:$0xf0]  ;;  %1489 = vmatmul.msk.bf16.vlgmr.msra.gmra.mxu3 %vm256_vm1, %v2371_v13  ;;  %v2393_v22 = vld [vmem:[%s3184_s0 + $0x248] sm:$0x77]  ;;  %v1420_v25 = vor.u32 %v2062_v17, %v1419_v12  ;;  %v1347_v26 = vld [vmem:[%s3184_s0] sm:$0xf]  ;;  %v1384_v29 = vor.u32 %v2051_v18, %v1381_v19 }
  0x15   :  { %309 = vmatpush.bf16.msrb.mxu3 %v1408_v49  ;;  %285 = vmatpush.bf16.msra.mxu1 %v1436_v58  ;;  %v498_v24 = vunpack.c.l.b16 %v2393_v22  ;;  %v2044_v27 = vld [vmem:[%s3184_s0 + $0x4] sm:$0xf0]  ;;  %v1424_v30 = vor.u32 %v2061_v20, %v1421_v21  ;;  %v1411_v31 = vld [vmem:[%s3184_s0 + $0x80] sm:$0xf]  ;;  %v2049_v33 = vld [vmem:[%s3184_s0 + $0x34] sm:$0xf] }
  0x16   :  { %327 = vmatpush.bf16.msra.mxu2 %v1440_v0  ;;  %v2060_v32 = vld [vmem:[%s3184_s0 + $0x84] sm:$0xf0]  ;;  %v1373_v34 = vld [vmem:[%s3184_s0 + $0x38] sm:$0xf0]  ;;  %v2059_v35 = vld [vmem:[%s3184_s0 + $0x84] sm:$0xf]  ;;  %v1348_v37 = vor.u32 %v2044_v27, %v1347_v26 }
  0x17   :  { %v1413_v36 = vld [vmem:[%s3184_s0 + $0x88] sm:$0xf0]  ;;  %v1586_v38 = vld [vmem:[%s3184_s0 + $0x198] sm:$0xf]  ;;  %v2094_v39 = vld [vmem:[%s3184_s0 + $0x19c] sm:$0xf0]  ;;  %v536_v40 = vpack.c.b16 %v498_v24, %v498_v24  ;;  %v1412_v42 = vor.u32 %v2060_v32, %v1411_v31  ;;  %v1376_v46 = vor.u32 %v2049_v33, %v1373_v34 }
  0x18   :  { %272 = vmatpush.bf16.msra.mxu0 %v1364_v7  ;;  %v2040_v41 = vld [vmem:[%s3185_s1 + $0x4] sm:$0xf]  ;;  %v1337_v43 = vld [vmem:[%s3185_s1 + $0xc] sm:$0xf0]  ;;  %v1335_v44 = vld [vmem:[%s3185_s1] sm:$0xf]  ;;  %v1416_v47 = vor.u32 %v2059_v35, %v1413_v36  ;;  %v1587_v51 = vor.u32 %v2094_v39, %v1586_v38 }
  0x19   :  { %310 = vmatpush.bf16.msrb.mxu3 %v1400_v63  ;;  %286 = vmatpush.bf16.msra.mxu1 %v1428_v9  ;;  %v2041_v45 = vld [vmem:[%s3185_s1 + $0x8] sm:$0xf0]  ;;  %v2047_v48 = vld [vmem:[%s3184_s0 + $0x24] sm:$0xf]  ;;  %v2077_v49 = vld [vmem:[%s3184_s0 + $0x114] sm:$0xf]  ;;  %v2458_v56 = vor.u32 %v2040_v41, %v1337_v43 }
  0x1a   :  { %328 = vmatpush.bf16.msra.mxu2 %v1432_v16  ;;  %v1485_v50 = vld [vmem:[%s3184_s0 + $0x118] sm:$0xf0]  ;;  %v1365_v52 = vld [vmem:[%s3184_s0 + $0x28] sm:$0xf0]  ;;  %v1578_v53 = vld [vmem:[%s3184_s0 + $0x188] sm:$0xf]  ;;  %v2466_v59 = vor.u32 %v2041_v45, %v1335_v44 }
  0x1b   :  { %v2092_v54 = vld [vmem:[%s3184_s0 + $0x18c] sm:$0xf0]  ;;  %v575_v55 = vsel %vm260_vm0, %v536_v40, 0  ;;  %v1666_v57 = vld [vmem:[%s3184_s0 + $0x238] sm:$0xf]  ;;  %v1488_v60 = vor.u32 %v2077_v49, %v1485_v50  ;;  %v1368_v62 = vor.u32 %v2047_v48, %v1365_v52 }
  0x1c   :  { %273 = vmatpush.bf16.msra.mxu0 %v1356_v23  ;;  %v2114_v58 = vld [vmem:[%s3184_s0 + $0x23c] sm:$0xf0]  ;;  %v2045_v61 = vld [vmem:[%s3184_s0 + $0x14] sm:$0xf]  ;;  %v1357_v63 = vld [vmem:[%s3184_s0 + $0x18] sm:$0xf0]  ;;  %v1579_v2 = vor.u32 %v2092_v54, %v1578_v53 }
  0x1d   :  { %311 = vmatpush.bf16.msrb.mxu3 %v1392_v15  ;;  %287 = vmatpush.bf16.msra.mxu1 %v1420_v25  ;;  %v2075_v0 = vld [vmem:[%s3184_s0 + $0x104] sm:$0xf]  ;;  %v1477_v1 = vld [vmem:[%s3184_s0 + $0x108] sm:$0xf0]  ;;  %v1667_v3 = vor.u32 %v2114_v58, %v1666_v57  ;;  %v1570_v4 = vld [vmem:[%s3184_s0 + $0x178] sm:$0xf]  ;;  %v1360_v14 = vor.u32 %v2045_v61, %v1357_v63 }
  0x1e   :  { %329 = vmatpush.bf16.msra.mxu2 %v1424_v30  ;;  %v2093_v5 = vld [vmem:[%s3184_s0 + $0x19c] sm:$0xf]  ;;  %v1588_v6 = vld [vmem:[%s3184_s0 + $0x1a0] sm:$0xf0]  ;;  %v2090_v7 = vld [vmem:[%s3184_s0 + $0x17c] sm:$0xf0]  ;;  %v1480_v10 = vor.u32 %v2075_v0, %v1477_v1 }
  0x1f   :  { %v1658_v8 = vld [vmem:[%s3184_s0 + $0x228] sm:$0xf]  ;;  %v2112_v9 = vld [vmem:[%s3184_s0 + $0x22c] sm:$0xf0]  ;;  %v2109_v11 = vld [vmem:[%s3184_s0 + $0x21c] sm:$0xf]  ;;  %v1591_v15 = vor.u32 %v2093_v5, %v1588_v6  ;;  %v1571_v18 = vor.u32 %v2090_v7, %v1570_v4 }
  0x20   :  { %274 = vmatpush.bf16.msra.mxu0 %v1348_v37  ;;  %v1652_v12 = vld [vmem:[%s3184_s0 + $0x220] sm:$0xf0]  ;;  %v1349_v17 = vld [vmem:[%s3184_s0 + $0x8] sm:$0xf0]  ;;  %v1659_v19 = vor.u32 %v2112_v9, %v1658_v8  ;;  %v1562_v20 = vld [vmem:[%s3184_s0 + $0x168] sm:$0xf] }
  0x21   :  { %312 = vmatpush.bf16.msrb.mxu3 %v1384_v29  ;;  %288 = vmatpush.bf16.msra.mxu1 %v1412_v42  ;;  %v2043_v16 = vld [vmem:[%s3184_s0 + $0x4] sm:$0xf]  ;;  %v2091_v21 = vld [vmem:[%s3184_s0 + $0x18c] sm:$0xf]  ;;  %v1580_v23 = vld [vmem:[%s3184_s0 + $0x190] sm:$0xf0]  ;;  %v1655_v24 = vor.u32 %v2109_v11, %v1652_v12 }
  0x22   :  { %330 = vmatpush.bf16.msra.mxu2 %v1416_v47  ;;  %v2088_v25 = vld [vmem:[%s3184_s0 + $0x16c] sm:$0xf0]  ;;  %v1650_v26 = vld [vmem:[%s3184_s0 + $0x218] sm:$0xf]  ;;  %v2110_v27 = vld [vmem:[%s3184_s0 + $0x21c] sm:$0xf0]  ;;  %v1352_v30 = vor.u32 %v2043_v16, %v1349_v17  ;;  %v1583_v31 = vor.u32 %v2091_v21, %v1580_v23 }
  0x23   :  { %275 = vmatmul.bf16.vlgmr.msra.gmra.mxu0 %v2466_v59  ;;  %v1644_v29 = vld [vmem:[%s3184_s0 + $0x210] sm:$0xf0]  ;;  %v1563_v32 = vor.u32 %v2088_v25, %v1562_v20  ;;  %v1651_v33 = vor.u32 %v2110_v27, %v1650_v26  ;;  %v1554_v34 = vld [vmem:[%s3184_s0 + $0x158] sm:$0xf]  ;;  %v2089_v35 = vld [vmem:[%s3184_s0 + $0x17c] sm:$0xf] }
  0x24   :  { %342 = vmatpush.bf16.msrb.mxu0 %v265_v28  ;;  %289 = vmatmul.bf16.vlgmr.msra.gmra.mxu1 %v2458_v56  ;;  %v2107_v28 = vld [vmem:[%s3184_s0 + $0x20c] sm:$0xf]  ;;  %v1572_v36 = vld [vmem:[%s3184_s0 + $0x180] sm:$0xf0]  ;;  %v2086_v38 = vld [vmem:[%s3184_s0 + $0x15c] sm:$0xf0] }
  0x25   :  { %313 = vmatpush.bf16.msrb.mxu3 %v1376_v46  ;;  %580 = vmatpush.bf16.msrb.mxu1 %v1587_v51  ;;  %v1647_v37 = vor.u32 %v2107_v28, %v1644_v29  ;;  %v1642_v39 = vld [vmem:[%s3184_s0 + $0x208] sm:$0xf]  ;;  %v2108_v40 = vld [vmem:[%s3184_s0 + $0x20c] sm:$0xf0]  ;;  %v2105_v41 = vld [vmem:[%s3184_s0 + $0x1fc] sm:$0xf]  ;;  %v1575_v43 = vor.u32 %v2089_v35, %v1572_v36  ;;  %v1555_v44 = vor.u32 %v2086_v38, %v1554_v34 }
  0x26   :  { %613 = vmatpush.bf16.msrb.mxu2 %v575_v55  ;;  %v1636_v42 = vld [vmem:[%s3184_s0 + $0x200] sm:$0xf0]  ;;  %v1643_v45 = vor.u32 %v2108_v40, %v1642_v39  ;;  %v1546_v46 = vld [vmem:[%s3184_s0 + $0x148] sm:$0xf]  ;;  %v2087_v47 = vld [vmem:[%s3184_s0 + $0x16c] sm:$0xf]  ;;  %v499_v55 = vunpack.c.h.b16 %v2393_v22 }
  0x27   :  { %331 = vmatmul.bf16.vlgmr.msra.gmra.mxu2 %v2458_v56  ;;  %v1564_v48 = vld [vmem:[%s3184_s0 + $0x170] sm:$0xf0]  ;;  %v1639_v49 = vor.u32 %v2105_v41, %v1636_v42  ;;  %v2084_v50 = vld [vmem:[%s3184_s0 + $0x14c] sm:$0xf0]  ;;  %v1634_v51 = vld [vmem:[%s3184_s0 + $0x1f8] sm:$0xf] }
  0x28   :  { %343 = vmatpush.bf16.msrb.mxu0 %v1488_v60  ;;  %v2106_v52 = vld [vmem:[%s3184_s0 + $0x1fc] sm:$0xf0]  ;;  %v2103_v53 = vld [vmem:[%s3184_s0 + $0x1ec] sm:$0xf]  ;;  %v1628_v54 = vld [vmem:[%s3184_s0 + $0x1f0] sm:$0xf0]  ;;  %v1567_v57 = vor.u32 %v2087_v47, %v1564_v48  ;;  %v1547_v58 = vor.u32 %v2084_v50, %v1546_v46  ;;  %v537_v6 = vpack.c.b16 %v499_v55, %v499_v55 }
  0x29   :  { %314 = vmatpush.bf16.msrb.mxu3 %v1368_v62  ;;  %581 = vmatpush.bf16.msrb.mxu1 %v1579_v2  ;;  %v1635_v60 = vor.u32 %v2106_v52, %v1634_v51  ;;  %v1538_v61 = vld [vmem:[%s3184_s0 + $0x138] sm:$0xf]  ;;  %v2085_v62 = vld [vmem:[%s3184_s0 + $0x15c] sm:$0xf]  ;;  %v1556_v63 = vld [vmem:[%s3184_s0 + $0x160] sm:$0xf0]  ;;  %v1631_v22 = vor.u32 %v2103_v53, %v1628_v54 }
  0x2a   :  { %614 = vmatpush.bf16.msrb.mxu2 %v1667_v3  ;;  %v2082_v0 = vld [vmem:[%s3184_s0 + $0x13c] sm:$0xf0]  ;;  %v1626_v1 = vld [vmem:[%s3184_s0 + $0x1e8] sm:$0xf]  ;;  %v2104_v2 = vld [vmem:[%s3184_s0 + $0x1ec] sm:$0xf0]  ;;  %v1559_v5 = vor.u32 %v2085_v62, %v1556_v63 }
  0x2b   :  { %v2101_v3 = vld [vmem:[%s3184_s0 + $0x1dc] sm:$0xf]  ;;  %v1620_v4 = vld [vmem:[%s3184_s0 + $0x1e0] sm:$0xf0]  ;;  %v1539_v7 = vor.u32 %v2082_v0, %v1538_v61  ;;  %v1627_v8 = vor.u32 %v2104_v2, %v1626_v1  ;;  %v1530_v9 = vld [vmem:[%s3184_s0 + $0x128] sm:$0xf] }
  0x2c   :  { %344 = vmatpush.bf16.msrb.mxu0 %v1480_v10  ;;  %v2083_v10 = vld [vmem:[%s3184_s0 + $0x14c] sm:$0xf]  ;;  %v1548_v11 = vld [vmem:[%s3184_s0 + $0x150] sm:$0xf0]  ;;  %v1623_v12 = vor.u32 %v2101_v3, %v1620_v4  ;;  %v2102_v16 = vld [vmem:[%s3184_s0 + $0x1dc] sm:$0xf0] }
  0x2d   :  { %315 = vmatpush.bf16.msrb.mxu3 %v1360_v14  ;;  %582 = vmatpush.bf16.msrb.mxu1 %v1571_v18  ;;  %v2080_v14 = vld [vmem:[%s3184_s0 + $0x12c] sm:$0xf0]  ;;  %v2099_v17 = vld [vmem:[%s3184_s0 + $0x1cc] sm:$0xf]  ;;  %v1612_v18 = vld [vmem:[%s3184_s0 + $0x1d0] sm:$0xf0] }
  0x2e   :  { %615 = vmatpush.bf16.msrb.mxu2 %v1659_v19  ;;  %v1551_v19 = vor.u32 %v2083_v10, %v1548_v11  ;;  %v578_v20 = vsel %vm260_vm0, %v537_v6, 0  ;;  %v1531_v21 = vor.u32 %v2080_v14, %v1530_v9  ;;  %v1540_v25 = vld [vmem:[%s3184_s0 + $0x140] sm:$0xf0]  ;;  %v2649_v26 = vld [vmem:[%s3184_s0 + $0x370] sm:$0x77]  ;;  %v1615_v27 = vor.u32 %v2099_v17, %v1612_v18 }
  0x2f   :  { %v1610_v28 = vld [vmem:[%s3184_s0 + $0x1c8] sm:$0xf]  ;;  %v2100_v29 = vld [vmem:[%s3184_s0 + $0x1cc] sm:$0xf0]  ;;  %v1602_v35 = vld [vmem:[%s3184_s0 + $0x1b8] sm:$0xf]  ;;  %v815_v36 = vunpack.c.l.b16 %v2649_v26 }
  0x30   :  { %622 = vmatpush.bf16.msra.mxu0 %v1591_v15  ;;  %v1618_v15 = vld [vmem:[%s3184_s0 + $0x1d8] sm:$0xf]  ;;  %v2098_v38 = vld [vmem:[%s3184_s0 + $0x1bc] sm:$0xf0]  ;;  %v2079_v39 = vld [vmem:[%s3184_s0 + $0x12c] sm:$0xf] }
  0x31   :  { %316 = vmatpush.bf16.msrb.mxu3 %v1352_v30  ;;  %583 = vmatpush.bf16.msrb.mxu1 %v1563_v32  ;;  %v1619_v23 = vor.u32 %v2102_v16, %v1618_v15  ;;  %v2097_v30 = vld [vmem:[%s3184_s0 + $0x1bc] sm:$0xf]  ;;  %v1532_v40 = vld [vmem:[%s3184_s0 + $0x130] sm:$0xf0]  ;;  %v2111_v47 = vld [vmem:[%s3184_s0 + $0x22c] sm:$0xf]  ;;  %v853_v52 = vpack.c.b16 %v815_v36, %v815_v36  ;;  %v1603_v53 = vor.u32 %v2098_v38, %v1602_v35 }
  0x32   :  { %636 = vmatpush.bf16.msra.mxu2 %v1655_v24  ;;  %v2081_v24 = vld [vmem:[%s3184_s0 + $0x13c] sm:$0xf]  ;;  %v1596_v46 = vld [vmem:[%s3184_s0 + $0x1b0] sm:$0xf0]  ;;  %v2129_v50 = vld [vmem:[%s3184_s0 + $0x2c4] sm:$0xf] }
  0x33   :  { %1490 = vmatmul.msk.bf16.vlgmr.msrb.gmra.mxu0 %vm256_vm1, %v2371_v13  ;;  %v2113_v32 = vld [vmem:[%s3184_s0 + $0x23c] sm:$0xf]  ;;  %v1543_v34 = vor.u32 %v2081_v24, %v1540_v25  ;;  %v1660_v48 = vld [vmem:[%s3184_s0 + $0x230] sm:$0xf0]  ;;  %v1771_v51 = vld [vmem:[%s3184_s0 + $0x2c8] sm:$0xf0] }
  0x34   :  { %623 = vmatpush.bf16.msra.mxu0 %v1583_v31  ;;  %317 = vmatmul.bf16.vlgmr.msrb.gmra.mxu3 %v2466_v59  ;;  %v1604_v31 = vld [vmem:[%s3184_s0 + $0x1c0] sm:$0xf0]  ;;  %v1594_v55 = vld [vmem:[%s3184_s0 + $0x1a8] sm:$0xf]  ;;  %v1769_v61 = vld [vmem:[%s3184_s0 + $0x2c0] sm:$0xf] }
  0x35   :  { %594 = vmatpush.bf16.msra.mxu3 %v1651_v33  ;;  %584 = vmatpush.bf16.msrb.mxu1 %v1555_v44  ;;  %v1668_v33 = vld [vmem:[%s3184_s0 + $0x240] sm:$0xf0]  ;;  %v1607_v41 = vor.u32 %v2097_v30, %v1604_v31  ;;  %v1833_v44 = vld [vmem:[%s3184_s0 + $0x340] sm:$0xf]  ;;  %v2130_v62 = vld [vmem:[%s3184_s0 + $0x2c4] sm:$0xf0] }
  0x36   :  { %637 = vmatpush.bf16.msra.mxu2 %v1647_v37  ;;  %v1611_v37 = vor.u32 %v2100_v29, %v1610_v28  ;;  %v1671_v42 = vor.u32 %v2113_v32, %v1668_v33  ;;  %v1825_v63 = vld [vmem:[%s3184_s0 + $0x330] sm:$0xf]  ;;  %v2144_v0 = vld [vmem:[%s3184_s0 + $0x334] sm:$0xf0]  ;;  %v2127_v1 = vld [vmem:[%s3184_s0 + $0x2b4] sm:$0xf] }
  0x37   :  { %1672 = vmatmul.msk.bf16.vlgmr.msrb.gmra.mxu2 %vm256_vm1, %v2371_v13  ;;  %v1763_v2 = vld [vmem:[%s3184_s0 + $0x2b8] sm:$0xf0]  ;;  %v892_v3 = vsel %vm260_vm0, %v853_v52, 0  ;;  %v1849_v4 = vld [vmem:[%s3184_s0 + $0x360] sm:$0xf] }
  0x38   :  { %624 = vmatpush.bf16.msra.mxu0 %v1575_v43  ;;  %v2095_v43 = vld [vmem:[%s3184_s0 + $0x1ac] sm:$0xf]  ;;  %v1761_v9 = vld [vmem:[%s3184_s0 + $0x2b0] sm:$0xf]  ;;  %v2128_v10 = vld [vmem:[%s3184_s0 + $0x2b4] sm:$0xf0]  ;;  %v1766_v11 = vor.u32 %v2127_v1, %v1763_v2 }
  0x39   :  { %595 = vmatpush.bf16.msra.mxu3 %v1643_v45  ;;  %585 = vmatpush.bf16.msrb.mxu1 %v1547_v58  ;;  %v2146_v45 = vld [vmem:[%s3184_s0 + $0x344] sm:$0xf0]  ;;  %v1599_v58 = vor.u32 %v2095_v43, %v1596_v46  ;;  %v1817_v14 = vld [vmem:[%s3184_s0 + $0x320] sm:$0xf]  ;;  %v2125_v16 = vld [vmem:[%s3184_s0 + $0x2a4] sm:$0xf] }
  0x3a   :  { %638 = vmatpush.bf16.msra.mxu2 %v1639_v49  ;;  %v1535_v49 = vor.u32 %v2079_v39, %v1532_v40  ;;  %v1834_v54 = vor.u32 %v2146_v45, %v1833_v44  ;;  %v2142_v15 = vld [vmem:[%s3184_s0 + $0x324] sm:$0xf0]  ;;  %v1755_v17 = vld [vmem:[%s3184_s0 + $0x2a8] sm:$0xf0]  ;;  %v1841_v18 = vld [vmem:[%s3184_s0 + $0x350] sm:$0xf] }
  0x3b   :  { %v1835_v24 = vld [vmem:[%s3184_s0 + $0x348] sm:$0xf0]  ;;  %v1753_v25 = vld [vmem:[%s3184_s0 + $0x2a0] sm:$0xf]  ;;  %v2126_v29 = vld [vmem:[%s3184_s0 + $0x2a4] sm:$0xf0] }
  0x3c   :  { %625 = vmatpush.bf16.msra.mxu0 %v1567_v57  ;;  %v2096_v57 = vld [vmem:[%s3184_s0 + $0x1ac] sm:$0xf0]  ;;  %v2140_v31 = vld [vmem:[%s3184_s0 + $0x314] sm:$0xf0]  ;;  %v2123_v32 = vld [vmem:[%s3184_s0 + $0x294] sm:$0xf]  ;;  %v1754_v35 = vor.u32 %v2126_v29, %v1753_v25 }
  0x3d   :  { %596 = vmatpush.bf16.msra.mxu3 %v1635_v60  ;;  %586 = vmatpush.bf16.msrb.mxu1 %v1539_v7  ;;  %v1663_v60 = vor.u32 %v2111_v47, %v1660_v48  ;;  %v1595_v6 = vor.u32 %v2096_v57, %v1594_v55  ;;  %v1770_v7 = vor.u32 %v2130_v62, %v1769_v61  ;;  %v1809_v30 = vld [vmem:[%s3184_s0 + $0x310] sm:$0xf]  ;;  %v1747_v33 = vld [vmem:[%s3184_s0 + $0x298] sm:$0xf0]  ;;  %v2138_v43 = vld [vmem:[%s3184_s0 + $0x304] sm:$0xf0] }
  0x3e   :  { %639 = vmatpush.bf16.msra.mxu2 %v1631_v22  ;;  %v1774_v22 = vor.u32 %v2129_v50, %v1771_v51  ;;  %v1810_v36 = vor.u32 %v2140_v31, %v1809_v30  ;;  %v1827_v38 = vld [vmem:[%s3184_s0 + $0x338] sm:$0xf0]  ;;  %v1745_v39 = vld [vmem:[%s3184_s0 + $0x290] sm:$0xf]  ;;  %v1750_v40 = vor.u32 %v2123_v32, %v1747_v33  ;;  %v2121_v44 = vld [vmem:[%s3184_s0 + $0x284] sm:$0xf] }
  0x3f   :  { %v1739_v45 = vld [vmem:[%s3184_s0 + $0x288] sm:$0xf0]  ;;  %v1737_v51 = vld [vmem:[%s3184_s0 + $0x280] sm:$0xf]  ;;  %v2136_v55 = vld [vmem:[%s3184_s0 + $0x2f4] sm:$0xf0] }
  0x40   :  { %626 = vmatpush.bf16.msra.mxu0 %v1559_v5  ;;  %v2150_v5 = vld [vmem:[%s3184_s0 + $0x364] sm:$0xf0]  ;;  %v1819_v50 = vld [vmem:[%s3184_s0 + $0x328] sm:$0xf0]  ;;  %v1742_v52 = vor.u32 %v2121_v44, %v1739_v45  ;;  %v2119_v57 = vld [vmem:[%s3184_s0 + $0x274] sm:$0xf] }
  0x41   :  { %597 = vmatpush.bf16.msra.mxu3 %v1627_v8  ;;  %587 = vmatpush.bf16.msrb.mxu1 %v1531_v21  ;;  %v1826_v8 = vor.u32 %v2144_v0, %v1825_v63  ;;  %v1818_v21 = vor.u32 %v2142_v15, %v1817_v14  ;;  %v2139_v61 = vld [vmem:[%s3184_s0 + $0x314] sm:$0xf]  ;;  %v1729_v0 = vld [vmem:[%s3184_s0 + $0x270] sm:$0xf]  ;;  %v2851_v1 = vld [vmem:[%s3184_s0 + $0x498] sm:$0x77] }
  0x42   :  { %640 = vmatpush.bf16.msra.mxu2 %v1623_v12  ;;  %v1850_v12 = vor.u32 %v2150_v5, %v1849_v4  ;;  %v1785_v4 = vld [vmem:[%s3184_s0 + $0x2e0] sm:$0xf]  ;;  %v2134_v5 = vld [vmem:[%s3184_s0 + $0x2e4] sm:$0xf0]  ;;  %v1803_v14 = vld [vmem:[%s3184_s0 + $0x308] sm:$0xf0] }
  0x43   :  { %v1721_v15 = vld [vmem:[%s3184_s0 + $0x260] sm:$0xf]  ;;  %v2166_v25 = vld [vmem:[%s3184_s0 + $0x3ec] sm:$0xf0]  ;;  %v1795_v31 = vld [vmem:[%s3184_s0 + $0x2f8] sm:$0xf0] }
  0x44   :  { %627 = vmatpush.bf16.msra.mxu0 %v1551_v19  ;;  %588 = vmatmul.bf16.vlgmr.msrb.gmra.mxu1 %v2466_v59  ;;  %v2148_v19 = vld [vmem:[%s3184_s0 + $0x354] sm:$0xf0]  ;;  %v2133_v44 = vld [vmem:[%s3184_s0 + $0x2e4] sm:$0xf]  ;;  %v1787_v45 = vld [vmem:[%s3184_s0 + $0x2e8] sm:$0xf0] }
  0x45   :  { %598 = vmatpush.bf16.msra.mxu3 %v1619_v23  ;;  %655 = vmatpush.bf16.msra.mxu1 %v578_v20  ;;  %v1762_v20 = vor.u32 %v2128_v10, %v1761_v9  ;;  %v2145_v23 = vld [vmem:[%s3184_s0 + $0x344] sm:$0xf]  ;;  %v1842_v28 = vor.u32 %v2148_v19, %v1841_v18  ;;  %v1132_v10 = vunpack.c.l.b16 %v2851_v1  ;;  %v1777_v18 = vld [vmem:[%s3184_s0 + $0x2d0] sm:$0xf]  ;;  %v2132_v19 = vld [vmem:[%s3184_s0 + $0x2d4] sm:$0xf0] }
  0x46   :  { %641 = vmatpush.bf16.msra.mxu2 %v1615_v27  ;;  %v1758_v27 = vor.u32 %v2125_v16, %v1755_v17  ;;  %v2137_v9 = vld [vmem:[%s3184_s0 + $0x304] sm:$0xf]  ;;  %v2118_v16 = vld [vmem:[%s3184_s0 + $0x264] sm:$0xf0]  ;;  %v1778_v30 = vor.u32 %v2132_v19, %v1777_v18 }
  0x47   :  { %v1722_v29 = vor.u32 %v2118_v16, %v1721_v15  ;;  %v1946_v18 = vld [vmem:[%s3184_s0 + $0x3e0] sm:$0xf0] }
  0x48   :  { %628 = vmatpush.bf16.msra.mxu0 %v1543_v34  ;;  %v1838_v34 = vor.u32 %v2145_v23, %v1835_v24  ;;  %v1715_v23 = vld [vmem:[%s3184_s0 + $0x258] sm:$0xf0]  ;;  %v1952_v24 = vld [vmem:[%s3184_s0 + $0x3e8] sm:$0xf] }
  0x49   :  { %599 = vmatpush.bf16.msra.mxu3 %v1611_v37  ;;  %656 = vmatpush.bf16.msra.mxu1 %v1671_v42  ;;  %v2143_v37 = vld [vmem:[%s3184_s0 + $0x334] sm:$0xf]  ;;  %v1801_v42 = vld [vmem:[%s3184_s0 + $0x300] sm:$0xf]  ;;  %v1953_v33 = vor.u32 %v2166_v25, %v1952_v24  ;;  %v2008_v24 = vld [vmem:[%s3184_s0 + $0x458] sm:$0xf] }
  0x4a   :  { %642 = vmatpush.bf16.msra.mxu2 %v1607_v41  ;;  %v2124_v41 = vld [vmem:[%s3184_s0 + $0x294] sm:$0xf0]  ;;  %v1830_v46 = vor.u32 %v2143_v37, %v1827_v38  ;;  %v1802_v48 = vor.u32 %v2138_v43, %v1801_v42  ;;  %v2164_v38 = vld [vmem:[%s3184_s0 + $0x3dc] sm:$0xf0]  ;;  %v2186_v42 = vld [vmem:[%s3184_s0 + $0x48c] sm:$0xf0] }
  0x4b   :  { %v1746_v47 = vor.u32 %v2124_v41, %v1745_v39  ;;  %v1944_v37 = vld [vmem:[%s3184_s0 + $0x3d8] sm:$0xf]  ;;  %v2032_v41 = vld [vmem:[%s3184_s0 + $0x488] sm:$0xf]  ;;  %v2180_v25 = vld [vmem:[%s3184_s0 + $0x45c] sm:$0xf0] }
  0x4c   :  { %629 = vmatpush.bf16.msra.mxu0 %v1535_v49  ;;  %v2141_v49 = vld [vmem:[%s3184_s0 + $0x324] sm:$0xf] }
  0x4d   :  { %600 = vmatpush.bf16.msra.mxu3 %v1603_v53  ;;  %657 = vmatpush.bf16.msra.mxu1 %v1663_v60  ;;  %v2122_v53 = vld [vmem:[%s3184_s0 + $0x284] sm:$0xf0]  ;;  %v1822_v60 = vor.u32 %v2141_v49, %v1819_v50  ;;  %v2033_v49 = vor.u32 %v2186_v42, %v2032_v41  ;;  %v1851_v50 = vld [vmem:[%s3184_s0 + $0x368] sm:$0xf0]  ;;  %v1302_v41 = vld [vmem:[%s3186_s2] sm:$0xff] }
  0x4e   :  { %643 = vmatpush.bf16.msra.mxu2 %v1599_v58  ;;  %v1731_v58 = vld [vmem:[%s3184_s0 + $0x278] sm:$0xf0]  ;;  %v1738_v62 = vor.u32 %v2122_v53, %v1737_v51  ;;  %v1936_v51 = vld [vmem:[%s3184_s0 + $0x3c8] sm:$0xf]  ;;  %v1790_v53 = vor.u32 %v2133_v44, %v1787_v45  ;;  %v1930_v44 = vld [vmem:[%s3184_s0 + $0x3c0] sm:$0xf0] }
  0x4f   :  { %630 = vmatmul.bf16.vlgmr.msra.gmra.mxu0 %v2466_v59  ;;  %v1734_v2 = vor.u32 %v2119_v57, %v1731_v58  ;;  %v2131_v57 = vld [vmem:[%s3184_s0 + $0x2d4] sm:$0xf]  ;;  %v1779_v58 = vld [vmem:[%s3184_s0 + $0x2d8] sm:$0xf0]  ;;  %v2189_v45 = vmov 0  }
  0x50   :  { %911 = vmatpush.bf16.msrb.mxu0 %v1834_v54  ;;  %v1793_v54 = vld [vmem:[%s3184_s0 + $0x2f0] sm:$0xf]  ;;  %2188 = vset.pattern.permute.xlu0 %v2189_v45 }
  0x51   :  { %930 = vmatpush.bf16.msrb.mxu1 %v892_v3  ;;  %601 = vmatpush.bf16.msra.mxu3 %v1595_v6  ;;  %v1794_v63 = vor.u32 %v2136_v55, %v1793_v54  ;;  %v2120_v3 = vld [vmem:[%s3184_s0 + $0x274] sm:$0xf0]  ;;  %v2117_v6 = vld [vmem:[%s3184_s0 + $0x264] sm:$0xf]  ;;  %v2184_v55 = vld [vmem:[%s3184_s0 + $0x47c] sm:$0xf0] }
  0x52   :  { %939 = vmatpush.bf16.msrb.mxu2 %v1774_v22  ;;  %v1811_v22 = vld [vmem:[%s3184_s0 + $0x318] sm:$0xf0]  ;;  %v2024_v54 = vld [vmem:[%s3184_s0 + $0x478] sm:$0xf]  ;;  %1306 = vperm.xlu0 %2188, %v1302_v41  }
  0x53   :  { %644 = vmatmul.bf16.vlgmr.msra.gmra.mxu2 %v2458_v56 }
  0x54   :  { %912 = vmatpush.bf16.msrb.mxu0 %v1826_v8  ;;  %602 = vmatmul.bf16.vlgmr.msra.gmra.mxu3 %v2458_v56  ;;  %v1814_v8 = vor.u32 %v2139_v61, %v1811_v22  ;;  %v2018_v61 = vld [vmem:[%s3184_s0 + $0x470] sm:$0xf0]  ;;  %v2165_v22 = vld [vmem:[%s3184_s0 + $0x3ec] sm:$0xf] }
  0x55   :  { %897 = vmatpush.bf16.msrb.mxu3 %v1770_v7  ;;  %931 = vmatpush.bf16.msrb.mxu1 %v1850_v12  ;;  %v1723_v7 = vld [vmem:[%s3184_s0 + $0x268] sm:$0xf0]  ;;  %v1786_v12 = vor.u32 %v2134_v5, %v1785_v4  ;;  %v1843_v4 = vld [vmem:[%s3184_s0 + $0x358] sm:$0xf0]  ;;  %v1928_v5 = vld [vmem:[%s3184_s0 + $0x3b8] sm:$0xf] }
  0x56   :  { %940 = vmatpush.bf16.msrb.mxu2 %v1766_v11  ;;  %1673 = vmatmul.msk.bf16.vlgmr.msra.gmra.mxu1 %vm256_vm1, %v2371_v13  ;;  %v1730_v11 = vor.u32 %v2120_v3, %v1729_v0  ;;  %v1726_v17 = vor.u32 %v2117_v6, %v1723_v7  ;;  %v1954_v0 = vld [vmem:[%s3184_s0 + $0x3f0] sm:$0xf0]  ;;  %v2025_v3 = vor.u32 %v2184_v55, %v2024_v54  ;;  %v2160_v6 = vld [vmem:[%s3184_s0 + $0x3bc] sm:$0xf0]  ;;  %v2173_v54 = vld [vmem:[%s3184_s0 + $0x42c] sm:$0xf] }
  0x57   :  { %v1782_v7 = vor.u32 %v2131_v57, %v1779_v58  ;;  %v1929_v16 = vor.u32 %v2160_v6, %v1928_v5  ;;  %v1986_v55 = vld [vmem:[%s3184_s0 + $0x430] sm:$0xf0]  ;;  %v2157_v58 = vld [vmem:[%s3184_s0 + $0x3ac] sm:$0xf]  ;;  %v1978_v5 = vld [vmem:[%s3184_s0 + $0x420] sm:$0xf0] }
  0x58   :  { %913 = vmatpush.bf16.msrb.mxu0 %v1818_v21  ;;  %v816_v21 = vunpack.c.h.b16 %v2649_v26  ;;  %v2135_v26 = vld [vmem:[%s3184_s0 + $0x2f4] sm:$0xf] }
  0x59   :  { %898 = vmatpush.bf16.msrb.mxu3 %v1762_v20  ;;  %932 = vmatpush.bf16.msrb.mxu1 %v1842_v28  ;;  %v2115_v20 = vld [vmem:[%s3184_s0 + $0x254] sm:$0xf]  ;;  %v1170_v28 = vpack.c.b16 %v1132_v10, %v1132_v10  ;;  %v2182_v10 = vld [vmem:[%s3184_s0 + $0x46c] sm:$0xf0] }
  0x5a   :  { %941 = vmatpush.bf16.msrb.mxu2 %v1758_v27  ;;  %v1806_v27 = vor.u32 %v2137_v9, %v1803_v14  ;;  %v1718_v32 = vor.u32 %v2115_v20, %v1715_v23  ;;  %v2016_v9 = vld [vmem:[%s3184_s0 + $0x468] sm:$0xf]  ;;  %v2010_v14 = vld [vmem:[%s3184_s0 + $0x460] sm:$0xf0] }
  0x5b   :  { %v1209_v39 = vsel %vm260_vm0, %v1170_v28, 0  ;;  %v2017_v19 = vor.u32 %v2182_v10, %v2016_v9  ;;  %v1920_v20 = vld [vmem:[%s3184_s0 + $0x3a8] sm:$0xf]  ;;  %v2177_v28 = vld [vmem:[%s3184_s0 + $0x44c] sm:$0xf] }
  0x5c   :  { %914 = vmatpush.bf16.msrb.mxu0 %v1810_v36  ;;  %v854_v36 = vpack.c.b16 %v816_v21, %v816_v21  ;;  %v2158_v21 = vld [vmem:[%s3184_s0 + $0x3ac] sm:$0xf0]  ;;  %v1976_v10 = vld [vmem:[%s3184_s0 + $0x418] sm:$0xf] }
  0x5d   :  { %953 = vmatpush.bf16.msra.mxu1 %v1838_v34  ;;  %899 = vmatpush.bf16.msrb.mxu3 %v1754_v35  ;;  %v1713_v34 = vld [vmem:[%s3184_s0 + $0x250] sm:$0xf]  ;;  %v2116_v35 = vld [vmem:[%s3184_s0 + $0x254] sm:$0xf0] }
  0x5e   :  { %942 = vmatpush.bf16.msrb.mxu2 %v1750_v40  ;;  %v1798_v40 = vor.u32 %v2135_v26, %v1795_v31  ;;  %v1714_v43 = vor.u32 %v2116_v35, %v1713_v34  ;;  %v2161_v26 = vld [vmem:[%s3184_s0 + $0x3cc] sm:$0xf]  ;;  %v1938_v31 = vld [vmem:[%s3184_s0 + $0x3d0] sm:$0xf0]  ;;  %v2156_v34 = vld [vmem:[%s3184_s0 + $0x39c] sm:$0xf0] }
  0x60   :  { %915 = vmatpush.bf16.msrb.mxu0 %v1802_v48  ;;  %v2149_v48 = vld [vmem:[%s3184_s0 + $0x364] sm:$0xf] }
  0x61   :  { %954 = vmatpush.bf16.msra.mxu1 %v1830_v46  ;;  %900 = vmatpush.bf16.msrb.mxu3 %v1746_v47  ;;  %v895_v46 = vsel %vm260_vm0, %v854_v36, 0  ;;  %v1945_v47 = vor.u32 %v2164_v38, %v1944_v37  ;;  %v2000_v36 = vld [vmem:[%s3184_s0 + $0x448] sm:$0xf]  ;;  %v2178_v37 = vld [vmem:[%s3184_s0 + $0x44c] sm:$0xf0]  ;;  %v1941_v38 = vor.u32 %v2161_v26, %v1938_v31 }
  0x62   :  { %943 = vmatpush.bf16.msrb.mxu2 %v1742_v52  ;;  %v2162_v52 = vld [vmem:[%s3184_s0 + $0x3cc] sm:$0xf0]  ;;  %v2167_v31 = vld [vmem:[%s3184_s0 + $0x3fc] sm:$0xf] }
  0x64   :  { %916 = vmatpush.bf16.msrb.mxu0 %v1794_v63  ;;  %v1937_v63 = vor.u32 %v2162_v52, %v1936_v51  ;;  %v2176_v51 = vld [vmem:[%s3184_s0 + $0x43c] sm:$0xf0]  ;;  %v1133_v52 = vunpack.c.h.b16 %v2851_v1  ;;  %v1922_v1 = vld [vmem:[%s3184_s0 + $0x3b0] sm:$0xf0] }
  0x65   :  { %955 = vmatpush.bf16.msra.mxu1 %v1822_v60  ;;  %901 = vmatpush.bf16.msrb.mxu3 %v1738_v62  ;;  %v2181_v60 = vld [vmem:[%s3184_s0 + $0x46c] sm:$0xf]  ;;  %v1854_v62 = vor.u32 %v2149_v48, %v1851_v50  ;;  %v2154_v48 = vld [vmem:[%s3184_s0 + $0x38c] sm:$0xf0]  ;;  %v1992_v50 = vld [vmem:[%s3184_s0 + $0x438] sm:$0xf] }
  0x66   :  { %944 = vmatpush.bf16.msrb.mxu2 %v1734_v2  ;;  %1855 = vmatmul.msk.bf16.vlgmr.msrb.gmra.mxu1 %vm256_vm1, %v2371_v13  ;;  %v2147_v2 = vld [vmem:[%s3184_s0 + $0x354] sm:$0xf] }
  0x67   :  { %v1846_v15 = vor.u32 %v2147_v2, %v1843_v4  ;;  %v1171_v2 = vpack.c.b16 %v1133_v52, %v1133_v52  ;;  %v2171_v4 = vld [vmem:[%s3184_s0 + $0x41c] sm:$0xf] }
  0x68   :  { %917 = vmatpush.bf16.msrb.mxu0 %v1786_v12  ;;  %v2179_v12 = vld [vmem:[%s3184_s0 + $0x45c] sm:$0xf] }
  0x69   :  { %956 = vmatpush.bf16.msra.mxu1 %v1814_v8  ;;  %902 = vmatpush.bf16.msrb.mxu3 %v1730_v11  ;;  %v2021_v8 = vor.u32 %v2181_v60, %v2018_v61  ;;  %v1957_v11 = vor.u32 %v2165_v22, %v1954_v0  ;;  %v2013_v23 = vor.u32 %v2179_v12, %v2010_v14  ;;  %v1896_v61 = vld [vmem:[%s3184_s0 + $0x378] sm:$0xf]  ;;  %v1984_v22 = vld [vmem:[%s3184_s0 + $0x428] sm:$0xf]  ;;  %v2174_v0 = vld [vmem:[%s3184_s0 + $0x42c] sm:$0xf0] }
  0x6a   :  { %945 = vmatpush.bf16.msrb.mxu2 %v1726_v17  ;;  %v2163_v17 = vld [vmem:[%s3184_s0 + $0x3dc] sm:$0xf]  ;;  %v1993_v60 = vor.u32 %v2176_v51, %v1992_v50  ;;  %v1985_v9 = vor.u32 %v2174_v0, %v1984_v22  ;;  %v1981_v12 = vor.u32 %v2171_v4, %v1978_v5  ;;  %v1212_v14 = vsel %vm260_vm0, %v1171_v2, 0 }
  0x6c   :  { %918 = vmatpush.bf16.msrb.mxu0 %v1778_v30  ;;  %v1921_v30 = vor.u32 %v2158_v21, %v1920_v20  ;;  %v2153_v20 = vld [vmem:[%s3184_s0 + $0x38c] sm:$0xf]  ;;  %v1906_v21 = vld [vmem:[%s3184_s0 + $0x390] sm:$0xf0] }
  0x6d   :  { %957 = vmatpush.bf16.msra.mxu1 %v1806_v27  ;;  %903 = vmatpush.bf16.msrb.mxu3 %v1722_v29  ;;  %v1949_v27 = vor.u32 %v2163_v17, %v1946_v18  ;;  %v2002_v29 = vld [vmem:[%s3184_s0 + $0x450] sm:$0xf0]  ;;  %v2169_v18 = vld [vmem:[%s3184_s0 + $0x40c] sm:$0xf]  ;;  %v1909_v26 = vor.u32 %v2153_v20, %v1906_v21 }
  0x6e   :  { %946 = vmatpush.bf16.msrb.mxu2 %v1718_v32  ;;  %v2009_v32 = vor.u32 %v2180_v25, %v2008_v24  ;;  %v2005_v35 = vor.u32 %v2177_v28, %v2002_v29  ;;  %v1968_v24 = vld [vmem:[%s3184_s0 + $0x408] sm:$0xf]  ;;  %v2170_v28 = vld [vmem:[%s3184_s0 + $0x40c] sm:$0xf0]  ;;  %v2183_v29 = vld [vmem:[%s3184_s0 + $0x47c] sm:$0xf] }
  0x6f   :  { %919 = vmatmul.bf16.vlgmr.msrb.gmra.mxu0 %v2458_v56 }
  0x70   :  { %1214 = vmatpush.bf16.msra.mxu0 %v1953_v33  ;;  %v1912_v33 = vld [vmem:[%s3184_s0 + $0x398] sm:$0xf] }
  0x71   :  { %958 = vmatpush.bf16.msra.mxu1 %v1798_v40  ;;  %904 = vmatpush.bf16.msrb.mxu3 %v1714_v43  ;;  %v1994_v40 = vld [vmem:[%s3184_s0 + $0x440] sm:$0xf0]  ;;  %v1913_v42 = vor.u32 %v2156_v34, %v1912_v33  ;;  %v2159_v43 = vld [vmem:[%s3184_s0 + $0x3bc] sm:$0xf]  ;;  %v1303_v33 = vld [vmem:[%s3186_s2 + $0x8] sm:$0xff] }
  0x72   :  { %1247 = vmatpush.bf16.msra.mxu2 %v1209_v39  ;;  %v2175_v39 = vld [vmem:[%s3184_s0 + $0x43c] sm:$0xf]  ;;  %1311 = vperm.xlu0 %2188, %v1303_v33  }
  0x73   :  { %947 = vmatmul.bf16.vlgmr.msrb.gmra.mxu2 %v2466_v59  ;;  %v2151_v34 = vld [vmem:[%s3184_s0 + $0x37c] sm:$0xf] }
  0x74   :  { %1215 = vmatpush.bf16.msra.mxu0 %v1945_v47  ;;  %905 = vmatmul.bf16.vlgmr.msrb.gmra.mxu3 %v2466_v59  ;;  %v1904_v47 = vld [vmem:[%s3184_s0 + $0x388] sm:$0xf] }
  0x75   :  { %972 = vmatpush.bf16.msra.mxu3 %v895_v46  ;;  %959 = vmatpush.bf16.msra.mxu1 %v1790_v53  ;;  %v2001_v46 = vor.u32 %v2178_v37, %v2000_v36  ;;  %v1933_v53 = vor.u32 %v2159_v43, %v1930_v44  ;;  %v1905_v57 = vor.u32 %v2154_v48, %v1904_v47 }
  0x76   :  { %1248 = vmatpush.bf16.msra.mxu2 %v2033_v49  ;;  %v1997_v49 = vor.u32 %v2175_v39, %v1994_v40  ;;  %v1969_v36 = vor.u32 %v2170_v28, %v1968_v24  ;;  %v1960_v39 = vld [vmem:[%s3184_s0 + $0x3f8] sm:$0xf]  ;;  %v2168_v40 = vld [vmem:[%s3184_s0 + $0x3fc] sm:$0xf0] }
  0x78   :  { %1216 = vmatpush.bf16.msra.mxu0 %v1937_v63  ;;  %v1989_v63 = vor.u32 %v2173_v54, %v1986_v55 }
  0x79   :  { %973 = vmatpush.bf16.msra.mxu3 %v1854_v62  ;;  %960 = vmatpush.bf16.msra.mxu1 %v1782_v7  ;;  %v2152_v62 = vld [vmem:[%s3184_s0 + $0x37c] sm:$0xf0]  ;;  %v2155_v7 = vld [vmem:[%s3184_s0 + $0x39c] sm:$0xf] }
  0x7a   :  { %1249 = vmatpush.bf16.msra.mxu2 %v2025_v3  ;;  %v1925_v3 = vor.u32 %v2157_v58, %v1922_v1  ;;  %v1897_v6 = vor.u32 %v2152_v62, %v1896_v61 }
  0x7c   :  { %1217 = vmatpush.bf16.msra.mxu0 %v1929_v16  ;;  %961 = vmatmul.bf16.vlgmr.msra.gmra.mxu1 %v2458_v56  ;;  %v2034_v16 = vld [vmem:[%s3184_s0 + $0x490] sm:$0xf0] }
  0x7d   :  { %1256 = vmatpush.bf16.msrb.mxu1 %v1957_v11  ;;  %974 = vmatpush.bf16.msra.mxu3 %v1846_v15  ;;  %v2172_v11 = vld [vmem:[%s3184_s0 + $0x41c] sm:$0xf0]  ;;  %v2185_v15 = vld [vmem:[%s3184_s0 + $0x48c] sm:$0xf] }
  0x7e   :  { %1270 = vmatpush.bf16.msrb.mxu2 %v2021_v8  ;;  %v1914_v8 = vld [vmem:[%s3184_s0 + $0x3a0] sm:$0xf0]  ;;  %v2037_v25 = vor.u32 %v2185_v15, %v2034_v16 }
  0x7f   :  { %v1917_v17 = vor.u32 %v2155_v7, %v1914_v8 }
  0x80   :  { %1218 = vmatpush.bf16.msra.mxu0 %v1921_v30  ;;  %v2026_v30 = vld [vmem:[%s3184_s0 + $0x480] sm:$0xf0] }
  0x81   :  { %1228 = vmatpush.bf16.msrb.mxu3 %v2017_v19  ;;  %1257 = vmatpush.bf16.msrb.mxu1 %v1949_v27  ;;  %v1970_v19 = vld [vmem:[%s3184_s0 + $0x410] sm:$0xf0]  ;;  %v2029_v37 = vor.u32 %v2183_v29, %v2026_v30 }
  0x82   :  { %1271 = vmatpush.bf16.msrb.mxu2 %v2013_v23  ;;  %v1977_v23 = vor.u32 %v2172_v11, %v1976_v10  ;;  %v1973_v27 = vor.u32 %v2169_v18, %v1970_v19 }
  0x83   :  { %2038 = vmatmul.msk.bf16.vlgmr.msra.gmra.mxu2 %vm256_vm1, %v2371_v13 }
  0x84   :  { %1219 = vmatpush.bf16.msra.mxu0 %v1913_v42  ;;  %1856 = vmatmul.msk.bf16.vlgmr.msra.gmra.mxu3 %vm256_vm1, %v2371_v13  ;;  %v1961_v42 = vor.u32 %v2168_v40, %v1960_v39 }
  0x85   :  { %1229 = vmatpush.bf16.msrb.mxu3 %v2009_v32  ;;  %1258 = vmatpush.bf16.msrb.mxu1 %v1941_v38  ;;  %v1962_v32 = vld [vmem:[%s3184_s0 + $0x400] sm:$0xf0] }
  0x86   :  { %1272 = vmatpush.bf16.msrb.mxu2 %v2005_v35  ;;  %v1898_v35 = vld [vmem:[%s3184_s0 + $0x380] sm:$0xf0]  ;;  %v1965_v38 = vor.u32 %v2167_v31, %v1962_v32 }
  0x87   :  { %v1901_v41 = vor.u32 %v2151_v34, %v1898_v35 }
  0x88   :  { %1220 = vmatpush.bf16.msra.mxu0 %v1905_v57 }
  0x89   :  { %1230 = vmatpush.bf16.msrb.mxu3 %v2001_v46  ;;  %1259 = vmatpush.bf16.msrb.mxu1 %v1933_v53 }
  0x8a   :  { %1273 = vmatpush.bf16.msrb.mxu2 %v1997_v49 }
  0x8c   :  { %1221 = vmatpush.bf16.msra.mxu0 %v1897_v6 }
  0x8d   :  { %1231 = vmatpush.bf16.msrb.mxu3 %v1993_v60  ;;  %1260 = vmatpush.bf16.msrb.mxu1 %v1925_v3 }
  0x8e   :  { %1274 = vmatpush.bf16.msrb.mxu2 %v1989_v63 }
  0x8f   :  { %1222 = vmatmul.bf16.vlgmr.msra.gmra.mxu0 %v2466_v59 }
  0x90   :  { %1289 = vmatpush.bf16.msrb.mxu0 %v1212_v14 }
  0x91   :  { %1232 = vmatpush.bf16.msrb.mxu3 %v1985_v9  ;;  %1261 = vmatpush.bf16.msrb.mxu1 %v1917_v17 }
  0x92   :  { %1275 = vmatpush.bf16.msrb.mxu2 %v1981_v12 }
  0x94   :  { %1290 = vmatpush.bf16.msrb.mxu0 %v2037_v25 }
  0x95   :  { %1233 = vmatpush.bf16.msrb.mxu3 %v1977_v23  ;;  %1262 = vmatpush.bf16.msrb.mxu1 %v1909_v26 }
  0x96   :  { %1276 = vmatpush.bf16.msrb.mxu2 %v1973_v27 }
  0x97   :  { %v304_v43 = vpop.f32.mrf.mxu3 }
  0x98   :  { %1291 = vmatpush.bf16.msrb.mxu0 %v2029_v37 }
  0x99   :  { %1234 = vmatpush.bf16.msrb.mxu3 %v1969_v36  ;;  %1263 = vmatpush.bf16.msrb.mxu1 %v1901_v41 }
  0x9a   :  { %1277 = vmatpush.bf16.msrb.mxu2 %v1965_v38 }
  0x9c   :  { %1264 = vmatmul.bf16.vlgmr.msrb.gmra.mxu1 %v2466_v59 }
  0x9d   :  { %1235 = vmatpush.bf16.msrb.mxu3 %v1961_v42  ;;  %1278 = vmatmul.bf16.vlgmr.msrb.gmra.mxu2 %v2458_v56 }
  0x9f   :  { %2039 = vmatmul.msk.bf16.vlgmr.msrb.gmra.mxu0 %vm256_vm1, %v2371_v13  ;;  %v306_v51 = vpop.f32.mrf.mxu3 }
  0xa0   :  { %1236 = vmatmul.bf16.vlgmr.msrb.gmra.mxu3 %v2458_v56  ;;  %v276_v44 = vpop.f32.mrf.mxu0 }
  0xa1   :  { %v290_v45 = vpop.f32.mrf.mxu1 }
  0xa2   :  { %v291_v46 = vadd.f32 %v290_v45, %v276_v44 }
  0xa4   :  { %v3172_v47 = vadd.f32 %v304_v43, %v291_v46 }
  0xa8   :  { %v278_v48 = vpop.f32.mrf.mxu0 }
  0xa9   :  { %v292_v49 = vpop.f32.mrf.mxu1 }
  0xaa   :  { %v293_v50 = vadd.f32 %v292_v49, %v278_v48  ;;  %v332_v53 = vpop.f32.mrf.mxu2 }
  0xac   :  { %v3174_v52 = vadd.f32 %v306_v51, %v293_v50 }
  0xb0   :  { %v346_v58 = vpop.f32.mrf.mxu0 }
  0xb2   :  { %v334_v54 = vpop.f32.mrf.mxu2 }
  0xb7   :  { %v318_v56 = vpop.f32.mrf.mxu3 }
  0xb8   :  { %v348_v61 = vpop.f32.mrf.mxu0  ;;  %v333_v23 = vadd.f32 %v332_v53, %v318_v56 }
  0xba   :  { %v617_v55 = vpop.f32.mrf.mxu2  ;;  %v347_v26 = vadd.f32 %v346_v58, %v333_v23 }
  0xbf   :  { %v320_v1 = vpop.f32.mrf.mxu3 }
  0xc0   :  { %v335_v39 = vadd.f32 %v334_v54, %v320_v1 }
  0xc1   :  { %v589_v59 = vpop.f32.mrf.mxu1 }
  0xc2   :  { %v619_v13 = vpop.f32.mrf.mxu2 }
  0xc4   :  { %v1307_v49 = vpop.permute.xlu0 %1306 }
  0xc9   :  { %v591_v57 = vpop.f32.mrf.mxu1 }
  0xcc   :  { %v631_v22 = vpop.f32.mrf.mxu0 }
  0xd3   :  { %v659_v60 = vpop.f32.mrf.mxu1 }
  0xd4   :  { %v633_v4 = vpop.f32.mrf.mxu0 }
  0xd6   :  { %v645_v62 = vpop.f32.mrf.mxu2 }
  0xd7   :  { %v603_v63 = vpop.f32.mrf.mxu3  ;;  %v646_v21 = vadd.f32 %v645_v62, %v631_v22 }
  0xd8   :  { %v604_v25 = vadd.f32 %v603_v63, %v589_v59 }
  0xd9   :  { %v660_v27 = vadd.f32 %v659_v60, %v646_v21 }
  0xda   :  { %v618_v32 = vadd.f32 %v617_v55, %v604_v25  ;;  %v349_v55 = vadd.f32 %v348_v61, %v335_v39 }
  0xdb   :  { %v661_v0 = vpop.f32.mrf.mxu1  ;;  %v665_v35 = vmax.f32 %v347_v26, %v660_v27 }
  0xdc   :  { %v664_v43 = vmax.f32 %v3172_v47, %v618_v32 }
  0xde   :  { %v647_v2 = vpop.f32.mrf.mxu2 }
  0xdf   :  { %v605_v3 = vpop.f32.mrf.mxu3  ;;  %v648_v36 = vadd.f32 %v647_v2, %v633_v4 }
  0xe0   :  { %v606_v44 = vadd.f32 %v605_v3, %v591_v57 }
  0xe1   :  { %v662_v46 = vadd.f32 %v661_v0, %v648_v36 }
  0xe2   :  { %v620_v60 = vadd.f32 %v619_v13, %v606_v44 }
  0xe3   :  { %v934_v5 = vpop.f32.mrf.mxu1  ;;  %v667_v22 = vmax.f32 %v349_v55, %v662_v46 }
  0xeb   :  { %v936_v9 = vpop.f32.mrf.mxu1 }
  0xec   :  { %v920_v8 = vpop.f32.mrf.mxu0 }
  0xf4   :  { %v922_v12 = vpop.f32.mrf.mxu0 }
  0xf6   :  { %v948_v6 = vpop.f32.mrf.mxu2 }
  0xf7   :  { %v906_v7 = vpop.f32.mrf.mxu3 }
  0xf8   :  { %v921_v30 = vadd.f32 %v920_v8, %v906_v7 }
  0xf9   :  { %v962_v14 = vpop.f32.mrf.mxu1 }
  0xfa   :  { %v963_v28 = vadd.f32 %v962_v14, %v948_v6  ;;  %v935_v38 = vadd.f32 %v934_v5, %v921_v30  ;;  %v666_v5 = vmax.f32 %v3174_v52, %v620_v60 }
  0xfc   :  { %v981_v51 = vmax.f32 %v664_v43, %v935_v38 }
  0xfe   :  { %v950_v10 = vpop.f32.mrf.mxu2 }
  0xff   :  { %v908_v11 = vpop.f32.mrf.mxu3 }
 0x100   :  { %v923_v53 = vadd.f32 %v922_v12, %v908_v11  ;;  %v1312_v12 = vpop.permute.xlu0 %1311 }
 0x101   :  { %v964_v18 = vpop.f32.mrf.mxu1 }
 0x102   :  { %v965_v48 = vadd.f32 %v964_v18, %v950_v10  ;;  %v937_v47 = vadd.f32 %v936_v9, %v923_v53 }
 0x104   :  { %v983_v8 = vmax.f32 %v666_v5, %v937_v47 }
 0x106   :  { %v1251_v15 = vpop.f32.mrf.mxu2 }
 0x107   :  { %v976_v17 = vpop.f32.mrf.mxu3 }
 0x108   :  { %v977_v31 = vadd.f32 %v976_v17, %v963_v28 }
 0x10a   :  { %v982_v40 = vmax.f32 %v665_v35, %v977_v31 }
 0x10c   :  { %v1223_v16 = vpop.f32.mrf.mxu0 }
 0x10e   :  { %v1253_v19 = vpop.f32.mrf.mxu2 }
 0x10f   :  { %v978_v24 = vpop.f32.mrf.mxu3 }
 0x110   :  { %v979_v56 = vadd.f32 %v978_v24, %v965_v48 }
 0x112   :  { %v984_v0 = vmax.f32 %v667_v22, %v979_v56 }
 0x114   :  { %v1225_v20 = vpop.f32.mrf.mxu0 }
 0x119   :  { %v1265_v29 = vpop.f32.mrf.mxu1 }
 0x11c   :  { %v1293_v34 = vpop.f32.mrf.mxu0 }
 0x120   :  { %v1279_v33 = vpop.f32.mrf.mxu2 }
 0x121   :  { %v1280_v37 = vadd.f32 %v1279_v33, %v1265_v29  ;;  %v1267_v58 = vpop.f32.mrf.mxu1 }
 0x123   :  { %v1294_v41 = vadd.f32 %v1293_v34, %v1280_v37  ;;  %v1237_v42 = vpop.f32.mrf.mxu3 }
 0x124   :  { %v1238_v45 = vadd.f32 %v1237_v42, %v1223_v16  ;;  %v1295_v63 = vpop.f32.mrf.mxu0 }
 0x125   :  { %v1299_v50 = vmax.f32 %v982_v40, %v1294_v41 }
 0x126   :  { %v1252_v59 = vadd.f32 %v1251_v15, %v1238_v45 }
 0x127   :  { %v1315_v62 = vadd.f32 %v1307_v49, %v1299_v50 }
 0x128   :  { %v1298_v54 = vmax.f32 %v981_v51, %v1252_v59  ;;  %v1281_v1 = vpop.f32.mrf.mxu2 }
 0x129   :  { %v1282_v2 = vadd.f32 %v1281_v1, %v1267_v58  ;;  %v1319_v6 = vmax.f32 %v1315_v62, 0.0 }
 0x12a   :  { %v1314_v57 = vadd.f32 %v1307_v49, %v1298_v54 }
 0x12b   :  { %v1296_v3 = vadd.f32 %v1295_v63, %v1282_v2  ;;  %v1239_v4 = vpop.f32.mrf.mxu3 }
 0x12c   :  { %v1318_v61 = vmax.f32 %v1314_v57, 0.0  ;;  %v1240_v7 = vadd.f32 %v1239_v4, %v1225_v20 }
 0x12d   :  { %v1301_v13 = vmax.f32 %v984_v0, %v1296_v3 }
 0x12e   :  { %v1322_v10 = vpack.c.bf16 %v1319_v6, %v1318_v61  ;;  %v1254_v11 = vadd.f32 %v1253_v19, %v1240_v7 }
 0x12f   :  { %v1317_v9 = vadd.f32 %v1312_v12, %v1301_v13 }
 0x130   :  { %1327 = vst.msk [vmem:[%s3187_s3] sm:$0xff] %vm1326_vm4, %v1322_v10  ;;  %v1300_v14 = vmax.f32 %v983_v8, %v1254_v11 }
 0x131   :  { %v1321_v16 = vmax.f32 %v1317_v9, 0.0 }
 0x132   :  { %v1316_v15 = vadd.f32 %v1312_v12, %v1300_v14 }
 0x134   :  { %v1320_v17 = vmax.f32 %v1316_v15, 0.0 }
 0x136   :  { %v1323_v18 = vpack.c.bf16 %v1321_v16, %v1320_v17 }
 0x138   :  { %1328 = vst.msk [vmem:[%s3187_s3 + $0x8] sm:$0xff] %vm1326_vm4, %v1323_v18 }

// kernel: net_forward.5
= control target key start
LH: loop header
LB: loop body
LE: loop exit
PB: predicated region body
PF: predicated region fallthrough
CT: control target
= control target key end

     0   :  { %vm2009_vm0 = vcmask 130048   ;;  %s7092_s0 = inlined_call_operand.vmem [shape: bf16[2,1296], index: 0, kind: input, shape index: {}]   ;;  %s7093_s1 = inlined_call_operand.vmem [shape: bf16[1296,500], index: 1, kind: input, shape index: {}]   ;;  %s7094_s2 = inlined_call_operand.vmem [shape: f32[1,500], index: 2, kind: input, shape index: {}]   ;;  %s7095_s3 = inlined_call_operand.vmem [shape: bf16[500,100], index: 3, kind: input, shape index: {}]   ;;  %s7096_s4 = inlined_call_operand.vmem [shape: f32[1,100], index: 4, kind: input, shape index: {}]   ;;  %s7097_s5 = inlined_call_operand.vmem [shape: bf16[100,4], index: 5, kind: input, shape index: {}]   ;;  %s7098_s6 = inlined_call_operand.vmem [shape: f32[1,4], index: 6, kind: input, shape index: {}]   ;;  %s7099_s7 = inlined_call_operand.hbm [shape: f32[2,4], index: 7, kind: output, shape index: {}]  }
   0x1   :  { %v3118_v0 = vld [vmem:[%s7093_s1 + $0xe0] sm:$0xf]  ;;  %v4484_v1 = vld [vmem:[%s7093_s1 + $0xec] sm:$0xf0] }
   0x2   :  { %v3246_v2 = vld [vmem:[%s7093_s1 + $0x1e0] sm:$0xf]  ;;  %v3119_v3 = vor.u32 %v4484_v1, %v3118_v0  ;;  %v4516_v4 = vld [vmem:[%s7093_s1 + $0x1ec] sm:$0xf0] }
   0x3   :  { %v3374_v5 = vld [vmem:[%s7093_s1 + $0x2e0] sm:$0xf]  ;;  %v4548_v6 = vld [vmem:[%s7093_s1 + $0x2ec] sm:$0xf0]  ;;  %v3247_v7 = vor.u32 %v4516_v4, %v3246_v2 }
   0x4   :  { %v3375_v8 = vor.u32 %v4548_v6, %v3374_v5  ;;  %v3502_v9 = vld [vmem:[%s7093_s1 + $0x3e0] sm:$0xf]  ;;  %v4580_v10 = vld [vmem:[%s7093_s1 + $0x3ec] sm:$0xf0]  ;;  %2012 = vmatpush.bf16.msra.mxu0 %v3119_v3 }
   0x5   :  { %v3102_v11 = vld [vmem:[%s7093_s1 + $0xc0] sm:$0xf]  ;;  %v3503_v12 = vor.u32 %v4580_v10, %v3502_v9  ;;  %v4480_v13 = vld [vmem:[%s7093_s1 + $0xcc] sm:$0xf0]  ;;  %2025 = vmatpush.bf16.msra.mxu1 %v3247_v7 }
   0x6   :  { %v3230_v14 = vld [vmem:[%s7093_s1 + $0x1c0] sm:$0xf]  ;;  %v4512_v15 = vld [vmem:[%s7093_s1 + $0x1cc] sm:$0xf0]  ;;  %2038 = vmatpush.bf16.msra.mxu2 %v3375_v8  ;;  %v3103_v16 = vor.u32 %v4480_v13, %v3102_v11 }
   0x7   :  { %v3231_v17 = vor.u32 %v4512_v15, %v3230_v14  ;;  %v3358_v18 = vld [vmem:[%s7093_s1 + $0x2c0] sm:$0xf]  ;;  %v4544_v19 = vld [vmem:[%s7093_s1 + $0x2cc] sm:$0xf0]  ;;  %2051 = vmatpush.bf16.msra.mxu3 %v3503_v12 }
   0x8   :  { %v3486_v20 = vld [vmem:[%s7093_s1 + $0x3c0] sm:$0xf]  ;;  %v3359_v21 = vor.u32 %v4544_v19, %v3358_v18  ;;  %v4576_v22 = vld [vmem:[%s7093_s1 + $0x3cc] sm:$0xf0]  ;;  %2013 = vmatpush.bf16.msra.mxu0 %v3103_v16 }
   0x9   :  { %v3086_v23 = vld [vmem:[%s7093_s1 + $0xa0] sm:$0xf]  ;;  %v4476_v24 = vld [vmem:[%s7093_s1 + $0xac] sm:$0xf0]  ;;  %v3487_v25 = vor.u32 %v4576_v22, %v3486_v20  ;;  %2026 = vmatpush.bf16.msra.mxu1 %v3231_v17 }
   0xa   :  { %v3214_v26 = vld [vmem:[%s7093_s1 + $0x1a0] sm:$0xf]  ;;  %v4508_v27 = vld [vmem:[%s7093_s1 + $0x1ac] sm:$0xf0]  ;;  %v3087_v29 = vor.u32 %v4476_v24, %v3086_v23  ;;  %2039 = vmatpush.bf16.msra.mxu2 %v3359_v21 }
   0xb   :  { %v3342_v28 = vld [vmem:[%s7093_s1 + $0x2a0] sm:$0xf]  ;;  %v4540_v30 = vld [vmem:[%s7093_s1 + $0x2ac] sm:$0xf0]  ;;  %v3215_v33 = vor.u32 %v4508_v27, %v3214_v26  ;;  %2052 = vmatpush.bf16.msra.mxu3 %v3487_v25 }
   0xc   :  { %v3470_v31 = vld [vmem:[%s7093_s1 + $0x3a0] sm:$0xf]  ;;  %v4572_v32 = vld [vmem:[%s7093_s1 + $0x3ac] sm:$0xf0]  ;;  %v3343_v34 = vor.u32 %v4540_v30, %v3342_v28  ;;  %2014 = vmatpush.bf16.msra.mxu0 %v3087_v29 }
   0xd   :  { %v3070_v35 = vld [vmem:[%s7093_s1 + $0x80] sm:$0xf]  ;;  %v4472_v36 = vld [vmem:[%s7093_s1 + $0x8c] sm:$0xf0]  ;;  %v3471_v38 = vor.u32 %v4572_v32, %v3470_v31  ;;  %2027 = vmatpush.bf16.msra.mxu1 %v3215_v33 }
   0xe   :  { %v3198_v37 = vld [vmem:[%s7093_s1 + $0x180] sm:$0xf]  ;;  %v4504_v39 = vld [vmem:[%s7093_s1 + $0x18c] sm:$0xf0]  ;;  %v3071_v44 = vor.u32 %v4472_v36, %v3070_v35  ;;  %2040 = vmatpush.bf16.msra.mxu2 %v3343_v34 }
   0xf   :  { %v3326_v40 = vld [vmem:[%s7093_s1 + $0x280] sm:$0xf]  ;;  %v4536_v41 = vld [vmem:[%s7093_s1 + $0x28c] sm:$0xf0]  ;;  %v3199_v45 = vor.u32 %v4504_v39, %v3198_v37  ;;  %2053 = vmatpush.bf16.msra.mxu3 %v3471_v38 }
  0x10   :  { %v3454_v42 = vld [vmem:[%s7093_s1 + $0x380] sm:$0xf]  ;;  %v4568_v43 = vld [vmem:[%s7093_s1 + $0x38c] sm:$0xf0]  ;;  %v3327_v46 = vor.u32 %v4536_v41, %v3326_v40  ;;  %2015 = vmatpush.bf16.msra.mxu0 %v3071_v44 }
  0x11   :  { %v3054_v47 = vld [vmem:[%s7093_s1 + $0x60] sm:$0xf]  ;;  %v4468_v48 = vld [vmem:[%s7093_s1 + $0x6c] sm:$0xf0]  ;;  %v3455_v50 = vor.u32 %v4568_v43, %v3454_v42  ;;  %2028 = vmatpush.bf16.msra.mxu1 %v3199_v45 }
  0x12   :  { %v3182_v49 = vld [vmem:[%s7093_s1 + $0x160] sm:$0xf]  ;;  %v4500_v51 = vld [vmem:[%s7093_s1 + $0x16c] sm:$0xf0]  ;;  %v3055_v56 = vor.u32 %v4468_v48, %v3054_v47  ;;  %2041 = vmatpush.bf16.msra.mxu2 %v3327_v46 }
  0x13   :  { %v3310_v52 = vld [vmem:[%s7093_s1 + $0x260] sm:$0xf]  ;;  %v4532_v53 = vld [vmem:[%s7093_s1 + $0x26c] sm:$0xf0]  ;;  %v3183_v57 = vor.u32 %v4500_v51, %v3182_v49  ;;  %2054 = vmatpush.bf16.msra.mxu3 %v3455_v50 }
  0x14   :  { %v3438_v54 = vld [vmem:[%s7093_s1 + $0x360] sm:$0xf]  ;;  %v4564_v55 = vld [vmem:[%s7093_s1 + $0x36c] sm:$0xf0]  ;;  %v3311_v58 = vor.u32 %v4532_v53, %v3310_v52  ;;  %2016 = vmatpush.bf16.msra.mxu0 %v3055_v56 }
  0x15   :  { %v3038_v59 = vld [vmem:[%s7093_s1 + $0x40] sm:$0xf]  ;;  %v4464_v60 = vld [vmem:[%s7093_s1 + $0x4c] sm:$0xf0]  ;;  %v3439_v62 = vor.u32 %v4564_v55, %v3438_v54  ;;  %2029 = vmatpush.bf16.msra.mxu1 %v3183_v57 }
  0x16   :  { %v3166_v61 = vld [vmem:[%s7093_s1 + $0x140] sm:$0xf]  ;;  %v4496_v63 = vld [vmem:[%s7093_s1 + $0x14c] sm:$0xf0]  ;;  %v3039_v4 = vor.u32 %v4464_v60, %v3038_v59  ;;  %2042 = vmatpush.bf16.msra.mxu2 %v3311_v58 }
  0x17   :  { %v3294_v0 = vld [vmem:[%s7093_s1 + $0x240] sm:$0xf]  ;;  %v4528_v1 = vld [vmem:[%s7093_s1 + $0x24c] sm:$0xf0]  ;;  %v3167_v5 = vor.u32 %v4496_v63, %v3166_v61  ;;  %2055 = vmatpush.bf16.msra.mxu3 %v3439_v62 }
  0x18   :  { %v3422_v2 = vld [vmem:[%s7093_s1 + $0x340] sm:$0xf]  ;;  %v4560_v3 = vld [vmem:[%s7093_s1 + $0x34c] sm:$0xf0]  ;;  %v3295_v6 = vor.u32 %v4528_v1, %v3294_v0  ;;  %2017 = vmatpush.bf16.msra.mxu0 %v3039_v4 }
  0x19   :  { %v3022_v7 = vld [vmem:[%s7093_s1 + $0x20] sm:$0xf]  ;;  %v4460_v8 = vld [vmem:[%s7093_s1 + $0x2c] sm:$0xf0]  ;;  %v3423_v10 = vor.u32 %v4560_v3, %v3422_v2  ;;  %2030 = vmatpush.bf16.msra.mxu1 %v3167_v5 }
  0x1a   :  { %v3150_v9 = vld [vmem:[%s7093_s1 + $0x120] sm:$0xf]  ;;  %v4492_v11 = vld [vmem:[%s7093_s1 + $0x12c] sm:$0xf0]  ;;  %v3023_v16 = vor.u32 %v4460_v8, %v3022_v7  ;;  %2043 = vmatpush.bf16.msra.mxu2 %v3295_v6 }
  0x1b   :  { %v3278_v12 = vld [vmem:[%s7093_s1 + $0x220] sm:$0xf]  ;;  %v4524_v13 = vld [vmem:[%s7093_s1 + $0x22c] sm:$0xf0]  ;;  %v3151_v19 = vor.u32 %v4492_v11, %v3150_v9  ;;  %2056 = vmatpush.bf16.msra.mxu3 %v3423_v10 }
  0x1c   :  { %v3406_v14 = vld [vmem:[%s7093_s1 + $0x320] sm:$0xf]  ;;  %v4556_v15 = vld [vmem:[%s7093_s1 + $0x32c] sm:$0xf0]  ;;  %v3279_v20 = vor.u32 %v4524_v13, %v3278_v12  ;;  %2018 = vmatpush.bf16.msra.mxu0 %v3023_v16 }
  0x1d   :  { %v3006_v17 = vld [vmem:[%s7093_s1] sm:$0xf]  ;;  %v4456_v18 = vld [vmem:[%s7093_s1 + $0xc] sm:$0xf0]  ;;  %v3407_v24 = vor.u32 %v4556_v15, %v3406_v14  ;;  %2031 = vmatpush.bf16.msra.mxu1 %v3151_v19 }
  0x1e   :  { %v3134_v21 = vld [vmem:[%s7093_s1 + $0x100] sm:$0xf]  ;;  %v4488_v22 = vld [vmem:[%s7093_s1 + $0x10c] sm:$0xf0]  ;;  %v3007_v31 = vor.u32 %v4456_v18, %v3006_v17  ;;  %2044 = vmatpush.bf16.msra.mxu2 %v3279_v20 }
  0x1f   :  { %v3262_v23 = vld [vmem:[%s7093_s1 + $0x200] sm:$0xf]  ;;  %v4520_v25 = vld [vmem:[%s7093_s1 + $0x20c] sm:$0xf0]  ;;  %v3135_v35 = vor.u32 %v4488_v22, %v3134_v21  ;;  %2057 = vmatpush.bf16.msra.mxu3 %v3407_v24 }
  0x20   :  { %v3390_v26 = vld [vmem:[%s7093_s1 + $0x300] sm:$0xf]  ;;  %v4552_v27 = vld [vmem:[%s7093_s1 + $0x30c] sm:$0xf0]  ;;  %v3263_v36 = vor.u32 %v4520_v25, %v3262_v23  ;;  %2019 = vmatpush.bf16.msra.mxu0 %v3007_v31 }
  0x21   :  { %v3630_v28 = vld [vmem:[%s7093_s1 + $0x4e0] sm:$0xf]  ;;  %v4612_v29 = vld [vmem:[%s7093_s1 + $0x4ec] sm:$0xf0]  ;;  %v3391_v39 = vor.u32 %v4552_v27, %v3390_v26  ;;  %2032 = vmatpush.bf16.msra.mxu1 %v3135_v35 }
  0x22   :  { %v3758_v30 = vld [vmem:[%s7093_s1 + $0x5e0] sm:$0xf]  ;;  %v4644_v32 = vld [vmem:[%s7093_s1 + $0x5ec] sm:$0xf0]  ;;  %v3631_v40 = vor.u32 %v4612_v29, %v3630_v28  ;;  %2045 = vmatpush.bf16.msra.mxu2 %v3263_v36 }
  0x23   :  { %v3886_v33 = vld [vmem:[%s7093_s1 + $0x6e0] sm:$0xf]  ;;  %v4676_v34 = vld [vmem:[%s7093_s1 + $0x6ec] sm:$0xf0]  ;;  %v3759_v43 = vor.u32 %v4644_v32, %v3758_v30  ;;  %2058 = vmatpush.bf16.msra.mxu3 %v3391_v39 }
  0x24   :  { %v4014_v37 = vld [vmem:[%s7093_s1 + $0x7e0] sm:$0xf]  ;;  %v4708_v38 = vld [vmem:[%s7093_s1 + $0x7ec] sm:$0xf0]  ;;  %v3887_v44 = vor.u32 %v4676_v34, %v3886_v33  ;;  %2064 = vmatpush.bf16.msrb.mxu0 %v3631_v40 }
  0x25   :  { %v3614_v41 = vld [vmem:[%s7093_s1 + $0x4c0] sm:$0xf]  ;;  %v4608_v45 = vld [vmem:[%s7093_s1 + $0x4cc] sm:$0xf0]  ;;  %v4015_v47 = vor.u32 %v4708_v38, %v4014_v37  ;;  %2077 = vmatpush.bf16.msrb.mxu1 %v3759_v43 }
  0x26   :  { %v28_v42 = vld [vmem:[%s7092_s0] sm:$0xff]  ;;  %v4640_v48 = vld [vmem:[%s7093_s1 + $0x5cc] sm:$0xf0]  ;;  %v3615_v53 = vor.u32 %v4608_v45, %v3614_v41  ;;  %2090 = vmatpush.bf16.msrb.mxu2 %v3887_v44 }
  0x27   :  { %v3742_v46 = vld [vmem:[%s7093_s1 + $0x5c0] sm:$0xf]  ;;  %365 = vst [vmem:[#allocation1] ss:$9 sm:$0xff] %v28_v42  ;;  %v4672_v50 = vld [vmem:[%s7093_s1 + $0x6cc] sm:$0xf0]  ;;  %2103 = vmatpush.bf16.msrb.mxu3 %v4015_v47 }
  0x28   :  { %v3870_v49 = vld [vmem:[%s7093_s1 + $0x6c0] sm:$0xf]  ;;  %v4704_v52 = vld [vmem:[%s7093_s1 + $0x7cc] sm:$0xf0]  ;;  %v3743_v54 = vor.u32 %v4640_v48, %v3742_v46  ;;  %2065 = vmatpush.bf16.msrb.mxu0 %v3615_v53  ;;  %v29_v46 = vld [vmem:[%s7092_s0 + $0x8] sm:$0x7] }
  0x29   :  { %v3998_v51 = vld [vmem:[%s7093_s1 + $0x7c0] sm:$0xf]  ;;  %v3871_v55 = vor.u32 %v4672_v50, %v3870_v49  ;;  %v4604_v57 = vld [vmem:[%s7093_s1 + $0x4ac] sm:$0xf0] }
  0x2a   :  { %v3598_v56 = vld [vmem:[%s7093_s1 + $0x4a0] sm:$0xf]  ;;  %v3999_v59 = vor.u32 %v4704_v52, %v3998_v51  ;;  %v4636_v60 = vld [vmem:[%s7093_s1 + $0x5ac] sm:$0xf0]  ;;  %2078 = vmatpush.bf16.msrb.mxu1 %v3743_v54 }
  0x2b   :  { %v3726_v58 = vld [vmem:[%s7093_s1 + $0x5a0] sm:$0xf]  ;;  %v4668_v62 = vld [vmem:[%s7093_s1 + $0x6ac] sm:$0xf0]  ;;  %v3599_v2 = vor.u32 %v4604_v57, %v3598_v56  ;;  %2091 = vmatpush.bf16.msrb.mxu2 %v3871_v55 }
  0x2c   :  { %v3854_v61 = vld [vmem:[%s7093_s1 + $0x6a0] sm:$0xf]  ;;  %v4700_v0 = vld [vmem:[%s7093_s1 + $0x7ac] sm:$0xf0]  ;;  %v3727_v6 = vor.u32 %v4636_v60, %v3726_v58  ;;  %2104 = vmatpush.bf16.msrb.mxu3 %v3999_v59 }
  0x2d   :  { %v3982_v63 = vld [vmem:[%s7093_s1 + $0x7a0] sm:$0xf]  ;;  %v3855_v7 = vor.u32 %v4668_v62, %v3854_v61  ;;  %v4600_v8 = vld [vmem:[%s7093_s1 + $0x48c] sm:$0xf0]  ;;  %2066 = vmatpush.bf16.msrb.mxu0 %v3599_v2 }
  0x2e   :  { %v3582_v1 = vld [vmem:[%s7093_s1 + $0x480] sm:$0xf]  ;;  %v5159_v3 = vld [vmem:[#allocation1 + $0x12] sm:$0xff]  ;;  %v5163_v5 = vld [vmem:[#allocation1 + $0x9] sm:$0xff]  ;;  %v3983_v11 = vor.u32 %v4700_v0, %v3982_v63  ;;  %2079 = vmatpush.bf16.msrb.mxu1 %v3727_v6 }
  0x2f   :  { %v5161_v4 = vld [vmem:[#allocation1] sm:$0xff]  ;;  %2046 = vmatmul.bf16.vlgmr.msra.gmra.mxu2 %v5159_v3  ;;  %v4632_v12 = vld [vmem:[%s7093_s1 + $0x58c] sm:$0xf0]  ;;  %2033 = vmatmul.bf16.vlgmr.msra.gmra.mxu1 %v5163_v5  ;;  %v3583_v17 = vor.u32 %v4600_v8, %v3582_v1  ;;  %v5245_v43 = vld [vmem:[#allocation1 + $0x36] sm:$0xff] }
  0x30   :  { %v3710_v9 = vld [vmem:[%s7093_s1 + $0x580] sm:$0xf]  ;;  %v4664_v14 = vld [vmem:[%s7093_s1 + $0x68c] sm:$0xf0]  ;;  %2020 = vmatmul.bf16.vlgmr.msra.gmra.mxu0 %v5161_v4  ;;  %2092 = vmatpush.bf16.msrb.mxu2 %v3855_v7  ;;  %v5243_v42 = vld [vmem:[#allocation1 + $0x24] sm:$0xff] }
  0x31   :  { %v5171_v10 = vld [vmem:[#allocation1 + $0x1b] sm:$0xff]  ;;  %v4696_v16 = vld [vmem:[%s7093_s1 + $0x78c] sm:$0xf0]  ;;  %v3711_v18 = vor.u32 %v4632_v12, %v3710_v9  ;;  %2105 = vmatpush.bf16.msrb.mxu3 %v3983_v11  ;;  %2067 = vmatpush.bf16.msrb.mxu0 %v3583_v17 }
  0x32   :  { %v3838_v13 = vld [vmem:[%s7093_s1 + $0x680] sm:$0xf]  ;;  %2059 = vmatmul.bf16.vlgmr.msra.gmra.mxu3 %v5171_v10  ;;  %v4596_v21 = vld [vmem:[%s7093_s1 + $0x46c] sm:$0xf0] }
  0x33   :  { %v3966_v15 = vld [vmem:[%s7093_s1 + $0x780] sm:$0xf]  ;;  %v3839_v19 = vor.u32 %v4664_v14, %v3838_v13  ;;  %v4628_v24 = vld [vmem:[%s7093_s1 + $0x56c] sm:$0xf0]  ;;  %2080 = vmatpush.bf16.msrb.mxu1 %v3711_v18 }
  0x34   :  { %v3566_v20 = vld [vmem:[%s7093_s1 + $0x460] sm:$0xf]  ;;  %v3967_v23 = vor.u32 %v4696_v16, %v3966_v15  ;;  %v4660_v26 = vld [vmem:[%s7093_s1 + $0x66c] sm:$0xf0]  ;;  %v4482_v15 = vld [vmem:[%s7093_s1 + $0xe4] sm:$0xf] }
  0x35   :  { %v3694_v22 = vld [vmem:[%s7093_s1 + $0x560] sm:$0xf]  ;;  %v4692_v28 = vld [vmem:[%s7093_s1 + $0x76c] sm:$0xf0]  ;;  %v3567_v29 = vor.u32 %v4596_v21, %v3566_v20  ;;  %2093 = vmatpush.bf16.msrb.mxu2 %v3839_v19  ;;  %v3120_v16 = vld [vmem:[%s7093_s1 + $0xf0] sm:$0xf0] }
  0x36   :  { %v3822_v25 = vld [vmem:[%s7093_s1 + $0x660] sm:$0xf]  ;;  %v4592_v31 = vld [vmem:[%s7093_s1 + $0x44c] sm:$0xf0]  ;;  %v3695_v32 = vor.u32 %v4628_v24, %v3694_v22  ;;  %2106 = vmatpush.bf16.msrb.mxu3 %v3967_v23  ;;  %v3123_v24 = vor.u32 %v4482_v15, %v3120_v16 }
  0x37   :  { %v3950_v27 = vld [vmem:[%s7093_s1 + $0x760] sm:$0xf]  ;;  %v3823_v33 = vor.u32 %v4660_v26, %v3822_v25  ;;  %v4624_v35 = vld [vmem:[%s7093_s1 + $0x54c] sm:$0xf0]  ;;  %2068 = vmatpush.bf16.msrb.mxu0 %v3567_v29  ;;  %v4514_v25 = vld [vmem:[%s7093_s1 + $0x1e4] sm:$0xf] }
  0x38   :  { %v3550_v30 = vld [vmem:[%s7093_s1 + $0x440] sm:$0xf]  ;;  %v3951_v37 = vor.u32 %v4692_v28, %v3950_v27  ;;  %v4656_v38 = vld [vmem:[%s7093_s1 + $0x64c] sm:$0xf0]  ;;  %2081 = vmatpush.bf16.msrb.mxu1 %v3695_v32  ;;  %v3248_v26 = vld [vmem:[%s7093_s1 + $0x1f0] sm:$0xf0] }
  0x39   :  { %v3678_v34 = vld [vmem:[%s7093_s1 + $0x540] sm:$0xf]  ;;  %v4688_v40 = vld [vmem:[%s7093_s1 + $0x74c] sm:$0xf0]  ;;  %v3551_v44 = vor.u32 %v4592_v31, %v3550_v30  ;;  %2094 = vmatpush.bf16.msrb.mxu2 %v3823_v33  ;;  %v4478_v32 = vld [vmem:[%s7093_s1 + $0xc4] sm:$0xf] }
  0x3a   :  { %v3806_v36 = vld [vmem:[%s7093_s1 + $0x640] sm:$0xf]  ;;  %v5247_v45 = vld [vmem:[#allocation1 + $0x2d] sm:$0xff]  ;;  %v3679_v48 = vor.u32 %v4624_v35, %v3678_v34  ;;  %2107 = vmatpush.bf16.msrb.mxu3 %v3951_v37  ;;  %v3251_v34 = vor.u32 %v4514_v25, %v3248_v26  ;;  %v4510_v37 = vld [vmem:[%s7093_s1 + $0x1c4] sm:$0xf] }
  0x3b   :  { %v3934_v39 = vld [vmem:[%s7093_s1 + $0x740] sm:$0xf]  ;;  %v3807_v49 = vor.u32 %v4656_v38, %v3806_v36  ;;  %v4588_v50 = vld [vmem:[%s7093_s1 + $0x42c] sm:$0xf0]  ;;  %2069 = vmatpush.bf16.msrb.mxu0 %v3551_v44  ;;  %v3104_v33 = vld [vmem:[%s7093_s1 + $0xd0] sm:$0xf0] }
  0x3c   :  { %v3534_v41 = vld [vmem:[%s7093_s1 + $0x420] sm:$0xf]  ;;  %v3935_v52 = vor.u32 %v4688_v40, %v3934_v39  ;;  %v4620_v53 = vld [vmem:[%s7093_s1 + $0x52c] sm:$0xf0]  ;;  %2082 = vmatpush.bf16.msrb.mxu1 %v3679_v48  ;;  %v3232_v38 = vld [vmem:[%s7093_s1 + $0x1d0] sm:$0xf0]  ;;  %v3107_v40 = vor.u32 %v4478_v32, %v3104_v33 }
  0x3d   :  { %v5252_v47 = vld [vmem:[#allocation1 + $0x3f] sm:$0xff]  ;;  %v4652_v55 = vld [vmem:[%s7093_s1 + $0x62c] sm:$0xf0]  ;;  %v3535_v58 = vor.u32 %v4588_v50, %v3534_v41  ;;  %2095 = vmatpush.bf16.msrb.mxu2 %v3807_v49  ;;  %v3088_v49 = vld [vmem:[%s7093_s1 + $0xb0] sm:$0xf0]  ;;  %v3235_v50 = vor.u32 %v4510_v37, %v3232_v38 }
  0x3e   :  { %v3662_v51 = vld [vmem:[%s7093_s1 + $0x520] sm:$0xf]  ;;  %375 = vst [vmem:[#allocation1] ss:$9 sm:$0xff] %v29_v46  ;;  %v4684_v57 = vld [vmem:[%s7093_s1 + $0x72c] sm:$0xf0]  ;;  %2108 = vmatpush.bf16.msrb.mxu3 %v3935_v52 }
  0x3f   :  { %v3790_v54 = vld [vmem:[%s7093_s1 + $0x620] sm:$0xf]  ;;  %v4584_v60 = vld [vmem:[%s7093_s1 + $0x40c] sm:$0xf0]  ;;  %v3663_v61 = vor.u32 %v4620_v53, %v3662_v51  ;;  %2070 = vmatpush.bf16.msrb.mxu0 %v3535_v58  ;;  %v4474_v48 = vld [vmem:[%s7093_s1 + $0xa4] sm:$0xf] }
  0x40   :  { %v3918_v56 = vld [vmem:[%s7093_s1 + $0x720] sm:$0xf]  ;;  %v3791_v62 = vor.u32 %v4652_v55, %v3790_v54  ;;  %v4616_v0 = vld [vmem:[%s7093_s1 + $0x50c] sm:$0xf0]  ;;  %v4506_v53 = vld [vmem:[%s7093_s1 + $0x1a4] sm:$0xf] }
  0x41   :  { %v3518_v59 = vld [vmem:[%s7093_s1 + $0x400] sm:$0xf]  ;;  %v3919_v2 = vor.u32 %v4684_v57, %v3918_v56  ;;  %v4648_v6 = vld [vmem:[%s7093_s1 + $0x60c] sm:$0xf0]  ;;  %2083 = vmatpush.bf16.msrb.mxu1 %v3663_v61  ;;  %v3216_v54 = vld [vmem:[%s7093_s1 + $0x1b0] sm:$0xf0]  ;;  %v3091_v56 = vor.u32 %v4474_v48, %v3088_v49 }
  0x42   :  { %v3646_v63 = vld [vmem:[%s7093_s1 + $0x500] sm:$0xf]  ;;  %v4680_v8 = vld [vmem:[%s7093_s1 + $0x70c] sm:$0xf0]  ;;  %v3519_v13 = vor.u32 %v4584_v60, %v3518_v59  ;;  %2096 = vmatpush.bf16.msrb.mxu2 %v3791_v62  ;;  %v4470_v60 = vld [vmem:[%s7093_s1 + $0x84] sm:$0xf]  ;;  %v3219_v62 = vor.u32 %v4506_v53, %v3216_v54 }
  0x43   :  { %v3774_v1 = vld [vmem:[%s7093_s1 + $0x600] sm:$0xf]  ;;  %v4740_v11 = vld [vmem:[%s7093_s1 + $0x8ec] sm:$0xf0]  ;;  %v3647_v17 = vor.u32 %v4616_v0, %v3646_v63  ;;  %2109 = vmatpush.bf16.msrb.mxu3 %v3919_v2  ;;  %v3072_v61 = vld [vmem:[%s7093_s1 + $0x90] sm:$0xf0] }
  0x44   :  { %v3902_v7 = vld [vmem:[%s7093_s1 + $0x700] sm:$0xf]  ;;  %v4772_v14 = vld [vmem:[%s7093_s1 + $0x9ec] sm:$0xf0]  ;;  %v3775_v18 = vor.u32 %v4648_v6, %v3774_v1  ;;  %2071 = vmatpush.bf16.msrb.mxu0 %v3519_v13  ;;  %v4502_v1 = vld [vmem:[%s7093_s1 + $0x184] sm:$0xf] }
  0x45   :  { %v4142_v9 = vld [vmem:[%s7093_s1 + $0x8e0] sm:$0xf]  ;;  %v3903_v19 = vor.u32 %v4680_v8, %v3902_v7  ;;  %v4776_v22 = vld [vmem:[%s7093_s1 + $0xa0c] sm:$0xf0]  ;;  %2084 = vmatpush.bf16.msrb.mxu1 %v3647_v17  ;;  %v3200_v2 = vld [vmem:[%s7093_s1 + $0x190] sm:$0xf0]  ;;  %v3075_v7 = vor.u32 %v4470_v60, %v3072_v61 }
  0x46   :  { %v4270_v12 = vld [vmem:[%s7093_s1 + $0x9e0] sm:$0xf]  ;;  %v4143_v20 = vor.u32 %v4740_v11, %v4142_v9  ;;  %v4736_v28 = vld [vmem:[%s7093_s1 + $0x8cc] sm:$0xf0]  ;;  %2097 = vmatpush.bf16.msrb.mxu2 %v3775_v18  ;;  %v3056_v13 = vld [vmem:[%s7093_s1 + $0x70] sm:$0xf0] }
  0x47   :  { %v4286_v21 = vld [vmem:[%s7093_s1 + $0xa00] sm:$0xf]  ;;  %v4271_v23 = vor.u32 %v4772_v14, %v4270_v12  ;;  %v4768_v30 = vld [vmem:[%s7093_s1 + $0x9cc] sm:$0xf0]  ;;  %2110 = vmatpush.bf16.msrb.mxu3 %v3903_v19  ;;  %2072 = vmatmul.bf16.vlgmr.msrb.gmra.mxu0 %v5243_v42  ;;  %v4466_v12 = vld [vmem:[%s7093_s1 + $0x64] sm:$0xf]  ;;  %v3203_v14 = vor.u32 %v4502_v1, %v3200_v2 }
  0x48   :  { %v4126_v27 = vld [vmem:[%s7093_s1 + $0x8c0] sm:$0xf]  ;;  %v4287_v31 = vor.u32 %v4776_v22, %v4286_v21  ;;  %2116 = vmatpush.bf16.msra.mxu0 %v4143_v20  ;;  %v4732_v41 = vld [vmem:[%s7093_s1 + $0x8ac] sm:$0xf0]  ;;  %2085 = vmatmul.bf16.vlgmr.msrb.gmra.mxu1 %v5247_v45  ;;  %v4498_v17 = vld [vmem:[%s7093_s1 + $0x164] sm:$0xf]  ;;  %v3059_v20 = vor.u32 %v4466_v12, %v3056_v13 }
  0x49   :  { %v4254_v29 = vld [vmem:[%s7093_s1 + $0x9c0] sm:$0xf]  ;;  %2129 = vmatpush.bf16.msra.mxu1 %v4271_v23  ;;  %v4127_v35 = vor.u32 %v4736_v28, %v4126_v27  ;;  %2098 = vmatmul.bf16.vlgmr.msrb.gmra.mxu2 %v5245_v43  ;;  %v4764_v46 = vld [vmem:[%s7093_s1 + $0x9ac] sm:$0xf0]  ;;  %v3184_v18 = vld [vmem:[%s7093_s1 + $0x170] sm:$0xf0] }
  0x4a   :  { %v4255_v36 = vor.u32 %v4768_v30, %v4254_v29  ;;  %v4110_v39 = vld [vmem:[%s7093_s1 + $0x8a0] sm:$0xf]  ;;  %2149 = vmatpush.bf16.msra.mxu2 %v4287_v31  ;;  %2111 = vmatmul.bf16.vlgmr.msrb.gmra.mxu3 %v5252_v47  ;;  %v4728_v57 = vld [vmem:[%s7093_s1 + $0x88c] sm:$0xf0]  ;;  %v3040_v25 = vld [vmem:[%s7093_s1 + $0x50] sm:$0xf0]  ;;  %v3187_v27 = vor.u32 %v4498_v17, %v3184_v18 }
  0x4b   :  { %2155 = vmatpush.bf16.msra.mxu3 %v3123_v24  ;;  %v4238_v44 = vld [vmem:[%s7093_s1 + $0x9a0] sm:$0xf]  ;;  %v4111_v51 = vor.u32 %v4732_v41, %v4110_v39  ;;  %v4760_v59 = vld [vmem:[%s7093_s1 + $0x98c] sm:$0xf0]  ;;  %v4462_v24 = vld [vmem:[%s7093_s1 + $0x44] sm:$0xf] }
  0x4c   :  { %2117 = vmatpush.bf16.msra.mxu0 %v4127_v35  ;;  %v4239_v52 = vor.u32 %v4764_v46, %v4238_v44  ;;  %v4094_v55 = vld [vmem:[%s7093_s1 + $0x880] sm:$0xf]  ;;  %v4724_v8 = vld [vmem:[%s7093_s1 + $0x86c] sm:$0xf0]  ;;  %v4494_v30 = vld [vmem:[%s7093_s1 + $0x144] sm:$0xf]  ;;  %v3043_v33 = vor.u32 %v4462_v24, %v3040_v25 }
  0x4d   :  { %2130 = vmatpush.bf16.msra.mxu1 %v4255_v36  ;;  %v4222_v58 = vld [vmem:[%s7093_s1 + $0x980] sm:$0xf]  ;;  %v4095_v63 = vor.u32 %v4728_v57, %v4094_v55  ;;  %v4756_v11 = vld [vmem:[%s7093_s1 + $0x96c] sm:$0xf0]  ;;  %v3168_v31 = vld [vmem:[%s7093_s1 + $0x150] sm:$0xf0] }
  0x4e   :  { %2168 = vmatpush.bf16.msrb.mxu2 %v3251_v34  ;;  %v4223_v0 = vor.u32 %v4760_v59, %v4222_v58  ;;  %v4078_v6 = vld [vmem:[%s7093_s1 + $0x860] sm:$0xf]  ;;  %v4720_v21 = vld [vmem:[%s7093_s1 + $0x84c] sm:$0xf0]  ;;  %v4458_v37 = vld [vmem:[%s7093_s1 + $0x24] sm:$0xf]  ;;  %v3171_v39 = vor.u32 %v4494_v30, %v3168_v31 }
  0x4f   :  { %2156 = vmatpush.bf16.msra.mxu3 %v3107_v40  ;;  %v4206_v9 = vld [vmem:[%s7093_s1 + $0x960] sm:$0xf]  ;;  %v4079_v15 = vor.u32 %v4724_v8, %v4078_v6  ;;  %v4752_v23 = vld [vmem:[%s7093_s1 + $0x94c] sm:$0xf0]  ;;  %v3024_v38 = vld [vmem:[%s7093_s1 + $0x30] sm:$0xf0] }
  0x50   :  { %2118 = vmatpush.bf16.msra.mxu0 %v4111_v51  ;;  %v4207_v16 = vor.u32 %v4756_v11, %v4206_v9  ;;  %v4062_v19 = vld [vmem:[%s7093_s1 + $0x840] sm:$0xf]  ;;  %v5447_v26 = vld [vmem:[#allocation1 + $0x12] sm:$0xff]  ;;  %v4490_v40 = vld [vmem:[%s7093_s1 + $0x124] sm:$0xf]  ;;  %v3027_v51 = vor.u32 %v4458_v37, %v3024_v38 }
  0x51   :  { %2131 = vmatpush.bf16.msra.mxu1 %v4239_v52  ;;  %v4190_v22 = vld [vmem:[%s7093_s1 + $0x940] sm:$0xf]  ;;  %v4063_v28 = vor.u32 %v4720_v21, %v4062_v19  ;;  %v4716_v34 = vld [vmem:[%s7093_s1 + $0x82c] sm:$0xf0]  ;;  %v3152_v41 = vld [vmem:[%s7093_s1 + $0x130] sm:$0xf0] }
  0x52   :  { %2169 = vmatpush.bf16.msrb.mxu2 %v3235_v50  ;;  %v4191_v29 = vor.u32 %v4752_v23, %v4190_v22  ;;  %v4046_v32 = vld [vmem:[%s7093_s1 + $0x820] sm:$0xf]  ;;  %v4748_v36 = vld [vmem:[%s7093_s1 + $0x92c] sm:$0xf0]  ;;  %v4454_v53 = vld [vmem:[%s7093_s1 + $0x4] sm:$0xf]  ;;  %v3155_v58 = vor.u32 %v4490_v40, %v3152_v41 }
  0x53   :  { %2157 = vmatpush.bf16.msra.mxu3 %v3091_v56  ;;  %v4174_v35 = vld [vmem:[%s7093_s1 + $0x920] sm:$0xf]  ;;  %v4047_v44 = vor.u32 %v4716_v34, %v4046_v32  ;;  %v4712_v49 = vld [vmem:[%s7093_s1 + $0x80c] sm:$0xf0]  ;;  %v3008_v54 = vld [vmem:[%s7093_s1 + $0x10] sm:$0xf0] }
  0x54   :  { %2119 = vmatpush.bf16.msra.mxu0 %v4095_v63  ;;  %v4175_v46 = vor.u32 %v4748_v36, %v4174_v35  ;;  %v4030_v48 = vld [vmem:[%s7093_s1 + $0x800] sm:$0xf]  ;;  %v4744_v52 = vld [vmem:[%s7093_s1 + $0x90c] sm:$0xf0]  ;;  %v4546_v55 = vld [vmem:[%s7093_s1 + $0x2e4] sm:$0xf]  ;;  %v3011_v2 = vor.u32 %v4454_v53, %v3008_v54 }
  0x55   :  { %2132 = vmatpush.bf16.msra.mxu1 %v4223_v0  ;;  %v4158_v50 = vld [vmem:[%s7093_s1 + $0x900] sm:$0xf]  ;;  %v3376_v56 = vld [vmem:[%s7093_s1 + $0x2f0] sm:$0xf0]  ;;  %v4578_v57 = vld [vmem:[%s7093_s1 + $0x3e4] sm:$0xf] }
  0x56   :  { %2170 = vmatpush.bf16.msrb.mxu2 %v3219_v62  ;;  %v3504_v59 = vld [vmem:[%s7093_s1 + $0x3f0] sm:$0xf0]  ;;  %v4610_v60 = vld [vmem:[%s7093_s1 + $0x4e4] sm:$0xf]  ;;  %v4031_v62 = vor.u32 %v4712_v49, %v4030_v48  ;;  %v4159_v63 = vor.u32 %v4744_v52, %v4158_v50  ;;  %v3379_v6 = vor.u32 %v4546_v55, %v3376_v56  ;;  %v5549_v21 = vld [vmem:[#allocation1 + $0x9] sm:$0xff] }
  0x57   :  { %2158 = vmatpush.bf16.msra.mxu3 %v3075_v7  ;;  %v3632_v61 = vld [vmem:[%s7093_s1 + $0x4f0] sm:$0xf0]  ;;  %v4486_v0 = vld [vmem:[%s7093_s1 + $0x104] sm:$0xf]  ;;  %v3507_v9 = vor.u32 %v4578_v57, %v3504_v59 }
  0x58   :  { %2120 = vmatpush.bf16.msra.mxu0 %v4079_v15  ;;  %v3136_v1 = vld [vmem:[%s7093_s1 + $0x110] sm:$0xf0]  ;;  %v4642_v7 = vld [vmem:[%s7093_s1 + $0x5e4] sm:$0xf]  ;;  %v3635_v11 = vor.u32 %v4610_v60, %v3632_v61 }
  0x59   :  { %2133 = vmatpush.bf16.msra.mxu1 %v4207_v16  ;;  %4300 = vmatmul.msk.bf16.vlgmr.msra.gmra.mxu2 %vm2009_vm0, %v5447_v26  ;;  %v3760_v8 = vld [vmem:[%s7093_s1 + $0x5f0] sm:$0xf0]  ;;  %v4542_v12 = vld [vmem:[%s7093_s1 + $0x2c4] sm:$0xf]  ;;  %v3139_v15 = vor.u32 %v4486_v0, %v3136_v1 }
  0x5a   :  { %2171 = vmatpush.bf16.msrb.mxu2 %v3203_v14  ;;  %v3360_v13 = vld [vmem:[%s7093_s1 + $0x2d0] sm:$0xf0]  ;;  %v4574_v14 = vld [vmem:[%s7093_s1 + $0x3c4] sm:$0xf] }
  0x5b   :  { %2159 = vmatpush.bf16.msra.mxu3 %v3059_v20  ;;  %v3488_v16 = vld [vmem:[%s7093_s1 + $0x3d0] sm:$0xf0]  ;;  %v4606_v17 = vld [vmem:[%s7093_s1 + $0x4c4] sm:$0xf]  ;;  %v3763_v20 = vor.u32 %v4642_v7, %v3760_v8  ;;  %v3363_v22 = vor.u32 %v4542_v12, %v3360_v13 }
  0x5c   :  { %2121 = vmatpush.bf16.msra.mxu0 %v4063_v28  ;;  %v3616_v18 = vld [vmem:[%s7093_s1 + $0x4d0] sm:$0xf0]  ;;  %v5547_v19 = vld [vmem:[#allocation1] sm:$0xff] }
  0x5d   :  { %2134 = vmatpush.bf16.msra.mxu1 %v4191_v29  ;;  %v4638_v23 = vld [vmem:[%s7093_s1 + $0x5c4] sm:$0xf]  ;;  %v3744_v24 = vld [vmem:[%s7093_s1 + $0x5d0] sm:$0xf0]  ;;  %v3619_v28 = vor.u32 %v4606_v17, %v3616_v18 }
  0x5e   :  { %2172 = vmatpush.bf16.msrb.mxu2 %v3187_v27  ;;  %v4538_v25 = vld [vmem:[%s7093_s1 + $0x2a4] sm:$0xf]  ;;  %v3491_v27 = vor.u32 %v4574_v14, %v3488_v16  ;;  %v3344_v29 = vld [vmem:[%s7093_s1 + $0x2b0] sm:$0xf0]  ;;  %v3747_v34 = vor.u32 %v4638_v23, %v3744_v24 }
  0x5f   :  { %2160 = vmatpush.bf16.msra.mxu3 %v3043_v33  ;;  %v4570_v30 = vld [vmem:[%s7093_s1 + $0x3a4] sm:$0xf]  ;;  %v3472_v31 = vld [vmem:[%s7093_s1 + $0x3b0] sm:$0xf0]  ;;  %v3347_v35 = vor.u32 %v4538_v25, %v3344_v29 }
  0x60   :  { %2122 = vmatpush.bf16.msra.mxu0 %v4047_v44  ;;  %v4602_v32 = vld [vmem:[%s7093_s1 + $0x4a4] sm:$0xf]  ;;  %v3600_v33 = vld [vmem:[%s7093_s1 + $0x4b0] sm:$0xf0] }
  0x61   :  { %2135 = vmatpush.bf16.msra.mxu1 %v4175_v46  ;;  %v4634_v36 = vld [vmem:[%s7093_s1 + $0x5a4] sm:$0xf]  ;;  %v3728_v37 = vld [vmem:[%s7093_s1 + $0x5b0] sm:$0xf0]  ;;  %v3603_v40 = vor.u32 %v4602_v32, %v3600_v33 }
  0x62   :  { %2173 = vmatpush.bf16.msrb.mxu2 %v3171_v39  ;;  %v4534_v38 = vld [vmem:[%s7093_s1 + $0x284] sm:$0xf]  ;;  %v3475_v39 = vor.u32 %v4570_v30, %v3472_v31  ;;  %v3328_v41 = vld [vmem:[%s7093_s1 + $0x290] sm:$0xf0] }
  0x63   :  { %2161 = vmatpush.bf16.msra.mxu3 %v3027_v51  ;;  %v4566_v44 = vld [vmem:[%s7093_s1 + $0x384] sm:$0xf]  ;;  %v3456_v46 = vld [vmem:[%s7093_s1 + $0x390] sm:$0xf0] }
  0x64   :  { %2123 = vmatpush.bf16.msra.mxu0 %v4031_v62  ;;  %v4598_v48 = vld [vmem:[%s7093_s1 + $0x484] sm:$0xf]  ;;  %v3584_v49 = vld [vmem:[%s7093_s1 + $0x490] sm:$0xf0] }
  0x65   :  { %2136 = vmatpush.bf16.msra.mxu1 %v4159_v63 }
  0x66   :  { %2174 = vmatpush.bf16.msrb.mxu2 %v3155_v58 }
  0x67   :  { %2162 = vmatpush.bf16.msra.mxu3 %v3011_v2  ;;  %2124 = vmatmul.bf16.vlgmr.msra.gmra.mxu0 %v5547_v19 }
  0x68   :  { %2181 = vmatpush.bf16.msrb.mxu0 %v3379_v6  ;;  %2137 = vmatmul.bf16.vlgmr.msra.gmra.mxu1 %v5549_v21 }
  0x69   :  { %2194 = vmatpush.bf16.msrb.mxu1 %v3507_v9 }
  0x6a   :  { %2175 = vmatpush.bf16.msrb.mxu2 %v3139_v15  ;;  %2163 = vmatmul.bf16.vlgmr.msra.gmra.mxu3 %v5161_v4 }
  0x6b   :  { %2207 = vmatpush.bf16.msrb.mxu3 %v3635_v11 }
  0x6c   :  { %2182 = vmatpush.bf16.msrb.mxu0 %v3363_v22 }
  0x6d   :  { %2195 = vmatpush.bf16.msrb.mxu1 %v3491_v27  ;;  %2176 = vmatmul.bf16.vlgmr.msrb.gmra.mxu2 %v5163_v5 }
  0x6e   :  { %2220 = vmatpush.bf16.msra.mxu2 %v3763_v20 }
  0x6f   :  { %2208 = vmatpush.bf16.msrb.mxu3 %v3619_v28 }
  0x70   :  { %12 = vsyncpa [#allocation3], 0  ;;  %v3731_v50 = vor.u32 %v4634_v36, %v3728_v37  ;;  %2183 = vmatpush.bf16.msrb.mxu0 %v3347_v35  ;;  %v3331_v51 = vor.u32 %v4534_v38, %v3328_v41  ;;  %v4630_v52 = vld [vmem:[%s7093_s1 + $0x584] sm:$0xf]  ;;  %v3712_v53 = vld [vmem:[%s7093_s1 + $0x590] sm:$0xf0]  ;;  %v3459_v54 = vor.u32 %v4566_v44, %v3456_v46  ;;  %v3587_v55 = vor.u32 %v4598_v48, %v3584_v49 }
  0x71   :  { %2196 = vmatpush.bf16.msrb.mxu1 %v3475_v39  ;;  %v4530_v56 = vld [vmem:[%s7093_s1 + $0x264] sm:$0xf]  ;;  %v3312_v57 = vld [vmem:[%s7093_s1 + $0x270] sm:$0xf0]  ;;  %v3715_v62 = vor.u32 %v4630_v52, %v3712_v53  ;;  %vm2852_vm1 = vcmask 1041408   ;;  %vm2848_vm2 = vcmask 949248  }
  0x72   :  { %2221 = vmatpush.bf16.msra.mxu2 %v3747_v34  ;;  %v4562_v58 = vld [vmem:[%s7093_s1 + $0x364] sm:$0xf]  ;;  %v3440_v59 = vld [vmem:[%s7093_s1 + $0x370] sm:$0xf0]  ;;  %v3315_v63 = vor.u32 %v4530_v56, %v3312_v57  ;;  %vm2966_vm3 = vcmask 818176   ;;  %s4848_s21 = smov [#allocation2]  }
  0x73   :  { %2209 = vmatpush.bf16.msrb.mxu3 %v3603_v40  ;;  %v4594_v60 = vld [vmem:[%s7093_s1 + $0x464] sm:$0xf]  ;;  %v3568_v61 = vld [vmem:[%s7093_s1 + $0x470] sm:$0xf0]  ;;  %v3443_v2 = vor.u32 %v4562_v58, %v3440_v59  ;;  %s2995_s24 = sshll.u32 %s7099_s7, 4  ;;  %vm2986_vm4 = vcmask 25600   ;;  %s2996_s24 = int_to_ptr.hbm [resolvable:$true] %s2995_s24 }
  0x74   :  { %2184 = vmatpush.bf16.msrb.mxu0 %v3331_v51  ;;  %v4626_v0 = vld [vmem:[%s7093_s1 + $0x564] sm:$0xf]  ;;  %v3696_v1 = vld [vmem:[%s7093_s1 + $0x570] sm:$0xf0]  ;;  %v3571_v6 = vor.u32 %v4594_v60, %v3568_v61 }
  0x75   :  { %2197 = vmatpush.bf16.msrb.mxu1 %v3459_v54  ;;  %v4526_v7 = vld [vmem:[%s7093_s1 + $0x244] sm:$0xf]  ;;  %v3296_v8 = vld [vmem:[%s7093_s1 + $0x250] sm:$0xf0]  ;;  %v3699_v14 = vor.u32 %v4626_v0, %v3696_v1 }
  0x76   :  { %2222 = vmatpush.bf16.msra.mxu2 %v3731_v50  ;;  %v4558_v9 = vld [vmem:[%s7093_s1 + $0x344] sm:$0xf]  ;;  %v3424_v11 = vld [vmem:[%s7093_s1 + $0x350] sm:$0xf0]  ;;  %v3299_v15 = vor.u32 %v4526_v7, %v3296_v8 }
  0x77   :  { %2210 = vmatpush.bf16.msrb.mxu3 %v3587_v55  ;;  %v4590_v12 = vld [vmem:[%s7093_s1 + $0x444] sm:$0xf]  ;;  %v3552_v13 = vld [vmem:[%s7093_s1 + $0x450] sm:$0xf0]  ;;  %v3427_v18 = vor.u32 %v4558_v9, %v3424_v11 }
  0x78   :  { %2185 = vmatpush.bf16.msrb.mxu0 %v3315_v63  ;;  %v4622_v16 = vld [vmem:[%s7093_s1 + $0x544] sm:$0xf]  ;;  %v3680_v17 = vld [vmem:[%s7093_s1 + $0x550] sm:$0xf0]  ;;  %v3555_v20 = vor.u32 %v4590_v12, %v3552_v13 }
  0x79   :  { %2198 = vmatpush.bf16.msrb.mxu1 %v3443_v2  ;;  %v4522_v22 = vld [vmem:[%s7093_s1 + $0x224] sm:$0xf]  ;;  %v3280_v23 = vld [vmem:[%s7093_s1 + $0x230] sm:$0xf0]  ;;  %v3683_v29 = vor.u32 %v4622_v16, %v3680_v17 }
  0x7a   :  { %2223 = vmatpush.bf16.msra.mxu2 %v3715_v62  ;;  %v4554_v24 = vld [vmem:[%s7093_s1 + $0x324] sm:$0xf]  ;;  %v3408_v25 = vld [vmem:[%s7093_s1 + $0x330] sm:$0xf0]  ;;  %v3283_v31 = vor.u32 %v4522_v22, %v3280_v23 }
  0x7b   :  { %2211 = vmatpush.bf16.msrb.mxu3 %v3571_v6  ;;  %v4586_v27 = vld [vmem:[%s7093_s1 + $0x424] sm:$0xf]  ;;  %v3536_v28 = vld [vmem:[%s7093_s1 + $0x430] sm:$0xf0]  ;;  %v3411_v35 = vor.u32 %v4554_v24, %v3408_v25 }
  0x7c   :  { %v4618_v30 = vld [vmem:[%s7093_s1 + $0x524] sm:$0xf]  ;;  %2186 = vmatpush.bf16.msrb.mxu0 %v3299_v15  ;;  %v3664_v32 = vld [vmem:[%s7093_s1 + $0x530] sm:$0xf0]  ;;  %v3539_v36 = vor.u32 %v4586_v27, %v3536_v28 }
  0x7d   :  { %v4518_v33 = vld [vmem:[%s7093_s1 + $0x204] sm:$0xf]  ;;  %v3264_v34 = vld [vmem:[%s7093_s1 + $0x210] sm:$0xf0]  ;;  %2199 = vmatpush.bf16.msrb.mxu1 %v3427_v18  ;;  %v3667_v46 = vor.u32 %v4618_v30, %v3664_v32 }
  0x7e   :  { %2224 = vmatpush.bf16.msra.mxu2 %v3699_v14  ;;  %v4550_v37 = vld [vmem:[%s7093_s1 + $0x304] sm:$0xf]  ;;  %v3392_v38 = vld [vmem:[%s7093_s1 + $0x310] sm:$0xf0]  ;;  %v3267_v51 = vor.u32 %v4518_v33, %v3264_v34 }
  0x7f   :  { %2212 = vmatpush.bf16.msrb.mxu3 %v3555_v20  ;;  %v4582_v39 = vld [vmem:[%s7093_s1 + $0x404] sm:$0xf]  ;;  %v3520_v40 = vld [vmem:[%s7093_s1 + $0x410] sm:$0xf0]  ;;  %v3395_v55 = vor.u32 %v4550_v37, %v3392_v38 }
  0x80   :  { %v4674_v41 = vld [vmem:[%s7093_s1 + $0x6e4] sm:$0xf]  ;;  %v3888_v44 = vld [vmem:[%s7093_s1 + $0x6f0] sm:$0xf0]  ;;  %2187 = vmatpush.bf16.msrb.mxu0 %v3283_v31  ;;  %v3523_v56 = vor.u32 %v4582_v39, %v3520_v40 }
  0x81   :  { %v4706_v48 = vld [vmem:[%s7093_s1 + $0x7e4] sm:$0xf]  ;;  %v4016_v49 = vld [vmem:[%s7093_s1 + $0x7f0] sm:$0xf0]  ;;  %2200 = vmatpush.bf16.msrb.mxu1 %v3411_v35  ;;  %v3891_v59 = vor.u32 %v4674_v41, %v3888_v44 }
  0x82   :  { %2225 = vmatpush.bf16.msra.mxu2 %v3683_v29  ;;  %v4738_v50 = vld [vmem:[%s7093_s1 + $0x8e4] sm:$0xf]  ;;  %v4144_v52 = vld [vmem:[%s7093_s1 + $0x8f0] sm:$0xf0]  ;;  %v4019_v60 = vor.u32 %v4706_v48, %v4016_v49 }
  0x83   :  { %v4614_v53 = vld [vmem:[%s7093_s1 + $0x504] sm:$0xf]  ;;  %v3648_v54 = vld [vmem:[%s7093_s1 + $0x510] sm:$0xf0]  ;;  %2213 = vmatpush.bf16.msrb.mxu3 %v3539_v36  ;;  %v4147_v62 = vor.u32 %v4738_v50, %v4144_v52 }
  0x84   :  { %v4770_v57 = vld [vmem:[%s7093_s1 + $0x9e4] sm:$0xf]  ;;  %v4272_v58 = vld [vmem:[%s7093_s1 + $0x9f0] sm:$0xf0]  ;;  %v3651_v63 = vor.u32 %v4614_v53, %v3648_v54  ;;  %2188 = vmatpush.bf16.msrb.mxu0 %v3267_v51 }
  0x85   :  { %v4670_v61 = vld [vmem:[%s7093_s1 + $0x6c4] sm:$0xf]  ;;  %v3872_v0 = vld [vmem:[%s7093_s1 + $0x6d0] sm:$0xf0]  ;;  %v4275_v6 = vor.u32 %v4770_v57, %v4272_v58  ;;  %2201 = vmatpush.bf16.msrb.mxu1 %v3395_v55 }
  0x86   :  { %2226 = vmatpush.bf16.msra.mxu2 %v3667_v46  ;;  %v4702_v1 = vld [vmem:[%s7093_s1 + $0x7c4] sm:$0xf]  ;;  %v4000_v2 = vld [vmem:[%s7093_s1 + $0x7d0] sm:$0xf0]  ;;  %v3875_v12 = vor.u32 %v4670_v61, %v3872_v0 }
  0x87   :  { %v4734_v7 = vld [vmem:[%s7093_s1 + $0x8c4] sm:$0xf]  ;;  %v4128_v8 = vld [vmem:[%s7093_s1 + $0x8d0] sm:$0xf0]  ;;  %2214 = vmatpush.bf16.msrb.mxu3 %v3523_v56  ;;  %v4003_v13 = vor.u32 %v4702_v1, %v4000_v2  ;;  %2189 = vmatmul.bf16.vlgmr.msrb.gmra.mxu0 %v5159_v3 }
  0x88   :  { %v4766_v9 = vld [vmem:[%s7093_s1 + $0x9c4] sm:$0xf]  ;;  %v4256_v11 = vld [vmem:[%s7093_s1 + $0x9d0] sm:$0xf0]  ;;  %2233 = vmatpush.bf16.msra.mxu0 %v3891_v59  ;;  %v4131_v15 = vor.u32 %v4734_v7, %v4128_v8  ;;  %2202 = vmatmul.bf16.vlgmr.msrb.gmra.mxu1 %v5171_v10 }
  0x89   :  { %2246 = vmatpush.bf16.msra.mxu1 %v4019_v60  ;;  %v4666_v14 = vld [vmem:[%s7093_s1 + $0x6a4] sm:$0xf]  ;;  %v3856_v16 = vld [vmem:[%s7093_s1 + $0x6b0] sm:$0xf0]  ;;  %v4259_v20 = vor.u32 %v4766_v9, %v4256_v11 }
  0x8a   :  { %2227 = vmatpush.bf16.msra.mxu2 %v3651_v63  ;;  %v4698_v17 = vld [vmem:[%s7093_s1 + $0x7a4] sm:$0xf]  ;;  %v3984_v18 = vld [vmem:[%s7093_s1 + $0x7b0] sm:$0xf0]  ;;  %2215 = vmatmul.bf16.vlgmr.msrb.gmra.mxu3 %v5243_v42  ;;  %v3859_v27 = vor.u32 %v4666_v14, %v3856_v16 }
  0x8b   :  { %2259 = vmatpush.bf16.msra.mxu3 %v4147_v62  ;;  %v4730_v22 = vld [vmem:[%s7093_s1 + $0x8a4] sm:$0xf]  ;;  %v4112_v23 = vld [vmem:[%s7093_s1 + $0x8b0] sm:$0xf0]  ;;  %v3987_v28 = vor.u32 %v4698_v17, %v3984_v18 }
  0x8c   :  { %v4762_v24 = vld [vmem:[%s7093_s1 + $0x9a4] sm:$0xf]  ;;  %v4240_v25 = vld [vmem:[%s7093_s1 + $0x9b0] sm:$0xf0]  ;;  %2234 = vmatpush.bf16.msra.mxu0 %v3875_v12  ;;  %v4115_v30 = vor.u32 %v4730_v22, %v4112_v23 }
  0x8d   :  { %2247 = vmatpush.bf16.msra.mxu1 %v4003_v13  ;;  %v4662_v29 = vld [vmem:[%s7093_s1 + $0x684] sm:$0xf]  ;;  %v3840_v31 = vld [vmem:[%s7093_s1 + $0x690] sm:$0xf0]  ;;  %2228 = vmatmul.bf16.vlgmr.msra.gmra.mxu2 %v5247_v45  ;;  %v4243_v34 = vor.u32 %v4762_v24, %v4240_v25 }
  0x8e   :  { %2272 = vmatpush.bf16.msrb.mxu2 %v4275_v6  ;;  %v4694_v32 = vld [vmem:[%s7093_s1 + $0x784] sm:$0xf]  ;;  %v3968_v33 = vld [vmem:[%s7093_s1 + $0x790] sm:$0xf0]  ;;  %v3843_v39 = vor.u32 %v4662_v29, %v3840_v31 }
  0x8f   :  { %2260 = vmatpush.bf16.msra.mxu3 %v4131_v15  ;;  %v4726_v35 = vld [vmem:[%s7093_s1 + $0x884] sm:$0xf]  ;;  %v4096_v36 = vld [vmem:[%s7093_s1 + $0x890] sm:$0xf0]  ;;  %v3971_v40 = vor.u32 %v4694_v32, %v3968_v33  ;;  %v3126_v32 = vld [vmem:[%s7093_s1 + $0xe8] sm:$0xf] }
  0x90   :  { %v4758_v37 = vld [vmem:[%s7093_s1 + $0x984] sm:$0xf]  ;;  %v4224_v38 = vld [vmem:[%s7093_s1 + $0x990] sm:$0xf0]  ;;  %2235 = vmatpush.bf16.msra.mxu0 %v3859_v27  ;;  %v4099_v44 = vor.u32 %v4726_v35, %v4096_v36  ;;  %v4485_v33 = vld [vmem:[%s7093_s1 + $0xf4] sm:$0xf0] }
  0x91   :  { %2248 = vmatpush.bf16.msra.mxu1 %v3987_v28  ;;  %v4658_v41 = vld [vmem:[%s7093_s1 + $0x664] sm:$0xf]  ;;  %v3824_v46 = vld [vmem:[%s7093_s1 + $0x670] sm:$0xf0]  ;;  %v4227_v50 = vor.u32 %v4758_v37, %v4224_v38  ;;  %v4517_v35 = vld [vmem:[%s7093_s1 + $0x1f4] sm:$0xf0] }
  0x92   :  { %2273 = vmatpush.bf16.msrb.mxu2 %v4259_v20  ;;  %v4690_v48 = vld [vmem:[%s7093_s1 + $0x764] sm:$0xf]  ;;  %v3952_v49 = vld [vmem:[%s7093_s1 + $0x770] sm:$0xf0]  ;;  %v3827_v55 = vor.u32 %v4658_v41, %v3824_v46  ;;  %v4581_v41 = vld [vmem:[%s7093_s1 + $0x3f4] sm:$0xf0]  ;;  %v3127_v46 = vor.u32 %v4485_v33, %v3126_v32 }
  0x93   :  { %2261 = vmatpush.bf16.msra.mxu3 %v4115_v30  ;;  %v4722_v51 = vld [vmem:[%s7093_s1 + $0x864] sm:$0xf]  ;;  %v4080_v52 = vld [vmem:[%s7093_s1 + $0x870] sm:$0xf0]  ;;  %v3955_v56 = vor.u32 %v4690_v48, %v3952_v49  ;;  %v4537_v32 = vld [vmem:[%s7093_s1 + $0x294] sm:$0xf0] }
  0x94   :  { %v4754_v53 = vld [vmem:[%s7093_s1 + $0x964] sm:$0xf]  ;;  %v4208_v54 = vld [vmem:[%s7093_s1 + $0x970] sm:$0xf0]  ;;  %2236 = vmatpush.bf16.msra.mxu0 %v3843_v39  ;;  %v4083_v58 = vor.u32 %v4722_v51, %v4080_v52  ;;  %v3382_v52 = vld [vmem:[%s7093_s1 + $0x2e8] sm:$0xf] }
  0x95   :  { %2249 = vmatpush.bf16.msra.mxu1 %v3971_v40  ;;  %v4654_v57 = vld [vmem:[%s7093_s1 + $0x644] sm:$0xf]  ;;  %v3808_v59 = vld [vmem:[%s7093_s1 + $0x650] sm:$0xf0]  ;;  %v4211_v62 = vor.u32 %v4754_v53, %v4208_v54  ;;  %v3510_v40 = vld [vmem:[%s7093_s1 + $0x3e8] sm:$0xf] }
  0x96   :  { %2274 = vmatpush.bf16.msrb.mxu2 %v4243_v34  ;;  %v4686_v60 = vld [vmem:[%s7093_s1 + $0x744] sm:$0xf]  ;;  %v3936_v61 = vld [vmem:[%s7093_s1 + $0x750] sm:$0xf0]  ;;  %v3811_v6 = vor.u32 %v4654_v57, %v3808_v59  ;;  %v3254_v34 = vld [vmem:[%s7093_s1 + $0x1e8] sm:$0xf] }
  0x97   :  { %2262 = vmatpush.bf16.msra.mxu3 %v4099_v44  ;;  %v4718_v63 = vld [vmem:[%s7093_s1 + $0x844] sm:$0xf]  ;;  %v4064_v0 = vld [vmem:[%s7093_s1 + $0x850] sm:$0xf0]  ;;  %v3939_v7 = vor.u32 %v4686_v60, %v3936_v61  ;;  %v4549_v53 = vld [vmem:[%s7093_s1 + $0x2f4] sm:$0xf0] }
  0x98   :  { %v4750_v1 = vld [vmem:[%s7093_s1 + $0x944] sm:$0xf]  ;;  %v4192_v2 = vld [vmem:[%s7093_s1 + $0x950] sm:$0xf0]  ;;  %2237 = vmatpush.bf16.msra.mxu0 %v3827_v55  ;;  %v4067_v9 = vor.u32 %v4718_v63, %v4064_v0  ;;  %v3110_v54 = vld [vmem:[%s7093_s1 + $0xc8] sm:$0xf]  ;;  %v3511_v55 = vor.u32 %v4581_v41, %v3510_v40  ;;  %v3383_v60 = vor.u32 %v4549_v53, %v3382_v52 }
  0x99   :  { %2250 = vmatpush.bf16.msra.mxu1 %v3955_v56  ;;  %v4650_v8 = vld [vmem:[%s7093_s1 + $0x624] sm:$0xf]  ;;  %v3792_v11 = vld [vmem:[%s7093_s1 + $0x630] sm:$0xf0]  ;;  %v4195_v14 = vor.u32 %v4750_v1, %v4192_v2  ;;  %v4481_v56 = vld [vmem:[%s7093_s1 + $0xd4] sm:$0xf0] }
  0x9a   :  { %2275 = vmatpush.bf16.msrb.mxu2 %v4227_v50  ;;  %v4682_v12 = vld [vmem:[%s7093_s1 + $0x724] sm:$0xf]  ;;  %v3920_v13 = vld [vmem:[%s7093_s1 + $0x730] sm:$0xf0]  ;;  %v3795_v20 = vor.u32 %v4650_v8, %v3792_v11  ;;  %v3255_v50 = vor.u32 %v4517_v35, %v3254_v34  ;;  %v3238_v57 = vld [vmem:[%s7093_s1 + $0x1c8] sm:$0xf]  ;;  %v3111_v63 = vor.u32 %v4481_v56, %v3110_v54 }
  0x9b   :  { %2263 = vmatpush.bf16.msra.mxu3 %v4083_v58  ;;  %v4714_v15 = vld [vmem:[%s7093_s1 + $0x824] sm:$0xf]  ;;  %v4048_v16 = vld [vmem:[%s7093_s1 + $0x830] sm:$0xf0]  ;;  %v3923_v22 = vor.u32 %v4682_v12, %v3920_v13  ;;  %v4513_v58 = vld [vmem:[%s7093_s1 + $0x1d4] sm:$0xf0] }
  0x9c   :  { %v4746_v17 = vld [vmem:[%s7093_s1 + $0x924] sm:$0xf]  ;;  %v4176_v18 = vld [vmem:[%s7093_s1 + $0x930] sm:$0xf0]  ;;  %2238 = vmatpush.bf16.msra.mxu0 %v3811_v6  ;;  %v4051_v27 = vor.u32 %v4714_v15, %v4048_v16  ;;  %v3494_v61 = vld [vmem:[%s7093_s1 + $0x3c8] sm:$0xf]  ;;  %v3239_v0 = vor.u32 %v4513_v58, %v3238_v57 }
  0x9d   :  { %2251 = vmatpush.bf16.msra.mxu1 %v3939_v7  ;;  %v4646_v23 = vld [vmem:[%s7093_s1 + $0x604] sm:$0xf]  ;;  %v3776_v24 = vld [vmem:[%s7093_s1 + $0x610] sm:$0xf0]  ;;  %v4179_v31 = vor.u32 %v4746_v17, %v4176_v18  ;;  %v3366_v1 = vld [vmem:[%s7093_s1 + $0x2c8] sm:$0xf] }
  0x9e   :  { %2276 = vmatpush.bf16.msrb.mxu2 %v4211_v62  ;;  %v4678_v25 = vld [vmem:[%s7093_s1 + $0x704] sm:$0xf]  ;;  %v3904_v28 = vld [vmem:[%s7093_s1 + $0x710] sm:$0xf0]  ;;  %v3779_v38 = vor.u32 %v4646_v23, %v3776_v24  ;;  %v4577_v62 = vld [vmem:[%s7093_s1 + $0x3d4] sm:$0xf0] }
  0x9f   :  { %2264 = vmatpush.bf16.msra.mxu3 %v4067_v9  ;;  %v4710_v29 = vld [vmem:[%s7093_s1 + $0x804] sm:$0xf]  ;;  %v4032_v30 = vld [vmem:[%s7093_s1 + $0x810] sm:$0xf0]  ;;  %v3907_v39 = vor.u32 %v4678_v25, %v3904_v28  ;;  %v4545_v2 = vld [vmem:[%s7093_s1 + $0x2d4] sm:$0xf0]  ;;  %v3495_v11 = vor.u32 %v4577_v62, %v3494_v61 }
  0xa0   :  { %v4742_v36 = vld [vmem:[%s7093_s1 + $0x904] sm:$0xf]  ;;  %v4160_v37 = vld [vmem:[%s7093_s1 + $0x910] sm:$0xf0]  ;;  %2239 = vmatpush.bf16.msra.mxu0 %v3795_v20  ;;  %v4035_v44 = vor.u32 %v4710_v29, %v4032_v30  ;;  %v3094_v6 = vld [vmem:[%s7093_s1 + $0xa8] sm:$0xf]  ;;  %v3367_v12 = vor.u32 %v4545_v2, %v3366_v1 }
  0xa1   :  { %2252 = vmatpush.bf16.msra.mxu1 %v3923_v22  ;;  %v4774_v48 = vld [vmem:[%s7093_s1 + $0xa04] sm:$0xf]  ;;  %v4288_v49 = vld [vmem:[%s7093_s1 + $0xa10] sm:$0xf0]  ;;  %v4163_v51 = vor.u32 %v4742_v36, %v4160_v37  ;;  %v4477_v7 = vld [vmem:[%s7093_s1 + $0xb4] sm:$0xf0] }
  0xa2   :  { %2277 = vmatpush.bf16.msrb.mxu2 %v4195_v14  ;;  %v4291_v59 = vor.u32 %v4774_v48, %v4288_v49  ;;  %v3222_v8 = vld [vmem:[%s7093_s1 + $0x1a8] sm:$0xf]  ;;  %v4509_v9 = vld [vmem:[%s7093_s1 + $0x1b4] sm:$0xf0]  ;;  %v3095_v15 = vor.u32 %v4477_v7, %v3094_v6  ;;  %v5998_v25 = vld [vmem:[%s7094_s2] sm:$0xf] }
  0xa3   :  { %2265 = vmatpush.bf16.msra.mxu3 %v4051_v27  ;;  %v3478_v13 = vld [vmem:[%s7093_s1 + $0x3a8] sm:$0xf]  ;;  %v4573_v14 = vld [vmem:[%s7093_s1 + $0x3b4] sm:$0xf0]  ;;  %v3223_v16 = vor.u32 %v4509_v9, %v3222_v8  ;;  %v356_v37 = vperm.slane %v5998_v25, 0 }
  0xa4   :  { %2240 = vmatpush.bf16.msra.mxu0 %v3779_v38  ;;  %v4541_v17 = vld [vmem:[%s7093_s1 + $0x2b4] sm:$0xf0]  ;;  %v3078_v18 = vld [vmem:[%s7093_s1 + $0x88] sm:$0xf]  ;;  %v3479_v24 = vor.u32 %v4573_v14, %v3478_v13 }
  0xa5   :  { %2253 = vmatpush.bf16.msra.mxu1 %v3907_v39  ;;  %v4473_v20 = vld [vmem:[%s7093_s1 + $0x94] sm:$0xf0]  ;;  %v3206_v22 = vld [vmem:[%s7093_s1 + $0x188] sm:$0xf] }
  0xa6   :  { %2278 = vmatpush.bf16.msrb.mxu2 %v4179_v31  ;;  %v4505_v23 = vld [vmem:[%s7093_s1 + $0x194] sm:$0xf0]  ;;  %v3334_v27 = vld [vmem:[%s7093_s1 + $0x288] sm:$0xf]  ;;  %v3079_v30 = vor.u32 %v4473_v20, %v3078_v18 }
  0xa7   :  { %2266 = vmatpush.bf16.msra.mxu3 %v4035_v44  ;;  %2241 = vmatmul.bf16.vlgmr.msra.gmra.mxu0 %v5245_v43  ;;  %v3462_v28 = vld [vmem:[%s7093_s1 + $0x388] sm:$0xf]  ;;  %v4569_v29 = vld [vmem:[%s7093_s1 + $0x394] sm:$0xf0]  ;;  %v3207_v31 = vor.u32 %v4505_v23, %v3206_v22  ;;  %v3335_v39 = vor.u32 %v4537_v32, %v3334_v27 }
  0xa8   :  { %2292 = vmatpush.bf16.msrb.mxu0 %v4291_v59  ;;  %2254 = vmatmul.bf16.vlgmr.msra.gmra.mxu1 %v5252_v47  ;;  %v3062_v33 = vld [vmem:[%s7093_s1 + $0x68] sm:$0xf]  ;;  %v4469_v34 = vld [vmem:[%s7093_s1 + $0x74] sm:$0xf0]  ;;  %v3463_v38 = vor.u32 %v4569_v29, %v3462_v28 }
  0xa9   :  { %2298 = vmatpush.bf16.msrb.mxu1 %v3127_v46  ;;  %v3190_v35 = vld [vmem:[%s7093_s1 + $0x168] sm:$0xf]  ;;  %v4501_v36 = vld [vmem:[%s7093_s1 + $0x174] sm:$0xf0]  ;;  %v3063_v44 = vor.u32 %v4469_v34, %v3062_v33 }
  0xaa   :  { %2279 = vmatpush.bf16.msrb.mxu2 %v4163_v51  ;;  %2267 = vmatmul.bf16.vlgmr.msra.gmra.mxu3 %v5547_v19  ;;  %v3350_v19 = vld [vmem:[%s7093_s1 + $0x2a8] sm:$0xf]  ;;  %v4565_v41 = vld [vmem:[%s7093_s1 + $0x374] sm:$0xf0]  ;;  %v3191_v46 = vor.u32 %v4501_v36, %v3190_v35 }
  0xab   :  { %2311 = vmatpush.bf16.msrb.mxu3 %v3255_v50  ;;  %v3446_v40 = vld [vmem:[%s7093_s1 + $0x368] sm:$0xf]  ;;  %v4533_v49 = vld [vmem:[%s7093_s1 + $0x274] sm:$0xf0] }
  0xac   :  { %2324 = vmatpush.bf16.msra.mxu0 %v3383_v60  ;;  %v3318_v48 = vld [vmem:[%s7093_s1 + $0x268] sm:$0xf]  ;;  %v2034_v52 = vpop.f32.mrf.mxu1  ;;  %v4465_v53 = vld [vmem:[%s7093_s1 + $0x54] sm:$0xf0]  ;;  %v3447_v57 = vor.u32 %v4565_v41, %v3446_v40 }
  0xad   :  { %2299 = vmatpush.bf16.msrb.mxu1 %v3111_v63  ;;  %2280 = vmatmul.bf16.vlgmr.msrb.gmra.mxu2 %v5549_v21  ;;  %v3351_v21 = vor.u32 %v4541_v17, %v3350_v19  ;;  %v3046_v50 = vld [vmem:[%s7093_s1 + $0x48] sm:$0xf]  ;;  %v2021_v51 = vpop.f32.mrf.mxu0  ;;  %v3319_v58 = vor.u32 %v4533_v49, %v3318_v48  ;;  %v4561_v60 = vld [vmem:[%s7093_s1 + $0x354] sm:$0xf0] }
  0xae   :  { %2337 = vmatpush.bf16.msra.mxu2 %v3511_v55  ;;  %v3174_v54 = vld [vmem:[%s7093_s1 + $0x148] sm:$0xf]  ;;  %v4497_v55 = vld [vmem:[%s7093_s1 + $0x154] sm:$0xf0]  ;;  %v2022_v56 = vadd.f32 %v2021_v51, %v356_v37  ;;  %v3047_v62 = vor.u32 %v4465_v53, %v3046_v50 }
  0xaf   :  { %2312 = vmatpush.bf16.msrb.mxu3 %v3239_v0  ;;  %v3430_v59 = vld [vmem:[%s7093_s1 + $0x348] sm:$0xf]  ;;  %v3175_v63 = vor.u32 %v4497_v55, %v3174_v54  ;;  %v4529_v1 = vld [vmem:[%s7093_s1 + $0x254] sm:$0xf0] }
  0xb0   :  { %2325 = vmatpush.bf16.msra.mxu0 %v3367_v12  ;;  %v2035_v61 = vadd.f32 %v2034_v52, %v2022_v56  ;;  %v3302_v0 = vld [vmem:[%s7093_s1 + $0x248] sm:$0xf]  ;;  %v4461_v6 = vld [vmem:[%s7093_s1 + $0x34] sm:$0xf0] }
  0xb1   :  { %2300 = vmatpush.bf16.msrb.mxu1 %v3095_v15  ;;  %v3030_v2 = vld [vmem:[%s7093_s1 + $0x28] sm:$0xf]  ;;  %v4493_v8 = vld [vmem:[%s7093_s1 + $0x134] sm:$0xf0]  ;;  %v3303_v13 = vor.u32 %v4529_v1, %v3302_v0 }
  0xb2   :  { %2338 = vmatpush.bf16.msra.mxu2 %v3495_v11  ;;  %v3158_v7 = vld [vmem:[%s7093_s1 + $0x128] sm:$0xf]  ;;  %v2047_v9 = vpop.f32.mrf.mxu2  ;;  %v3431_v11 = vor.u32 %v4561_v60, %v3430_v59  ;;  %v4557_v15 = vld [vmem:[%s7093_s1 + $0x334] sm:$0xf0]  ;;  %v3031_v19 = vor.u32 %v4461_v6, %v3030_v2 }
  0xb3   :  { %2313 = vmatpush.bf16.msrb.mxu3 %v3223_v16  ;;  %v2048_v12 = vadd.f32 %v2047_v9, %v2035_v61  ;;  %v3414_v14 = vld [vmem:[%s7093_s1 + $0x328] sm:$0xf]  ;;  %v3159_v17 = vor.u32 %v4493_v8, %v3158_v7  ;;  %v4525_v18 = vld [vmem:[%s7093_s1 + $0x234] sm:$0xf0] }
  0xb4   :  { %2326 = vmatpush.bf16.msra.mxu0 %v3351_v21  ;;  %v3014_v20 = vld [vmem:[%s7093_s1 + $0x8] sm:$0xf]  ;;  %v4457_v22 = vld [vmem:[%s7093_s1 + $0x14] sm:$0xf0]  ;;  %v2036_v21 = vpop.f32.mrf.mxu1 }
  0xb5   :  { %2301 = vmatpush.bf16.msrb.mxu1 %v3079_v30  ;;  %v2060_v16 = vpop.f32.mrf.mxu3  ;;  %v2023_v23 = vpop.f32.mrf.mxu0  ;;  %v3142_v27 = vld [vmem:[%s7093_s1 + $0x108] sm:$0xf]  ;;  %v4489_v28 = vld [vmem:[%s7093_s1 + $0x114] sm:$0xf0]  ;;  %v3415_v30 = vor.u32 %v4557_v15, %v3414_v14 }
  0xb6   :  { %2339 = vmatpush.bf16.msra.mxu2 %v3479_v24  ;;  %v6093_v24 = vadd.f32 %v2060_v16, %v2048_v12  ;;  %v3638_v29 = vld [vmem:[%s7093_s1 + $0x4e8] sm:$0xf]  ;;  %v4645_v33 = vld [vmem:[%s7093_s1 + $0x5f4] sm:$0xf0] }
  0xb7   :  { %2314 = vmatpush.bf16.msrb.mxu3 %v3207_v31  ;;  %4301 = vmatmul.msk.bf16.vlgmr.msrb.gmra.mxu0 %vm2009_vm0, %v5447_v26  ;;  %v3286_v26 = vld [vmem:[%s7093_s1 + $0x228] sm:$0xf]  ;;  %v4613_v31 = vld [vmem:[%s7093_s1 + $0x4f4] sm:$0xf0] }
  0xb8   :  { %2327 = vmatpush.bf16.msra.mxu0 %v3335_v39  ;;  %v3766_v32 = vld [vmem:[%s7093_s1 + $0x5e8] sm:$0xf]  ;;  %v3287_v34 = vor.u32 %v4525_v18, %v3286_v26  ;;  %v4553_v37 = vld [vmem:[%s7093_s1 + $0x314] sm:$0xf0]  ;;  %v3143_v39 = vor.u32 %v4489_v28, %v3142_v27 }
  0xb9   :  { %2302 = vmatpush.bf16.msrb.mxu1 %v3063_v44  ;;  %v3270_v35 = vld [vmem:[%s7093_s1 + $0x208] sm:$0xf]  ;;  %v4521_v40 = vld [vmem:[%s7093_s1 + $0x214] sm:$0xf0]  ;;  %v3767_v48 = vor.u32 %v4645_v33, %v3766_v32 }
  0xba   :  { %2340 = vmatpush.bf16.msra.mxu2 %v3463_v38  ;;  %v3398_v36 = vld [vmem:[%s7093_s1 + $0x308] sm:$0xf]  ;;  %v3015_v38 = vor.u32 %v4457_v22, %v3014_v20  ;;  %v4709_v44 = vld [vmem:[%s7093_s1 + $0x7f4] sm:$0xf0]  ;;  %v2049_v52 = vpop.f32.mrf.mxu2 }
  0xbb   :  { %2315 = vmatpush.bf16.msrb.mxu3 %v3191_v46  ;;  %v4022_v41 = vld [vmem:[%s7093_s1 + $0x7e8] sm:$0xf]  ;;  %v3639_v46 = vor.u32 %v4613_v31, %v3638_v29  ;;  %v4677_v50 = vld [vmem:[%s7093_s1 + $0x6f4] sm:$0xf0]  ;;  %v3399_v53 = vor.u32 %v4553_v37, %v3398_v36 }
  0xbc   :  { %2328 = vmatpush.bf16.msra.mxu0 %v3319_v58  ;;  %v3894_v49 = vld [vmem:[%s7093_s1 + $0x6e8] sm:$0xf]  ;;  %v4609_v54 = vld [vmem:[%s7093_s1 + $0x4d4] sm:$0xf0]  ;;  %v4023_v58 = vor.u32 %v4709_v44, %v4022_v41 }
  0xbd   :  { %2303 = vmatpush.bf16.msrb.mxu1 %v3047_v62  ;;  %v3622_v51 = vld [vmem:[%s7093_s1 + $0x4c8] sm:$0xf]  ;;  %v4641_v56 = vld [vmem:[%s7093_s1 + $0x5d4] sm:$0xf0]  ;;  %v2062_v59 = vpop.f32.mrf.mxu3  ;;  %v3895_v60 = vor.u32 %v4677_v50, %v3894_v49 }
  0xbe   :  { %2341 = vmatpush.bf16.msra.mxu2 %v3447_v57  ;;  %v3750_v55 = vld [vmem:[%s7093_s1 + $0x5c8] sm:$0xf]  ;;  %v3271_v57 = vor.u32 %v4521_v40, %v3270_v35  ;;  %v4705_v62 = vld [vmem:[%s7093_s1 + $0x7d4] sm:$0xf0] }
  0xbf   :  { %2316 = vmatpush.bf16.msrb.mxu3 %v3175_v63  ;;  %v4006_v61 = vld [vmem:[%s7093_s1 + $0x7c8] sm:$0xf]  ;;  %v3623_v63 = vor.u32 %v4609_v54, %v3622_v51  ;;  %v3751_v0 = vor.u32 %v4641_v56, %v3750_v55  ;;  %v4673_v2 = vld [vmem:[%s7093_s1 + $0x6d4] sm:$0xf0] }
  0xc0   :  { %2329 = vmatpush.bf16.msra.mxu0 %v3303_v13  ;;  %v3878_v1 = vld [vmem:[%s7093_s1 + $0x6c8] sm:$0xf]  ;;  %v4605_v7 = vld [vmem:[%s7093_s1 + $0x4b4] sm:$0xf0] }
  0xc1   :  { %2304 = vmatpush.bf16.msrb.mxu1 %v3031_v19  ;;  %v3606_v6 = vld [vmem:[%s7093_s1 + $0x4a8] sm:$0xf]  ;;  %v4637_v9 = vld [vmem:[%s7093_s1 + $0x5b4] sm:$0xf0]  ;;  %v3879_v12 = vor.u32 %v4673_v2, %v3878_v1 }
  0xc2   :  { %2342 = vmatpush.bf16.msra.mxu2 %v3431_v11  ;;  %v3734_v8 = vld [vmem:[%s7093_s1 + $0x5a8] sm:$0xf]  ;;  %v4007_v11 = vor.u32 %v4705_v62, %v4006_v61  ;;  %v4701_v26 = vld [vmem:[%s7093_s1 + $0x7b4] sm:$0xf0]  ;;  %v3607_v14 = vor.u32 %v4605_v7, %v3606_v6 }
  0xc3   :  { %2317 = vmatpush.bf16.msrb.mxu3 %v3159_v17  ;;  %v3990_v13 = vld [vmem:[%s7093_s1 + $0x7a8] sm:$0xf]  ;;  %v3735_v15 = vor.u32 %v4637_v9, %v3734_v8  ;;  %v4669_v19 = vld [vmem:[%s7093_s1 + $0x6b4] sm:$0xf0] }
  0xc4   :  { %2330 = vmatpush.bf16.msra.mxu0 %v3287_v34  ;;  %v3862_v16 = vld [vmem:[%s7093_s1 + $0x6a8] sm:$0xf]  ;;  %v4601_v18 = vld [vmem:[%s7093_s1 + $0x494] sm:$0xf0]  ;;  %v3991_v23 = vor.u32 %v4701_v26, %v3990_v13  ;;  %v2073_v29 = vpop.f32.mrf.mxu0 }
  0xc5   :  { %2305 = vmatpush.bf16.msrb.mxu1 %v3015_v38  ;;  %v3590_v17 = vld [vmem:[%s7093_s1 + $0x488] sm:$0xf]  ;;  %v4633_v22 = vld [vmem:[%s7093_s1 + $0x594] sm:$0xf0]  ;;  %v3863_v21 = vor.u32 %v4669_v19, %v3862_v16  ;;  %v2074_v35 = vadd.f32 %v2073_v29, %v6093_v24  ;;  %v2086_v36 = vpop.f32.mrf.mxu1 }
  0xc6   :  { %2343 = vmatpush.bf16.msra.mxu2 %v3415_v30  ;;  %v3718_v20 = vld [vmem:[%s7093_s1 + $0x588] sm:$0xf]  ;;  %v4697_v28 = vld [vmem:[%s7093_s1 + $0x794] sm:$0xf0]  ;;  %v3591_v30 = vor.u32 %v4601_v18, %v3590_v17 }
  0xc7   :  { %2318 = vmatpush.bf16.msrb.mxu3 %v3143_v39  ;;  %v3974_v27 = vld [vmem:[%s7093_s1 + $0x788] sm:$0xf]  ;;  %v3719_v31 = vor.u32 %v4633_v22, %v3718_v20  ;;  %v4665_v33 = vld [vmem:[%s7093_s1 + $0x694] sm:$0xf0]  ;;  %v2087_v41 = vadd.f32 %v2086_v36, %v2074_v35 }
  0xc8   :  { %2331 = vmatpush.bf16.msra.mxu0 %v3271_v57  ;;  %2306 = vmatmul.bf16.vlgmr.msrb.gmra.mxu1 %v5161_v4  ;;  %v3846_v32 = vld [vmem:[%s7093_s1 + $0x688] sm:$0xf]  ;;  %v4597_v37 = vld [vmem:[%s7093_s1 + $0x474] sm:$0xf0]  ;;  %v3975_v40 = vor.u32 %v4697_v28, %v3974_v27 }
  0xc9   :  { %2350 = vmatpush.bf16.msra.mxu1 %v3639_v46  ;;  %v3574_v34 = vld [vmem:[%s7093_s1 + $0x468] sm:$0xf]  ;;  %v4629_v39 = vld [vmem:[%s7093_s1 + $0x574] sm:$0xf0]  ;;  %v3847_v44 = vor.u32 %v4665_v33, %v3846_v32 }
  0xca   :  { %2344 = vmatpush.bf16.msra.mxu2 %v3399_v53  ;;  %2319 = vmatmul.bf16.vlgmr.msrb.gmra.mxu3 %v5163_v5  ;;  %v3702_v38 = vld [vmem:[%s7093_s1 + $0x568] sm:$0xf]  ;;  %v4693_v46 = vld [vmem:[%s7093_s1 + $0x774] sm:$0xf0] }
  0xcb   :  { %2363 = vmatpush.bf16.msra.mxu3 %v3767_v48  ;;  %2332 = vmatmul.bf16.vlgmr.msra.gmra.mxu0 %v5159_v3  ;;  %v3958_v24 = vld [vmem:[%s7093_s1 + $0x768] sm:$0xf]  ;;  %v3575_v48 = vor.u32 %v4597_v37, %v3574_v34  ;;  %v3703_v49 = vor.u32 %v4629_v39, %v3702_v38  ;;  %v4661_v51 = vld [vmem:[%s7093_s1 + $0x674] sm:$0xf0] }
  0xcc   :  { %2376 = vmatpush.bf16.msrb.mxu0 %v3895_v60  ;;  %v3830_v50 = vld [vmem:[%s7093_s1 + $0x668] sm:$0xf]  ;;  %v4593_v53 = vld [vmem:[%s7093_s1 + $0x454] sm:$0xf0]  ;;  %v2099_v56 = vpop.f32.mrf.mxu2  ;;  %v3959_v57 = vor.u32 %v4693_v46, %v3958_v24  ;;  %v2075_v7 = vpop.f32.mrf.mxu0  ;;  %v4483_v46 = vld [vmem:[%s7093_s1 + $0xec] sm:$0xf] }
  0xcd   :  { %2351 = vmatpush.bf16.msra.mxu1 %v3623_v63  ;;  %2345 = vmatmul.bf16.vlgmr.msra.gmra.mxu2 %v5171_v10  ;;  %v3558_v52 = vld [vmem:[%s7093_s1 + $0x448] sm:$0xf]  ;;  %v4625_v55 = vld [vmem:[%s7093_s1 + $0x554] sm:$0xf0]  ;;  %v3831_v59 = vor.u32 %v4661_v51, %v3830_v50  ;;  %v2112_v62 = vpop.f32.mrf.mxu3  ;;  %v2088_v13 = vpop.f32.mrf.mxu1 }
  0xce   :  { %2389 = vmatpush.bf16.msrb.mxu2 %v4023_v58  ;;  %v3686_v54 = vld [vmem:[%s7093_s1 + $0x548] sm:$0xf]  ;;  %v2100_v58 = vadd.f32 %v2099_v56, %v2087_v41  ;;  %v4689_v61 = vld [vmem:[%s7093_s1 + $0x754] sm:$0xf0]  ;;  %v3559_v63 = vor.u32 %v4593_v53, %v3558_v52  ;;  %v4511_v13 = vld [vmem:[%s7093_s1 + $0x1cc] sm:$0xf] }
  0xcf   :  { %2364 = vmatpush.bf16.msra.mxu3 %v3751_v0  ;;  %v3942_v60 = vld [vmem:[%s7093_s1 + $0x748] sm:$0xf]  ;;  %v3687_v0 = vor.u32 %v4625_v55, %v3686_v54  ;;  %v4657_v2 = vld [vmem:[%s7093_s1 + $0x654] sm:$0xf0] }
  0xd0   :  { %2377 = vmatpush.bf16.msrb.mxu0 %v3879_v12  ;;  %v3814_v1 = vld [vmem:[%s7093_s1 + $0x648] sm:$0xf]  ;;  %v6265_v8 = vadd.f32 %v2112_v62, %v2100_v58  ;;  %v4589_v9 = vld [vmem:[%s7093_s1 + $0x434] sm:$0xf0]  ;;  %v3943_v26 = vor.u32 %v4689_v61, %v3942_v60  ;;  %v4515_v58 = vld [vmem:[%s7093_s1 + $0x1ec] sm:$0xf] }
  0xd1   :  { %2352 = vmatpush.bf16.msra.mxu1 %v3607_v14  ;;  %v3542_v6 = vld [vmem:[%s7093_s1 + $0x428] sm:$0xf]  ;;  %v4621_v12 = vld [vmem:[%s7093_s1 + $0x534] sm:$0xf0]  ;;  %v3815_v14 = vor.u32 %v4657_v2, %v3814_v1  ;;  %v4479_v62 = vld [vmem:[%s7093_s1 + $0xcc] sm:$0xf] }
  0xd2   :  { %2390 = vmatpush.bf16.msrb.mxu2 %v4007_v11  ;;  %v3670_v11 = vld [vmem:[%s7093_s1 + $0x528] sm:$0xf]  ;;  %v4685_v19 = vld [vmem:[%s7093_s1 + $0x734] sm:$0xf0]  ;;  %v3543_v17 = vor.u32 %v4589_v9, %v3542_v6 }
  0xd3   :  { %2365 = vmatpush.bf16.msra.mxu3 %v3735_v15  ;;  %v3798_v15 = vld [vmem:[%s7093_s1 + $0x628] sm:$0xf]  ;;  %v3671_v18 = vor.u32 %v4621_v12, %v3670_v11  ;;  %v4653_v20 = vld [vmem:[%s7093_s1 + $0x634] sm:$0xf0] }
  0xd4   :  { %2378 = vmatpush.bf16.msrb.mxu0 %v3863_v21  ;;  %v3926_v16 = vld [vmem:[%s7093_s1 + $0x728] sm:$0xf]  ;;  %v4617_v27 = vld [vmem:[%s7093_s1 + $0x514] sm:$0xf0]  ;;  %v2101_v29 = vpop.f32.mrf.mxu2  ;;  %v3799_v34 = vor.u32 %v4653_v20, %v3798_v15 }
  0xd5   :  { %2353 = vmatpush.bf16.msra.mxu1 %v3591_v30  ;;  %v3526_v22 = vld [vmem:[%s7093_s1 + $0x408] sm:$0xf]  ;;  %v3927_v30 = vor.u32 %v4685_v19, %v3926_v16  ;;  %v4773_v33 = vld [vmem:[%s7093_s1 + $0x9f4] sm:$0xf0]  ;;  %v2114_v41 = vpop.f32.mrf.mxu3  ;;  %v4475_v16 = vld [vmem:[%s7093_s1 + $0xac] sm:$0xf] }
  0xd6   :  { %2391 = vmatpush.bf16.msrb.mxu2 %v3991_v23  ;;  %v4585_v23 = vld [vmem:[%s7093_s1 + $0x414] sm:$0xf0]  ;;  %v3654_v21 = vld [vmem:[%s7093_s1 + $0x508] sm:$0xf]  ;;  %v3096_v19 = vld [vmem:[%s7093_s1 + $0xb8] sm:$0xf0] }
  0xd7   :  { %2366 = vmatpush.bf16.msra.mxu3 %v3719_v31  ;;  %v4150_v28 = vld [vmem:[%s7093_s1 + $0x8e8] sm:$0xf]  ;;  %v4741_v31 = vld [vmem:[%s7093_s1 + $0x8f4] sm:$0xf0]  ;;  %v3527_v37 = vor.u32 %v4585_v23, %v3526_v22  ;;  %v3655_v38 = vor.u32 %v4617_v27, %v3654_v21  ;;  %v3099_v21 = vor.u32 %v4475_v16, %v3096_v19  ;;  %v4507_v27 = vld [vmem:[%s7093_s1 + $0x1ac] sm:$0xf] }
  0xd8   :  { %2379 = vmatpush.bf16.msrb.mxu0 %v3847_v44  ;;  %v4278_v32 = vld [vmem:[%s7093_s1 + $0x9e8] sm:$0xf]  ;;  %v4681_v36 = vld [vmem:[%s7093_s1 + $0x714] sm:$0xf0]  ;;  %v4151_v44 = vor.u32 %v4741_v31, %v4150_v28  ;;  %v3224_v28 = vld [vmem:[%s7093_s1 + $0x1b8] sm:$0xf0] }
  0xd9   :  { %2354 = vmatpush.bf16.msra.mxu1 %v3575_v48  ;;  %v3910_v35 = vld [vmem:[%s7093_s1 + $0x708] sm:$0xf]  ;;  %v4279_v24 = vor.u32 %v4773_v33, %v4278_v32  ;;  %v3128_v48 = vld [vmem:[%s7093_s1 + $0xf8] sm:$0xf0]  ;;  %v4737_v51 = vld [vmem:[%s7093_s1 + $0x8d4] sm:$0xf0]  ;;  %v3227_v41 = vor.u32 %v4507_v27, %v3224_v28 }
  0xda   :  { %2392 = vmatpush.bf16.msrb.mxu2 %v3975_v40  ;;  %v3782_v39 = vld [vmem:[%s7093_s1 + $0x608] sm:$0xf]  ;;  %v4649_v40 = vld [vmem:[%s7093_s1 + $0x614] sm:$0xf0]  ;;  %v3911_v50 = vor.u32 %v4681_v36, %v3910_v35  ;;  %v4471_v31 = vld [vmem:[%s7093_s1 + $0x8c] sm:$0xf] }
  0xdb   :  { %2367 = vmatpush.bf16.msra.mxu3 %v3703_v49  ;;  %v4134_v49 = vld [vmem:[%s7093_s1 + $0x8c8] sm:$0xf]  ;;  %v4769_v53 = vld [vmem:[%s7093_s1 + $0x9d4] sm:$0xf0]  ;;  %v3783_v56 = vor.u32 %v4649_v40, %v3782_v39  ;;  %v3080_v32 = vld [vmem:[%s7093_s1 + $0x98] sm:$0xf0] }
  0xdc   :  { %2380 = vmatpush.bf16.msrb.mxu0 %v3831_v59  ;;  %v4262_v52 = vld [vmem:[%s7093_s1 + $0x9c8] sm:$0xf]  ;;  %v4777_v55 = vld [vmem:[%s7093_s1 + $0xa14] sm:$0xf0]  ;;  %v3256_v59 = vld [vmem:[%s7093_s1 + $0x1f8] sm:$0xf0]  ;;  %v4135_v60 = vor.u32 %v4737_v51, %v4134_v49  ;;  %v2151_v9 = vpop.f32.mrf.mxu2 }
  0xdd   :  { %2355 = vmatpush.bf16.msra.mxu1 %v3559_v63  ;;  %v4294_v54 = vld [vmem:[%s7093_s1 + $0xa08] sm:$0xf]  ;;  %v4263_v61 = vor.u32 %v4769_v53, %v4262_v52  ;;  %v3112_v63 = vld [vmem:[%s7093_s1 + $0xd8] sm:$0xf0]  ;;  %v4733_v2 = vld [vmem:[%s7093_s1 + $0x8b4] sm:$0xf0]  ;;  %v3259_v11 = vor.u32 %v4515_v58, %v3256_v59 }
  0xde   :  { %2393 = vmatpush.bf16.msrb.mxu2 %v3959_v57  ;;  %v3131_v57 = vor.u32 %v4483_v46, %v3128_v48  ;;  %v4295_v1 = vor.u32 %v4777_v55, %v4294_v54  ;;  %v4246_v6 = vld [vmem:[%s7093_s1 + $0x9a8] sm:$0xf]  ;;  %v4765_v7 = vld [vmem:[%s7093_s1 + $0x9b4] sm:$0xf0]  ;;  %v3115_v12 = vor.u32 %v4479_v62, %v3112_v63  ;;  %v3208_v46 = vld [vmem:[%s7093_s1 + $0x198] sm:$0xf0] }
  0xdf   :  { %2368 = vmatpush.bf16.msra.mxu3 %v3687_v0  ;;  %v4118_v0 = vld [vmem:[%s7093_s1 + $0x8a8] sm:$0xf]  ;;  %v4247_v15 = vor.u32 %v4765_v7, %v4246_v6  ;;  %v4761_v22 = vld [vmem:[%s7093_s1 + $0x994] sm:$0xf0]  ;;  %v3064_v51 = vld [vmem:[%s7093_s1 + $0x78] sm:$0xf0] }
  0xe0   :  { %2381 = vmatpush.bf16.msrb.mxu0 %v3815_v14  ;;  %v4119_v14 = vor.u32 %v4733_v2, %v4118_v0  ;;  %v4230_v20 = vld [vmem:[%s7093_s1 + $0x988] sm:$0xf]  ;;  %v4725_v35 = vld [vmem:[%s7093_s1 + $0x874] sm:$0xf0]  ;;  %v3048_v0 = vld [vmem:[%s7093_s1 + $0x58] sm:$0xf0] }
  0xe1   :  { %2356 = vmatpush.bf16.msra.mxu1 %v3543_v17  ;;  %v4102_v17 = vld [vmem:[%s7093_s1 + $0x888] sm:$0xf]  ;;  %v4721_v53 = vld [vmem:[%s7093_s1 + $0x854] sm:$0xf0]  ;;  %v3176_v16 = vld [vmem:[%s7093_s1 + $0x158] sm:$0xf0] }
  0xe2   :  { %2394 = vmatpush.bf16.msrb.mxu2 %v3943_v26  ;;  %v3240_v26 = vld [vmem:[%s7093_s1 + $0x1d8] sm:$0xf0]  ;;  %v4086_v33 = vld [vmem:[%s7093_s1 + $0x868] sm:$0xf]  ;;  %v4753_v55 = vld [vmem:[%s7093_s1 + $0x954] sm:$0xf0] }
  0xe3   :  { %2369 = vmatpush.bf16.msra.mxu3 %v3671_v18  ;;  %v4729_v18 = vld [vmem:[%s7093_s1 + $0x894] sm:$0xf0]  ;;  %v3243_v23 = vor.u32 %v4511_v13, %v3240_v26  ;;  %v4214_v36 = vld [vmem:[%s7093_s1 + $0x968] sm:$0xf]  ;;  %v4087_v49 = vor.u32 %v4725_v35, %v4086_v33  ;;  %v4459_v19 = vld [vmem:[%s7093_s1 + $0x2c] sm:$0xf] }
  0xe4   :  { %2382 = vmatpush.bf16.msrb.mxu0 %v3799_v34  ;;  %v4103_v29 = vor.u32 %v4729_v18, %v4102_v17  ;;  %v2125_v34 = vpop.f32.mrf.mxu0  ;;  %v4070_v52 = vld [vmem:[%s7093_s1 + $0x848] sm:$0xf]  ;;  %v4717_v2 = vld [vmem:[%s7093_s1 + $0x834] sm:$0xf0]  ;;  %v3512_v33 = vld [vmem:[%s7093_s1 + $0x3f8] sm:$0xf0] }
  0xe5   :  { %2357 = vmatpush.bf16.msra.mxu1 %v3527_v37  ;;  %v4757_v37 = vld [vmem:[%s7093_s1 + $0x974] sm:$0xf0]  ;;  %v2126_v39 = vadd.f32 %v2125_v34, %v6265_v8  ;;  %v2138_v40 = vpop.f32.mrf.mxu1  ;;  %v4467_v8 = vld [vmem:[%s7093_s1 + $0x6c] sm:$0xf]  ;;  %v4198_v54 = vld [vmem:[%s7093_s1 + $0x948] sm:$0xf]  ;;  %v4071_v62 = vor.u32 %v4721_v53, %v4070_v52 }
  0xe6   :  { %2395 = vmatpush.bf16.msrb.mxu2 %v3927_v30  ;;  %v4231_v30 = vor.u32 %v4761_v22, %v4230_v20  ;;  %v3067_v59 = vor.u32 %v4467_v8, %v3064_v51  ;;  %v4199_v63 = vor.u32 %v4753_v55, %v4198_v54  ;;  %v4182_v6 = vld [vmem:[%s7093_s1 + $0x928] sm:$0xf]  ;;  %v4749_v7 = vld [vmem:[%s7093_s1 + $0x934] sm:$0xf0]  ;;  %v3032_v22 = vld [vmem:[%s7093_s1 + $0x38] sm:$0xf0] }
  0xe7   :  { %2370 = vmatpush.bf16.msra.mxu3 %v3655_v38  ;;  %v2153_v38 = vpop.f32.mrf.mxu2  ;;  %v2139_v48 = vadd.f32 %v2138_v40, %v2126_v39  ;;  %v4183_v20 = vor.u32 %v4749_v7, %v4182_v6  ;;  %v4166_v28 = vld [vmem:[%s7093_s1 + $0x908] sm:$0xf]  ;;  %v6514_v34 = vld [vmem:[#allocation1 + $0x12] sm:$0xff]  ;;  %v4491_v39 = vld [vmem:[%s7093_s1 + $0x12c] sm:$0xf] }
  0xe8   :  { %2358 = vmatmul.bf16.vlgmr.msra.gmra.mxu1 %v5243_v42  ;;  %2383 = vmatpush.bf16.msrb.mxu0 %v3783_v56  ;;  %v3160_v40 = vld [vmem:[%s7093_s1 + $0x138] sm:$0xf0]  ;;  %v4543_v8 = vld [vmem:[%s7093_s1 + $0x2cc] sm:$0xf]  ;;  %v6572_v7 = vld [vmem:[#allocation1] sm:$0xff] }
  0xe9   :  { %2402 = vmatpush.bf16.msrb.mxu1 %v4151_v44  ;;  %v3083_v44 = vor.u32 %v4471_v31, %v3080_v32  ;;  %v6449_v56 = vadd.f32 %v2151_v9, %v2139_v48  ;;  %v3384_v31 = vld [vmem:[%s7093_s1 + $0x2f8] sm:$0xf0]  ;;  %v4579_v32 = vld [vmem:[%s7093_s1 + $0x3ec] sm:$0xf]  ;;  %v3163_v52 = vor.u32 %v4491_v39, %v3160_v40 }
  0xea   :  { %2396 = vmatpush.bf16.msrb.mxu2 %v3911_v50  ;;  %2371 = vmatmul.bf16.vlgmr.msra.gmra.mxu3 %v5247_v45  ;;  %v4215_v50 = vor.u32 %v4757_v37, %v4214_v36  ;;  %v3035_v36 = vor.u32 %v4459_v19, %v3032_v22  ;;  %v4611_v48 = vld [vmem:[%s7093_s1 + $0x4ec] sm:$0xf]  ;;  %v3368_v51 = vld [vmem:[%s7093_s1 + $0x2d8] sm:$0xf0] }
  0xeb   :  { %2415 = vmatpush.bf16.msrb.mxu3 %v4279_v24  ;;  %2384 = vmatmul.bf16.vlgmr.msrb.gmra.mxu0 %v5245_v43  ;;  %v4503_v24 = vld [vmem:[%s7093_s1 + $0x18c] sm:$0xf]  ;;  %v3496_v54 = vld [vmem:[%s7093_s1 + $0x3d8] sm:$0xf0] }
  0xec   :  { %2435 = vmatpush.bf16.msra.mxu0 %v4295_v1  ;;  %v3211_v58 = vor.u32 %v4503_v24, %v3208_v46  ;;  %v4054_v1 = vld [vmem:[%s7093_s1 + $0x828] sm:$0xf]  ;;  %v4455_v24 = vld [vmem:[%s7093_s1 + $0xc] sm:$0xf]  ;;  %v3016_v46 = vld [vmem:[%s7093_s1 + $0x18] sm:$0xf0] }
  0xed   :  { %2403 = vmatpush.bf16.msrb.mxu1 %v4135_v60  ;;  %2397 = vmatmul.bf16.vlgmr.msrb.gmra.mxu2 %v5252_v47  ;;  %v4499_v60 = vld [vmem:[%s7093_s1 + $0x16c] sm:$0xf]  ;;  %v2164_v9 = vpop.f32.mrf.mxu3  ;;  %v4055_v18 = vor.u32 %v4717_v2, %v4054_v1  ;;  %v3624_v1 = vld [vmem:[%s7093_s1 + $0x4d8] sm:$0xf0] }
  0xee   :  { %2441 = vmatpush.bf16.msra.mxu2 %v3131_v57  ;;  %v357_v57 = vperm.slane %v5998_v25, 1  ;;  %v4463_v25 = vld [vmem:[%s7093_s1 + $0x4c] sm:$0xf]  ;;  %v3352_v6 = vld [vmem:[%s7093_s1 + $0x2b8] sm:$0xf0] }
  0xef   :  { %2416 = vmatpush.bf16.msrb.mxu3 %v4263_v61  ;;  %v3192_v61 = vld [vmem:[%s7093_s1 + $0x178] sm:$0xf0]  ;;  %v4575_v53 = vld [vmem:[%s7093_s1 + $0x3cc] sm:$0xf] }
  0xf0   :  { %2454 = vmatpush.bf16.msrb.mxu0 %v3259_v11  ;;  %v2127_v11 = vpop.f32.mrf.mxu0  ;;  %v2165_v13 = vadd.f32 %v2164_v9, %v357_v57  ;;  %v3195_v26 = vor.u32 %v4499_v60, %v3192_v61  ;;  %v2177_v17 = vpop.f32.mrf.mxu2  ;;  %v3019_v57 = vor.u32 %v4455_v24, %v3016_v46  ;;  %v3371_v61 = vor.u32 %v4543_v8, %v3368_v51  ;;  %v4539_v2 = vld [vmem:[%s7093_s1 + $0x2ac] sm:$0xf]  ;;  %v3752_v19 = vld [vmem:[%s7093_s1 + $0x5d8] sm:$0xf0] }
  0xf1   :  { %2404 = vmatpush.bf16.msrb.mxu1 %v4119_v14  ;;  %v3051_v14 = vor.u32 %v4463_v25, %v3048_v0  ;;  %v4607_v25 = vld [vmem:[%s7093_s1 + $0x4cc] sm:$0xf]  ;;  %v3499_v0 = vor.u32 %v4575_v53, %v3496_v54  ;;  %v3448_v40 = vld [vmem:[%s7093_s1 + $0x378] sm:$0xf0] }
  0xf2   :  { %2442 = vmatpush.bf16.msra.mxu2 %v3115_v12  ;;  %v2140_v12 = vpop.f32.mrf.mxu1  ;;  %v6494_v27 = vadd.f32 %v2177_v17, %v2165_v13  ;;  %v4571_v11 = vld [vmem:[%s7093_s1 + $0x3ac] sm:$0xf]  ;;  %v3576_v51 = vld [vmem:[%s7093_s1 + $0x478] sm:$0xf0] }
  0xf3   :  { %2417 = vmatpush.bf16.msrb.mxu3 %v4247_v15  ;;  %v4495_v15 = vld [vmem:[%s7093_s1 + $0x14c] sm:$0xf]  ;;  %v3480_v12 = vld [vmem:[%s7093_s1 + $0x3b8] sm:$0xf0] }
  0xf4   :  { %2455 = vmatpush.bf16.msrb.mxu0 %v3243_v23  ;;  %v4038_v23 = vld [vmem:[%s7093_s1 + $0x808] sm:$0xf]  ;;  %v3179_v35 = vor.u32 %v4495_v15, %v3176_v16  ;;  %v3355_v15 = vor.u32 %v4539_v2, %v3352_v6  ;;  %v4639_v16 = vld [vmem:[%s7093_s1 + $0x5cc] sm:$0xf]  ;;  %v3304_v53 = vld [vmem:[%s7093_s1 + $0x258] sm:$0xf0] }
  0xf5   :  { %2405 = vmatpush.bf16.msrb.mxu1 %v4103_v29  ;;  %v4745_v29 = vld [vmem:[%s7093_s1 + $0x914] sm:$0xf0]  ;;  %v6581_v13 = vld [vmem:[#allocation1 + $0x9] sm:$0xff]  ;;  %v3288_v2 = vld [vmem:[%s7093_s1 + $0x238] sm:$0xf0] }
  0xf6   :  { %2443 = vmatpush.bf16.msra.mxu2 %v3099_v21  ;;  %v4713_v21 = vld [vmem:[%s7093_s1 + $0x814] sm:$0xf0]  ;;  %v4167_v38 = vor.u32 %v4745_v29, %v4166_v28  ;;  %v4603_v17 = vld [vmem:[%s7093_s1 + $0x4ac] sm:$0xf]  ;;  %v3464_v28 = vld [vmem:[%s7093_s1 + $0x398] sm:$0xf0]  ;;  %v3755_v29 = vor.u32 %v4639_v16, %v3752_v19 }
  0xf7   :  { %2418 = vmatpush.bf16.msrb.mxu3 %v4231_v30  ;;  %v4547_v30 = vld [vmem:[%s7093_s1 + $0x2ec] sm:$0xf]  ;;  %v4039_v37 = vor.u32 %v4713_v21, %v4038_v23  ;;  %v3336_v23 = vld [vmem:[%s7093_s1 + $0x298] sm:$0xf0] }
  0xf8   :  { %2456 = vmatpush.bf16.msrb.mxu0 %v3227_v41  ;;  %v3387_v41 = vor.u32 %v4547_v30, %v3384_v31  ;;  %v2179_v55 = vpop.f32.mrf.mxu2  ;;  %v4535_v22 = vld [vmem:[%s7093_s1 + $0x28c] sm:$0xf]  ;;  %v3688_v19 = vld [vmem:[%s7093_s1 + $0x558] sm:$0xf0] }
  0xf9   :  { %2406 = vmatpush.bf16.msrb.mxu1 %v4087_v49  ;;  %v2166_v49 = vpop.f32.mrf.mxu3  ;;  %v4567_v21 = vld [vmem:[%s7093_s1 + $0x38c] sm:$0xf]  ;;  %v3339_v31 = vor.u32 %v4535_v22, %v3336_v23  ;;  %v3432_v55 = vld [vmem:[%s7093_s1 + $0x358] sm:$0xf0] }
  0xfa   :  { %2444 = vmatpush.bf16.msra.mxu2 %v3083_v44  ;;  %v3515_v44 = vor.u32 %v4579_v32, %v3512_v33  ;;  %v4635_v32 = vld [vmem:[%s7093_s1 + $0x5ac] sm:$0xf]  ;;  %v3736_v33 = vld [vmem:[%s7093_s1 + $0x5b8] sm:$0xf0] }
  0xfb   :  { %2419 = vmatpush.bf16.msrb.mxu3 %v4215_v50  ;;  %4302 = vmatmul.msk.bf16.vlgmr.msra.gmra.mxu0 %vm2009_vm0, %v6514_v34  ;;  %v3640_v50 = vld [vmem:[%s7093_s1 + $0x4f8] sm:$0xf0]  ;;  %v4563_v39 = vld [vmem:[%s7093_s1 + $0x36c] sm:$0xf] }
  0xfc   :  { %2457 = vmatpush.bf16.msrb.mxu0 %v3211_v58  ;;  %v4487_v58 = vld [vmem:[%s7093_s1 + $0x10c] sm:$0xf]  ;;  %v3643_v60 = vor.u32 %v4611_v48, %v3640_v50  ;;  %v3720_v49 = vld [vmem:[%s7093_s1 + $0x598] sm:$0xf0]  ;;  %v3451_v8 = vor.u32 %v4563_v39, %v3448_v40 }
  0xfd   :  { %2407 = vmatpush.bf16.msrb.mxu1 %v4071_v62  ;;  %v4643_v62 = vld [vmem:[%s7093_s1 + $0x5ec] sm:$0xf] }
  0xfe   :  { %2445 = vmatpush.bf16.msra.mxu2 %v3067_v59  ;;  %v3144_v59 = vld [vmem:[%s7093_s1 + $0x118] sm:$0xf0]  ;;  %v4595_v50 = vld [vmem:[%s7093_s1 + $0x46c] sm:$0xf] }
  0xff   :  { %2420 = vmatpush.bf16.msrb.mxu3 %v4199_v63  ;;  %v3768_v63 = vld [vmem:[%s7093_s1 + $0x5f8] sm:$0xf0]  ;;  %v3147_v9 = vor.u32 %v4487_v58, %v3144_v59  ;;  %v4559_v54 = vld [vmem:[%s7093_s1 + $0x34c] sm:$0xf]  ;;  %v3579_v58 = vor.u32 %v4595_v50, %v3576_v51 }
 0x100   :  { %2458 = vmatpush.bf16.msrb.mxu0 %v3195_v26  ;;  %v3771_v26 = vor.u32 %v4643_v62, %v3768_v63  ;;  %v4591_v62 = vld [vmem:[%s7093_s1 + $0x44c] sm:$0xf]  ;;  %v4152_v50 = vld [vmem:[%s7093_s1 + $0x8f8] sm:$0xf0] }
 0x101   :  { %2408 = vmatpush.bf16.msrb.mxu1 %v4055_v18  ;;  %v3483_v18 = vor.u32 %v4571_v11, %v3480_v12  ;;  %v4555_v6 = vld [vmem:[%s7093_s1 + $0x32c] sm:$0xf]  ;;  %v3880_v51 = vld [vmem:[%s7093_s1 + $0x6d8] sm:$0xf0] }
 0x102   :  { %2446 = vmatpush.bf16.msra.mxu2 %v3051_v14  ;;  %v3627_v14 = vor.u32 %v4607_v25, %v3624_v1  ;;  %v3435_v25 = vor.u32 %v4559_v54, %v3432_v55  ;;  %v4523_v1 = vld [vmem:[%s7093_s1 + $0x22c] sm:$0xf]  ;;  %v4008_v54 = vld [vmem:[%s7093_s1 + $0x7d8] sm:$0xf0] }
 0x103   :  { %2421 = vmatpush.bf16.msrb.mxu3 %v4183_v20  ;;  %v3608_v20 = vld [vmem:[%s7093_s1 + $0x4b8] sm:$0xf0]  ;;  %v4623_v12 = vld [vmem:[%s7093_s1 + $0x54c] sm:$0xf]  ;;  %v3291_v16 = vor.u32 %v4523_v1, %v3288_v2 }
 0x104   :  { %2459 = vmatpush.bf16.msrb.mxu0 %v3179_v35  ;;  %v3611_v30 = vor.u32 %v4603_v17, %v3608_v20  ;;  %v4599_v35 = vld [vmem:[%s7093_s1 + $0x48c] sm:$0xf]  ;;  %v4136_v2 = vld [vmem:[%s7093_s1 + $0x8d8] sm:$0xf0] }
 0x105   :  { %2409 = vmatpush.bf16.msrb.mxu1 %v4039_v37  ;;  %v4531_v37 = vld [vmem:[%s7093_s1 + $0x26c] sm:$0xf]  ;;  %v6636_v24 = vpop.f32.mrf.mxu1 }
 0x106   :  { %2447 = vmatpush.bf16.msra.mxu2 %v3035_v36  ;;  %v3592_v36 = vld [vmem:[%s7093_s1 + $0x498] sm:$0xf0]  ;;  %v4587_v17 = vld [vmem:[%s7093_s1 + $0x42c] sm:$0xf] }
 0x107   :  { %2422 = vmatpush.bf16.msrb.mxu3 %v4167_v38  ;;  %v3320_v38 = vld [vmem:[%s7093_s1 + $0x278] sm:$0xf0]  ;;  %v3595_v46 = vor.u32 %v4599_v35, %v3592_v36  ;;  %v4519_v23 = vld [vmem:[%s7093_s1 + $0x20c] sm:$0xf] }
 0x108   :  { %2460 = vmatpush.bf16.msrb.mxu0 %v3163_v52  ;;  %2410 = vmatmul.bf16.vlgmr.msrb.gmra.mxu1 %v6572_v7  ;;  %v3323_v48 = vor.u32 %v4531_v37, %v3320_v38  ;;  %v4527_v52 = vld [vmem:[%s7093_s1 + $0x24c] sm:$0xf]  ;;  %v4024_v35 = vld [vmem:[%s7093_s1 + $0x7f8] sm:$0xf0] }
 0x109   :  { %2467 = vmatpush.bf16.msra.mxu1 %v3387_v41  ;;  %v3739_v41 = vor.u32 %v4635_v32, %v3736_v33  ;;  %v3307_v59 = vor.u32 %v4527_v52, %v3304_v53  ;;  %v3691_v32 = vor.u32 %v4623_v12, %v3688_v19  ;;  %v4707_v33 = vld [vmem:[%s7093_s1 + $0x7ec] sm:$0xf]  ;;  %v3672_v38 = vld [vmem:[%s7093_s1 + $0x538] sm:$0xf0] }
 0x10a   :  { %2423 = vmatmul.bf16.vlgmr.msrb.gmra.mxu3 %v6581_v13  ;;  %2448 = vmatpush.bf16.msra.mxu2 %v3019_v57  ;;  %v4619_v37 = vld [vmem:[%s7093_s1 + $0x52c] sm:$0xf] }
 0x10b   :  { %2480 = vmatpush.bf16.msra.mxu3 %v3515_v44  ;;  %v6634_v44 = vpop.f32.mrf.mxu0  ;;  %v3675_v52 = vor.u32 %v4619_v37, %v3672_v38  ;;  %v4703_v53 = vld [vmem:[%s7093_s1 + $0x7cc] sm:$0xf]  ;;  %v3832_v37 = vld [vmem:[%s7093_s1 + $0x678] sm:$0xf0] }
 0x10c   :  { %2461 = vmatpush.bf16.msrb.mxu0 %v3147_v9  ;;  %v3416_v9 = vld [vmem:[%s7093_s1 + $0x338] sm:$0xf0]  ;;  %v4011_v1 = vor.u32 %v4703_v53, %v4008_v54  ;;  %v4699_v12 = vld [vmem:[%s7093_s1 + $0x7ac] sm:$0xf] }
 0x10d   :  { %2468 = vmatpush.bf16.msra.mxu1 %v3371_v61  ;;  %2449 = vmatmul.bf16.vlgmr.msra.gmra.mxu2 %v5161_v4  ;;  %v3467_v4 = vor.u32 %v4567_v21, %v3464_v28  ;;  %v3704_v61 = vld [vmem:[%s7093_s1 + $0x578] sm:$0xf0]  ;;  %v6671_v63 = vpop.f32.mrf.mxu3  ;;  %v2205_v20 = vpop.f32.mrf.mxu1  ;;  %v3419_v22 = vor.u32 %v4555_v6, %v3416_v9  ;;  %v4551_v28 = vld [vmem:[%s7093_s1 + $0x30c] sm:$0xf] }
 0x10e   :  { %2493 = vmatpush.bf16.msrb.mxu2 %v3643_v60  ;;  %v4627_v60 = vld [vmem:[%s7093_s1 + $0x56c] sm:$0xf]  ;;  %v3272_v21 = vld [vmem:[%s7093_s1 + $0x218] sm:$0xf0] }
 0x10f   :  { %2481 = vmatpush.bf16.msra.mxu3 %v3499_v0  ;;  %2462 = vmatmul.bf16.vlgmr.msrb.gmra.mxu0 %v5163_v5  ;;  %v4631_v5 = vld [vmem:[%s7093_s1 + $0x58c] sm:$0xf]  ;;  %v3560_v0 = vld [vmem:[%s7093_s1 + $0x458] sm:$0xf0]  ;;  %v3707_v11 = vor.u32 %v4627_v60, %v3704_v61  ;;  %v3275_v36 = vor.u32 %v4519_v23, %v3272_v21 }
 0x110   :  { %2506 = vmatpush.bf16.msra.mxu0 %v3771_v26  ;;  %v3723_v57 = vor.u32 %v4631_v5, %v3720_v49  ;;  %v6691_v26 = vpop.f32.mrf.mxu2  ;;  %v4739_v5 = vld [vmem:[%s7093_s1 + $0x8ec] sm:$0xf]  ;;  %v4027_v49 = vor.u32 %v4707_v33, %v4024_v35  ;;  %v3864_v9 = vld [vmem:[%s7093_s1 + $0x6b8] sm:$0xf0] }
 0x111   :  { %2469 = vmatpush.bf16.msra.mxu1 %v3355_v15  ;;  %v3563_v15 = vor.u32 %v4591_v62, %v3560_v0  ;;  %v4155_v60 = vor.u32 %v4739_v5, %v4152_v50  ;;  %v4771_v62 = vld [vmem:[%s7093_s1 + $0x9ec] sm:$0xf]  ;;  %v3848_v23 = vld [vmem:[%s7093_s1 + $0x698] sm:$0xf0] }
 0x112   :  { %2494 = vmatpush.bf16.msrb.mxu2 %v3627_v14  ;;  %v4735_v0 = vld [vmem:[%s7093_s1 + $0x8cc] sm:$0xf]  ;;  %v4248_v33 = vld [vmem:[%s7093_s1 + $0x9b8] sm:$0xf0] }
 0x113   :  { %2482 = vmatpush.bf16.msra.mxu3 %v3483_v18  ;;  %v2192_v14 = vpop.f32.mrf.mxu0  ;;  %v3544_v18 = vld [vmem:[%s7093_s1 + $0x438] sm:$0xf0]  ;;  %v4667_v6 = vld [vmem:[%s7093_s1 + $0x6ac] sm:$0xf] }
 0x114   :  { %2507 = vmatpush.bf16.msra.mxu0 %v3755_v29  ;;  %v3400_v29 = vld [vmem:[%s7093_s1 + $0x318] sm:$0xf0]  ;;  %v3867_v19 = vor.u32 %v4667_v6, %v3864_v9  ;;  %v4695_v21 = vld [vmem:[%s7093_s1 + $0x78c] sm:$0xf] }
 0x115   :  { %2470 = vmatpush.bf16.msra.mxu1 %v3339_v31  ;;  %v3896_v31 = vld [vmem:[%s7093_s1 + $0x6f8] sm:$0xf0]  ;;  %v2218_v39 = vpop.f32.mrf.mxu3  ;;  %v3403_v40 = vor.u32 %v4551_v28, %v3400_v29  ;;  %v4727_v35 = vld [vmem:[%s7093_s1 + $0x88c] sm:$0xf] }
 0x116   :  { %2495 = vmatpush.bf16.msrb.mxu2 %v3611_v30  ;;  %v4675_v30 = vld [vmem:[%s7093_s1 + $0x6ec] sm:$0xf]  ;;  %v3992_v14 = vld [vmem:[%s7093_s1 + $0x7b8] sm:$0xf0] }
 0x117   :  { %2483 = vmatpush.bf16.msra.mxu3 %v3467_v4  ;;  %v3547_v4 = vor.u32 %v4587_v17, %v3544_v18  ;;  %v4264_v17 = vld [vmem:[%s7093_s1 + $0x9d8] sm:$0xf0]  ;;  %v4731_v18 = vld [vmem:[%s7093_s1 + $0x8ac] sm:$0xf]  ;;  %v3995_v20 = vor.u32 %v4699_v12, %v3992_v14 }
 0x118   :  { %2508 = vmatpush.bf16.msra.mxu0 %v3739_v41  ;;  %v3899_v41 = vor.u32 %v4675_v30, %v3896_v31  ;;  %v2231_v55 = vpop.f32.mrf.mxu2  ;;  %v3976_v28 = vld [vmem:[%s7093_s1 + $0x798] sm:$0xf0]  ;;  %v4691_v39 = vld [vmem:[%s7093_s1 + $0x76c] sm:$0xf] }
 0x119   :  { %2471 = vmatpush.bf16.msra.mxu1 %v3323_v48  ;;  %v3528_v48 = vld [vmem:[%s7093_s1 + $0x418] sm:$0xf0]  ;;  %v4723_v50 = vld [vmem:[%s7093_s1 + $0x86c] sm:$0xf] }
 0x11a   :  { %2496 = vmatpush.bf16.msrb.mxu2 %v3595_v46  ;;  %v4583_v46 = vld [vmem:[%s7093_s1 + $0x40c] sm:$0xf]  ;;  %v3816_v53 = vld [vmem:[%s7093_s1 + $0x658] sm:$0xf0] }
 0x11b   :  { %2484 = vmatpush.bf16.msra.mxu3 %v3451_v8  ;;  %v4671_v8 = vld [vmem:[%s7093_s1 + $0x6cc] sm:$0xf]  ;;  %v3944_v55 = vld [vmem:[%s7093_s1 + $0x758] sm:$0xf0] }
 0x11c   :  { %2509 = vmatpush.bf16.msra.mxu0 %v3723_v57  ;;  %v3531_v57 = vor.u32 %v4583_v46, %v3528_v48  ;;  %v3883_v61 = vor.u32 %v4671_v8, %v3880_v51  ;;  %v4088_v51 = vld [vmem:[%s7093_s1 + $0x878] sm:$0xf0]  ;;  %v4687_v54 = vld [vmem:[%s7093_s1 + $0x74c] sm:$0xf] }
 0x11d   :  { %2472 = vmatpush.bf16.msra.mxu1 %v3307_v59  ;;  %v3656_v59 = vld [vmem:[%s7093_s1 + $0x518] sm:$0xf0] }
 0x11e   :  { %2497 = vmatpush.bf16.msrb.mxu2 %v3579_v58  ;;  %v4615_v58 = vld [vmem:[%s7093_s1 + $0x50c] sm:$0xf]  ;;  %v3800_v6 = vld [vmem:[%s7093_s1 + $0x638] sm:$0xf0] }
 0x11f   :  { %2485 = vmatpush.bf16.msra.mxu3 %v3435_v25  ;;  %v4280_v25 = vld [vmem:[%s7093_s1 + $0x9f8] sm:$0xf0] }
 0x120   :  { %2510 = vmatpush.bf16.msra.mxu0 %v3707_v11  ;;  %v3659_v11 = vor.u32 %v4615_v58, %v3656_v59  ;;  %v4091_v58 = vor.u32 %v4723_v50, %v4088_v51  ;;  %v3928_v12 = vld [vmem:[%s7093_s1 + $0x738] sm:$0xf0] }
 0x121   :  { %2473 = vmatpush.bf16.msra.mxu1 %v3291_v16  ;;  %v4139_v16 = vor.u32 %v4735_v0, %v4136_v2  ;;  %v3947_v0 = vor.u32 %v4687_v54, %v3944_v55  ;;  %v4651_v2 = vld [vmem:[%s7093_s1 + $0x62c] sm:$0xf]  ;;  %v4168_v51 = vld [vmem:[%s7093_s1 + $0x918] sm:$0xf0]  ;;  %v4792_v55 = vld [vmem:[%s7095_s3 + $0x70] sm:$0xff] }
 0x122   :  { %2498 = vmatpush.bf16.msrb.mxu2 %v3563_v15  ;;  %v4283_v15 = vor.u32 %v4771_v62, %v4280_v25  ;;  %v4719_v62 = vld [vmem:[%s7093_s1 + $0x84c] sm:$0xf] }
 0x123   :  { %2486 = vmatpush.bf16.msra.mxu3 %v3419_v22  ;;  %v4663_v22 = vld [vmem:[%s7093_s1 + $0x68c] sm:$0xf] }
 0x124   :  { %2511 = vmatpush.bf16.msra.mxu0 %v3691_v32  ;;  %v3851_v31 = vor.u32 %v4663_v22, %v3848_v23  ;;  %v4763_v32 = vld [vmem:[%s7093_s1 + $0x9ac] sm:$0xf]  ;;  %v6832_v38 = vpop.f32.mrf.mxu0 }
 0x125   :  { %2474 = vmatpush.bf16.msra.mxu1 %v3275_v36  ;;  %v4659_v36 = vld [vmem:[%s7093_s1 + $0x66c] sm:$0xf]  ;;  %v6840_v46 = vpop.f32.mrf.mxu1 }
 0x126   :  { %2499 = vmatpush.bf16.msrb.mxu2 %v3547_v4  ;;  %v4104_v4 = vld [vmem:[%s7093_s1 + $0x898] sm:$0xf0]  ;;  %v3835_v5 = vor.u32 %v4659_v36, %v3832_v37  ;;  %v4647_v23 = vld [vmem:[%s7093_s1 + $0x60c] sm:$0xf] }
 0x127   :  { %2487 = vmatpush.bf16.msra.mxu3 %v3403_v40  ;;  %v3960_v40 = vld [vmem:[%s7093_s1 + $0x778] sm:$0xf0]  ;;  %v4107_v48 = vor.u32 %v4727_v35, %v4104_v4  ;;  %v4711_v37 = vld [vmem:[%s7093_s1 + $0x80c] sm:$0xf] }
 0x128   :  { %2512 = vmatpush.bf16.msra.mxu0 %v3675_v52  ;;  %2475 = vmatmul.bf16.vlgmr.msra.gmra.mxu1 %v5159_v3  ;;  %v4767_v3 = vld [vmem:[%s7093_s1 + $0x9cc] sm:$0xf]  ;;  %v3963_v8 = vor.u32 %v4691_v39, %v3960_v40  ;;  %v4184_v4 = vld [vmem:[%s7093_s1 + $0x938] sm:$0xf0] }
 0x129   :  { %2519 = vmatpush.bf16.msrb.mxu1 %v3899_v41  ;;  %v4267_v29 = vor.u32 %v4767_v3, %v4264_v17  ;;  %v4251_v41 = vor.u32 %v4763_v32, %v4248_v33  ;;  %v4655_v52 = vld [vmem:[%s7093_s1 + $0x64c] sm:$0xf]  ;;  %v3803_v3 = vor.u32 %v4651_v2, %v3800_v6  ;;  %v4200_v17 = vld [vmem:[%s7093_s1 + $0x958] sm:$0xf0] }
 0x12a   :  { %2500 = vmatpush.bf16.msrb.mxu2 %v3531_v57  ;;  %2488 = vmatmul.bf16.vlgmr.msra.gmra.mxu3 %v5171_v10  ;;  %v4120_v10 = vld [vmem:[%s7093_s1 + $0x8b8] sm:$0xf0]  ;;  %v3819_v59 = vor.u32 %v4655_v52, %v3816_v53 }
 0x12b   :  { %2532 = vmatpush.bf16.msrb.mxu3 %v4027_v49  ;;  %v4123_v30 = vor.u32 %v4731_v18, %v4120_v10  ;;  %v4232_v49 = vld [vmem:[%s7093_s1 + $0x998] sm:$0xf0]  ;;  %v4715_v18 = vld [vmem:[%s7093_s1 + $0x82c] sm:$0xf] }
 0x12c   :  { %2513 = vmatpush.bf16.msra.mxu0 %v3659_v11  ;;  %v2244_v9 = vpop.f32.mrf.mxu0  ;;  %v4683_v11 = vld [vmem:[%s7093_s1 + $0x72c] sm:$0xf]  ;;  %v4040_v39 = vld [vmem:[%s7093_s1 + $0x818] sm:$0xf0] }
 0x12d   :  { %2520 = vmatpush.bf16.msrb.mxu1 %v3883_v61  ;;  %2501 = vmatmul.bf16.vlgmr.msrb.gmra.mxu2 %v5243_v42  ;;  %v3979_v42 = vor.u32 %v4695_v21, %v3976_v28  ;;  %v4216_v61 = vld [vmem:[%s7093_s1 + $0x978] sm:$0xf0]  ;;  %v6875_v25 = vpop.f32.mrf.mxu3  ;;  %v2257_v10 = vpop.f32.mrf.mxu1  ;;  %v3931_v22 = vor.u32 %v4683_v11, %v3928_v12  ;;  %v4679_v28 = vld [vmem:[%s7093_s1 + $0x70c] sm:$0xf]  ;;  %v4043_v50 = vor.u32 %v4711_v37, %v4040_v39 }
 0x12e   :  { %2545 = vmatpush.bf16.msra.mxu2 %v4155_v60  ;;  %v4755_v60 = vld [vmem:[%s7093_s1 + $0x96c] sm:$0xf]  ;;  %v3784_v21 = vld [vmem:[%s7093_s1 + $0x618] sm:$0xf0] }
 0x12f   :  { %2533 = vmatpush.bf16.msrb.mxu3 %v4011_v1  ;;  %2514 = vmatmul.bf16.vlgmr.msra.gmra.mxu0 %v5247_v45  ;;  %v4759_v45 = vld [vmem:[%s7093_s1 + $0x98c] sm:$0xf]  ;;  %v4072_v1 = vld [vmem:[%s7093_s1 + $0x858] sm:$0xf0]  ;;  %v4219_v14 = vor.u32 %v4755_v60, %v4216_v61  ;;  %v3787_v35 = vor.u32 %v4647_v23, %v3784_v21 }
 0x130   :  { %2558 = vmatpush.bf16.msrb.mxu0 %v4283_v15  ;;  %v4235_v57 = vor.u32 %v4759_v45, %v4232_v49  ;;  %v4751_v15 = vld [vmem:[%s7093_s1 + $0x94c] sm:$0xf]  ;;  %v2191_v49 = vadd.f32 %v6634_v44, %v6494_v27  ;;  %v4793_v53 = vld [vmem:[%s7095_s3 + $0x78] sm:$0xff]  ;;  %v4784_v27 = vld [vmem:[%s7095_s3 + $0x30] sm:$0xff] }
 0x131   :  { %2521 = vmatpush.bf16.msrb.mxu1 %v3867_v19  ;;  %v4075_v19 = vor.u32 %v4719_v62, %v4072_v1  ;;  %v4203_v32 = vor.u32 %v4751_v15, %v4200_v17  ;;  %v4789_v62 = vld [vmem:[%s7095_s3 + $0x58] sm:$0xff]  ;;  %v4788_v1 = vld [vmem:[%s7095_s3 + $0x50] sm:$0xff]  ;;  %v4779_v9 = vld [vmem:[%s7095_s3 + $0x8] sm:$0xff] }
 0x132   :  { %2546 = vmatpush.bf16.msra.mxu2 %v4139_v16  ;;  %v6895_v16 = vpop.f32.mrf.mxu2  ;;  %v2204_v54 = vadd.f32 %v6636_v24, %v2191_v49  ;;  %v4782_v24 = vld [vmem:[%s7095_s3 + $0x20] sm:$0xff]  ;;  %v4799_v17 = vld [vmem:[%s7095_s3 + $0xa8] sm:$0xff]  ;;  %v4797_v21 = vld [vmem:[%s7095_s3 + $0x98] sm:$0xff] }
 0x133   :  { %2534 = vmatpush.bf16.msrb.mxu3 %v3995_v20  ;;  %v4056_v20 = vld [vmem:[%s7093_s1 + $0x838] sm:$0xf0] }
 0x134   :  { %2559 = vmatpush.bf16.msrb.mxu0 %v4267_v29  ;;  %v3912_v29 = vld [vmem:[%s7093_s1 + $0x718] sm:$0xf0]  ;;  %v4059_v33 = vor.u32 %v4715_v18, %v4056_v20 }
 0x135   :  { %2522 = vmatpush.bf16.msrb.mxu1 %v3851_v31  ;;  %v4296_v31 = vld [vmem:[%s7093_s1 + $0xa18] sm:$0xf0]  ;;  %v3915_v36 = vor.u32 %v4679_v28, %v3912_v29  ;;  %v4796_v28 = vld [vmem:[%s7095_s3 + $0x90] sm:$0xff] }
 0x136   :  { %2547 = vmatpush.bf16.msra.mxu2 %v4123_v30  ;;  %v4775_v30 = vld [vmem:[%s7093_s1 + $0xa0c] sm:$0xf] }
 0x137   :  { %2535 = vmatpush.bf16.msrb.mxu3 %v3979_v42  ;;  %v4747_v42 = vld [vmem:[%s7093_s1 + $0x92c] sm:$0xf]  ;;  %v4299_v40 = vor.u32 %v4775_v30, %v4296_v31  ;;  %v4821_v30 = vld [vmem:[%s7094_s2] sm:$0xf] }
 0x138   :  { %2560 = vmatpush.bf16.msrb.mxu0 %v4251_v41  ;;  %v2270_v41 = vpop.f32.mrf.mxu3  ;;  %v4187_v45 = vor.u32 %v4747_v42, %v4184_v4  ;;  %v358_v31 = vperm.slane %v4821_v30, 2 }
 0x139   :  { %2523 = vmatpush.bf16.msrb.mxu1 %v3835_v5  ;;  %v4785_v5 = vld [vmem:[%s7095_s3 + $0x38] sm:$0xff] }
 0x13a   :  { %2548 = vmatpush.bf16.msra.mxu2 %v4107_v48  ;;  %v6936_v48 = vpop.f32.mrf.mxu0  ;;  %v2283_v52 = vpop.f32.mrf.mxu2 }
 0x13b   :  { %2536 = vmatpush.bf16.msrb.mxu3 %v3963_v8  ;;  %v4743_v8 = vld [vmem:[%s7093_s1 + $0x90c] sm:$0xf]  ;;  %s2993_s1 = sshll.u32 %s4848_s21, 4  ;;  %s2994_s1 = int_to_ptr.vmem [resolvable:$true] %s2993_s1 }
 0x13c   :  { %2561 = vmatpush.bf16.msrb.mxu0 %v4235_v57  ;;  %v4171_v44 = vor.u32 %v4743_v8, %v4168_v51  ;;  %v4783_v57 = vld [vmem:[%s7095_s3 + $0x28] sm:$0xff] }
 0x13d   :  { %2524 = vmatpush.bf16.msrb.mxu1 %v3819_v59 }
 0x13e   :  { %2549 = vmatpush.bf16.msra.mxu2 %v4091_v58 }
 0x13f   :  { %2537 = vmatpush.bf16.msrb.mxu3 %v3947_v0  ;;  %v4780_v0 = vld [vmem:[%s7095_s3 + $0x10] sm:$0xff] }
 0x140   :  { %2562 = vmatpush.bf16.msrb.mxu0 %v4219_v14  ;;  %v4787_v14 = vld [vmem:[%s7095_s3 + $0x48] sm:$0xff] }
 0x141   :  { %2525 = vmatpush.bf16.msrb.mxu1 %v3803_v3  ;;  %v2584_v3 = vmax.f32 %v6449_v56, 0.0  ;;  %v4798_v56 = vld [vmem:[%s7095_s3 + $0xa0] sm:$0xff] }
 0x142   :  { %2550 = vmatpush.bf16.msra.mxu2 %v4075_v19  ;;  %v2296_v58 = vpop.f32.mrf.mxu0  ;;  %v4778_v19 = vld [vmem:[%s7095_s3] sm:$0xff] }
 0x143   :  { %2538 = vmatpush.bf16.msrb.mxu3 %v3931_v22  ;;  %v2588_v10 = vpack.c.bf16 %v2584_v3, %v2584_v3 }
 0x144   :  { %2563 = vmatpush.bf16.msrb.mxu0 %v4203_v32 }
 0x145   :  { %2526 = vmatpush.bf16.msrb.mxu1 %v3787_v35 }
 0x146   :  { %2551 = vmatpush.bf16.msra.mxu2 %v4059_v33  ;;  %v4795_v33 = vld [vmem:[%s7095_s3 + $0x88] sm:$0xff] }
 0x147   :  { %2539 = vmatpush.bf16.msrb.mxu3 %v3915_v36  ;;  %v4794_v36 = vld [vmem:[%s7095_s3 + $0x80] sm:$0xff] }
 0x148   :  { %2564 = vmatpush.bf16.msrb.mxu0 %v4187_v45  ;;  %2527 = vmatmul.bf16.vlgmr.msrb.gmra.mxu1 %v5245_v43  ;;  %v2217_v43 = vadd.f32 %v6671_v63, %v2204_v54  ;;  %v2307_v63 = vpop.f32.mrf.mxu1 }
 0x149   :  { %2578 = vmatpush.bf16.msra.mxu1 %v4299_v40  ;;  %v2308_v42 = vadd.f32 %v2307_v63, %v358_v31 }
 0x14a   :  { %2540 = vmatmul.bf16.vlgmr.msrb.gmra.mxu3 %v5252_v47  ;;  %2552 = vmatpush.bf16.msra.mxu2 %v4043_v50  ;;  %v4791_v47 = vld [vmem:[%s7095_s3 + $0x68] sm:$0xff]  ;;  %v2230_v59 = vadd.f32 %v6691_v26, %v2217_v43  ;;  %v2333_v61 = vpop.f32.mrf.mxu0 }
 0x14b   :  { %2856 = vmatpush.bf16.msra.mxu3 %v4785_v5 }
 0x14c   :  { %2565 = vmatpush.bf16.msrb.mxu0 %v4171_v44  ;;  %v2243_v60 = vadd.f32 %v6832_v38, %v2230_v59 }
 0x14d   :  { %2869 = vmatpush.bf16.msrb.mxu1 %v4793_v53  ;;  %2553 = vmatmul.bf16.vlgmr.msra.gmra.mxu2 %v6572_v7  ;;  %v4790_v7 = vld [vmem:[%s7095_s3 + $0x60] sm:$0xff]  ;;  %v2320_v2 = vpop.f32.mrf.mxu3 }
 0x14e   :  { %v2256_v26 = vadd.f32 %v6840_v46, %v2243_v60  ;;  %v4801_v46 = vld [vmem:[%s7095_s3 + $0xb8] sm:$0xff]  ;;  %v2321_v39 = vadd.f32 %v2320_v2, %v2308_v42 }
 0x14f   :  { %2857 = vmatpush.bf16.msra.mxu3 %v4784_v27  ;;  %2566 = vmatmul.bf16.vlgmr.msrb.gmra.mxu0 %v6581_v13  ;;  %v4781_v13 = vld [vmem:[%s7095_s3 + $0x18] sm:$0xff] }
 0x150   :  { %v2269_v38 = vadd.f32 %v6875_v25, %v2256_v26  ;;  %v2309_v6 = vpop.f32.mrf.mxu1  ;;  %v2346_v11 = vpop.f32.mrf.mxu2  ;;  %2882 = vmatpush.bf16.msrb.mxu2 %v4801_v46  ;;  %v4800_v25 = vld [vmem:[%s7095_s3 + $0xb0] sm:$0xff] }
 0x151   :  { %2870 = vmatpush.bf16.msrb.mxu1 %v4792_v55  ;;  %v4808_v26 = vld [vmem:[%s7095_s3 + $0xf0] sm:$0xff]  ;;  %v4805_v6 = vld [vmem:[%s7095_s3 + $0xd8] sm:$0xff] }
 0x152   :  { %v2282_v12 = vadd.f32 %v6895_v16, %v2269_v38  ;;  %v4786_v16 = vld [vmem:[%s7095_s3 + $0x40] sm:$0xff]  ;;  %v4807_v38 = vld [vmem:[%s7095_s3 + $0xe8] sm:$0xff] }
 0x153   :  { %2858 = vmatpush.bf16.msra.mxu3 %v4783_v57 }
 0x154   :  { %v2295_v15 = vadd.f32 %v6936_v48, %v2282_v12  ;;  %2883 = vmatpush.bf16.msrb.mxu2 %v4800_v25  ;;  %v2334_v48 = vadd.f32 %v2333_v61, %v2321_v39  ;;  %v359_v25 = vperm.slane %v4821_v30, 3 }
 0x155   :  { %2871 = vmatpush.bf16.msrb.mxu1 %v4791_v47  ;;  %v2322_v18 = vpop.f32.mrf.mxu3 }
 0x156   :  { %v2585_v20 = vmax.f32 %v2295_v15, 0.0  ;;  %v2347_v45 = vadd.f32 %v2346_v11, %v2334_v48 }
 0x157   :  { %2859 = vmatpush.bf16.msra.mxu3 %v4782_v24  ;;  %v2654_v24 = vld [vmem:[%s7095_s3 + $0xf8] sm:$0x3] }
 0x158   :  { %4303 = vmatmul.msk.bf16.vlgmr.msra.gmra.mxu1 %vm2009_vm0, %v6514_v34  ;;  %v2335_v34 = vpop.f32.mrf.mxu0  ;;  %v2348_v22 = vpop.f32.mrf.mxu2  ;;  %2884 = vmatpush.bf16.msrb.mxu2 %v4799_v17  ;;  %v2589_v23 = vpack.c.bf16 %v2585_v20, %v2585_v20  ;;  %v2784_v59 = vunpack.c.l.b16 %v2654_v24  ;;  %v4802_v17 = vld [vmem:[%s7095_s3 + $0xc0] sm:$0xff] }
 0x159   :  { %2872 = vmatpush.bf16.msrb.mxu1 %v4790_v7  ;;  %v4804_v34 = vld [vmem:[%s7095_s3 + $0xd0] sm:$0xff] }
 0x15a   :  { %v2816_v63 = vpack.c.b16 %v2784_v59, %v2784_v59  ;;  %v4810_v59 = vld [vmem:[%s7097_s5 + $0x8] sm:$0xff] }
 0x15b   :  { %2860 = vmatpush.bf16.msra.mxu3 %v4781_v13 }
 0x15c   :  { %2885 = vmatpush.bf16.msrb.mxu2 %v4798_v56 }
 0x15d   :  { %2873 = vmatpush.bf16.msrb.mxu1 %v4789_v62  ;;  %v2854_v62 = vsel %vm2852_vm1, %v2816_v63, 0 }
 0x15e   :  { %2895 = vmatpush.bf16.msra.mxu0 %v2854_v62 }
 0x15f   :  { %2861 = vmatpush.bf16.msra.mxu3 %v4780_v0 }
 0x160   :  { %2886 = vmatpush.bf16.msrb.mxu2 %v4797_v21 }
 0x161   :  { %2874 = vmatpush.bf16.msrb.mxu1 %v4788_v1  ;;  %v4806_v1 = vld [vmem:[%s7095_s3 + $0xe0] sm:$0xff] }
 0x162   :  { %2896 = vmatpush.bf16.msra.mxu0 %v4808_v26 }
 0x163   :  { %2862 = vmatpush.bf16.msra.mxu3 %v4779_v9 }
 0x164   :  { %2887 = vmatpush.bf16.msrb.mxu2 %v4796_v28 }
 0x165   :  { %2875 = vmatpush.bf16.msrb.mxu1 %v4787_v14  ;;  %v2359_v29 = vpop.f32.mrf.mxu1  ;;  %v4803_v14 = vld [vmem:[%s7095_s3 + $0xc8] sm:$0xff] }
 0x166   :  { %v2360_v50 = vadd.f32 %v2359_v29, %v2347_v45  ;;  %2897 = vmatpush.bf16.msra.mxu0 %v4807_v38  ;;  %v4816_v45 = vld [vmem:[%s7096_s4] ss:$0 sm:$0xff] }
 0x167   :  { %2863 = vmatpush.bf16.msra.mxu3 %v4778_v19 }
 0x168   :  { %v2385_v32 = vpop.f32.mrf.mxu0  ;;  %2888 = vmatpush.bf16.msrb.mxu2 %v4795_v33 }
 0x169   :  { %2876 = vmatpush.bf16.msrb.mxu1 %v4786_v16 }
 0x16a   :  { %2864 = vmatmul.bf16.vlgmr.msra.gmra.mxu3 %v2588_v10  ;;  %2898 = vmatpush.bf16.msra.mxu0 %v4806_v1 }
 0x16c   :  { %2877 = vmatmul.bf16.vlgmr.msrb.gmra.mxu1 %v2589_v23  ;;  %2889 = vmatpush.bf16.msrb.mxu2 %v4794_v36 }
 0x16d   :  { %v2372_v35 = vpop.f32.mrf.mxu3  ;;  %v2361_v4 = vpop.f32.mrf.mxu1 }
 0x16e   :  { %v2373_v8 = vadd.f32 %v2372_v35, %v2360_v50  ;;  %2899 = vmatpush.bf16.msra.mxu0 %v4805_v6 }
 0x170   :  { %v2398_v37 = vpop.f32.mrf.mxu2  ;;  %v2387_v40 = vpop.f32.mrf.mxu0  ;;  %v2386_v52 = vadd.f32 %v2385_v32, %v2373_v8 }
 0x172   :  { %v2399_v27 = vadd.f32 %v2398_v37, %v2386_v52  ;;  %2900 = vmatpush.bf16.msra.mxu0 %v4804_v34 }
 0x175   :  { %v2374_v41 = vpop.f32.mrf.mxu3 }
 0x176   :  { %2901 = vmatpush.bf16.msra.mxu0 %v4803_v14 }
 0x178   :  { %v2400_v5 = vpop.f32.mrf.mxu2  ;;  %v2437_v49 = vpop.f32.mrf.mxu0 }
 0x17a   :  { %2902 = vmatpush.bf16.msra.mxu0 %v4802_v17 }
 0x180   :  { %v2439_v51 = vpop.f32.mrf.mxu0 }
 0x185   :  { %v2411_v53 = vpop.f32.mrf.mxu1 }
 0x186   :  { %v2412_v44 = vadd.f32 %v2411_v53, %v2399_v27  ;;  %v2922_v53 = vld [vmem:[%s7097_s5 + $0x30] sm:$0x3] }
 0x187   :  { %v2952_v27 = vunpack.c.l.b16 %v2922_v53 }
 0x18c   :  { %v2463_v55 = vpop.f32.mrf.mxu0 }
 0x18d   :  { %v2424_v54 = vpop.f32.mrf.mxu3  ;;  %v2413_v58 = vpop.f32.mrf.mxu1 }
 0x18e   :  { %v2425_v57 = vadd.f32 %v2424_v54, %v2412_v44  ;;  %v2959_v44 = vpack.c.b16 %v2952_v27, %v2952_v27  ;;  %v4812_v58 = vld [vmem:[%s7097_s5 + $0x18] sm:$0xff] }
 0x190   :  { %v2438_v43 = vadd.f32 %v2437_v49, %v2425_v57  ;;  %v2450_v47 = vpop.f32.mrf.mxu2  ;;  %v2971_v54 = vsel %vm2852_vm1, %v2959_v44, 0  ;;  %v4813_v57 = vld [vmem:[%s7097_s5 + $0x20] sm:$0xff] }
 0x191   :  { %v2451_v15 = vadd.f32 %v2450_v47, %v359_v25  ;;  %2974 = vmatpush.bf16.msrb.mxu3 %v2971_v54 }
 0x192   :  { %v2586_v7 = vmax.f32 %v2438_v43, 0.0  ;;  %v4811_v43 = vld [vmem:[%s7097_s5 + $0x10] sm:$0xff] }
 0x193   :  { %v2464_v16 = vadd.f32 %v2463_v55, %v2451_v15  ;;  %v4814_v55 = vld [vmem:[%s7097_s5 + $0x28] sm:$0xff] }
 0x194   :  { %v2590_v60 = vpack.c.bf16 %v2586_v7, %v2586_v7  ;;  %v2465_v61 = vpop.f32.mrf.mxu0  ;;  %v4809_v7 = vld [vmem:[%s7097_s5] sm:$0xff] }
 0x195   :  { %v2426_v13 = vpop.f32.mrf.mxu3  ;;  %2975 = vmatpush.bf16.msrb.mxu3 %v4814_v55 }
 0x196   :  { %2890 = vmatmul.bf16.vlgmr.msrb.gmra.mxu2 %v2590_v60 }
 0x198   :  { %v2452_v0 = vpop.f32.mrf.mxu2 }
 0x199   :  { %2976 = vmatpush.bf16.msrb.mxu3 %v4813_v57  ;;  %v4817_v0 = vld [vmem:[%s7098_s6] ss:$0 sm:$0xff] }
 0x19d   :  { %2977 = vmatpush.bf16.msrb.mxu3 %v4812_v58 }
 0x1a1   :  { %2978 = vmatpush.bf16.msrb.mxu3 %v4811_v43 }
 0x1a5   :  { %v2476_v2 = vpop.f32.mrf.mxu1  ;;  %2979 = vmatpush.bf16.msrb.mxu3 %v4810_v59 }
 0x1a6   :  { %v2477_v20 = vadd.f32 %v2476_v2, %v2464_v16 }
 0x1a9   :  { %2980 = vmatpush.bf16.msrb.mxu3 %v4809_v7 }
 0x1ac   :  { %v2515_v9 = vpop.f32.mrf.mxu0 }
 0x1ad   :  { %v2489_v46 = vpop.f32.mrf.mxu3  ;;  %v2478_v11 = vpop.f32.mrf.mxu1 }
 0x1ae   :  { %v2490_v10 = vadd.f32 %v2489_v46, %v2477_v20 }
 0x1b0   :  { %v2502_v12 = vpop.f32.mrf.mxu2 }
 0x1b1   :  { %v2503_v22 = vadd.f32 %v2502_v12, %v2490_v10 }
 0x1b3   :  { %v2516_v23 = vadd.f32 %v2515_v9, %v2503_v22 }
 0x1b4   :  { %v2517_v3 = vpop.f32.mrf.mxu0 }
 0x1b5   :  { %v2491_v19 = vpop.f32.mrf.mxu3 }
 0x1b8   :  { %v2504_v18 = vpop.f32.mrf.mxu2 }
 0x1c5   :  { %v2528_v56 = vpop.f32.mrf.mxu1 }
 0x1c6   :  { %v2529_v21 = vadd.f32 %v2528_v56, %v2516_v23 }
 0x1cc   :  { %v2567_v29 = vpop.f32.mrf.mxu0 }
 0x1cd   :  { %v2541_v28 = vpop.f32.mrf.mxu3  ;;  %v2530_v31 = vpop.f32.mrf.mxu1 }
 0x1ce   :  { %v2542_v30 = vadd.f32 %v2541_v28, %v2529_v21 }
 0x1d0   :  { %v2554_v32 = vpop.f32.mrf.mxu2 }
 0x1d1   :  { %v2555_v33 = vadd.f32 %v2554_v32, %v2542_v30 }
 0x1d3   :  { %v2568_v4 = vadd.f32 %v2567_v29, %v2555_v33 }
 0x1d4   :  { %v2569_v42 = vpop.f32.mrf.mxu0 }
 0x1d5   :  { %v2543_v35 = vpop.f32.mrf.mxu3  ;;  %v2580_v36 = vpop.f32.mrf.mxu1 }
 0x1d6   :  { %v2581_v37 = vadd.f32 %v2580_v36, %v2568_v4 }
 0x1d8   :  { %v2556_v39 = vpop.f32.mrf.mxu2  ;;  %v2587_v40 = vmax.f32 %v2581_v37, 0.0 }
 0x1da   :  { %v2591_v41 = vpack.c.bf16 %v2587_v40, %v2587_v40 }
 0x1dc   :  { %4428 = vmatmul.msk.bf16.vlgmr.msra.gmra.mxu0 %vm2848_vm2, %v2591_v41 }
 0x1dd   :  { %v2582_v48 = vpop.f32.mrf.mxu1 }
 0x1e9   :  { %v2878_v5 = vpop.f32.mrf.mxu1 }
 0x1ed   :  { %v2865_v49 = vpop.f32.mrf.mxu3 }
 0x1ee   :  { %v2866_v50 = vadd.f32 %v4816_v45, %v2865_v49 }
 0x1f0   :  { %v2879_v8 = vadd.f32 %v2878_v5, %v2866_v50 }
 0x1f1   :  { %v2880_v51 = vpop.f32.mrf.mxu1 }
 0x1f5   :  { %v2867_v52 = vpop.f32.mrf.mxu3 }
 0x219   :  { %v2891_v47 = vpop.f32.mrf.mxu2 }
 0x21a   :  { %v2892_v63 = vadd.f32 %v2891_v47, %v2879_v8 }
 0x221   :  { %v2893_v24 = vpop.f32.mrf.mxu2 }
 0x259   :  { %v2904_v60 = vpop.f32.mrf.mxu0 }
 0x25a   :  { %v2905_v13 = vadd.f32 %v2904_v60, %v2892_v63 }
 0x25c   :  { %v2908_v61 = vmax.f32 %v2905_v13, 0.0 }
 0x25e   :  { %v2909_v62 = vpack.c.bf16 %v2908_v61, %v2908_v61 }
 0x260   :  { %4453 = vmatmul.msk.bf16.vlgmr.msrb.gmra.mxu3 %vm2966_vm3, %v2909_v62 }
 0x261   :  { %v2906_v26 = vpop.f32.mrf.mxu0 }
 0x2e3   :  { %v2982_v38 = vpop.f32.mrf.mxu3 }
 0x2e4   :  { %v2983_v1 = vadd.f32 %v4817_v0, %v2982_v38 }
 0x2e6   :  { %2987 = vst.msk [vmem:[#allocation2] sm:$0x3] %vm2986_vm4, %v2983_v1 }
 0x2e7   :  { %2998 = dma.vmem_to_hbm [thread:$0]  %s2994_s1, 32, %s2996_s24, [#allocation3]  }
 0x2eb   :  { %v2984_v2 = vpop.f32.mrf.mxu3 }
 0x2ec   :  { %4846 = dma.done.wait [#allocation3], 32  }
 0x2ed   :  { %4847 = vsyncadd [#allocation3], 4294967264 }
 0x2ee   :  { %3003 = vsyncpa [#allocation3], 1 }

</bundles_post_ra>
